<compile_context>
chip_gen: v7x
topology: tpu7x:2x2x1
jax: 0.10.0
libtpu: 0.0.40
codegen_flags: <defaults>
</compile_context>

<pallas_src>
import functools
import math

import jax
import jax.numpy as jnp
from jax.experimental import pallas as pl
from jax.experimental.pallas import tpu as pltpu


def _graph_transformer_kernel(
    x_ref, adj_ref,
    wqkv_ref, bqkv_ref,        # fused q/k/v projection (q pre-scaled), W in bf16
    wo_ref, bo_ref,            # output projection, W in bf16
    we1_ref, be1_ref,          # edge_proj linear 1 (1 -> D)        [SMEM]
    we2_ref, be2_ref,          # edge_proj linear 2 (H, D) / (1, H) [SMEM]
    gamma_ref, beta_ref,       # LayerNorm affine
    out_ref,                   # (Bt, N, D)
    *, heads: int, head_dim: int, block_b: int, n_nodes: int,
):
    H = heads
    D = head_dim                 # head dim == out_channels (.view(B,N,H,-1))
    HD = H * D
    Bt = block_b
    N = n_nodes
    C = x_ref.shape[-1]

    x2 = x_ref[...].reshape(Bt * N, C)            # f32, kept for the residual
    adj = adj_ref[...]                            # (Bt, N, N) f32, lane-dense over N

    # ---- fused Q/K/V projection: one wide MXU matmul (bf16 in, f32 acc) ------
    qkv = jnp.dot(x2.astype(jnp.bfloat16), wqkv_ref[...],
                  preferred_element_type=jnp.float32) + bqkv_ref[...]

    # ---- edge_proj, lane-dense over N (VPU): ---------------------------------
    #   edge_h[b,n,m] = sum_d relu(adj[b,n,m]*we1[d] + be1[d]) * we2[h,d]
    # never materializes (rows, N, D) / (rows, N, H) lane-padded tensors.
    edge = [jnp.zeros((Bt, N, N), dtype=jnp.float32) for _ in range(H)]
    for d_idx in range(D):
        hid = jnp.maximum(adj * we1_ref[0, d_idx] + be1_ref[0, d_idx], 0.0)
        for h in range(H):
            edge[h] = edge[h] + hid * we2_ref[h, d_idx]

    # ---- per-head attention, batched over Bt; accumulate the output
    # ---- projection per head (no acc_ref round-trip) -------------------------
    o = jnp.zeros((Bt * N, D), dtype=jnp.float32) + bo_ref[...]
    for h in range(H):
        q_h = qkv[:, h * D:(h + 1) * D].reshape(Bt, N, D).astype(jnp.bfloat16)
        k_h = qkv[:, HD + h * D:HD + (h + 1) * D].reshape(Bt, N, D).astype(jnp.bfloat16)
        v_h = qkv[:, 2 * HD + h * D:2 * HD + (h + 1) * D].reshape(Bt, N, D).astype(jnp.bfloat16)

        s = jnp.einsum('bnd,bmd->bnm', q_h, k_h,
                       preferred_element_type=jnp.float32)       # (Bt, N, N)
        s = s + (edge[h] + be2_ref[0, h])                        # edge bias

        # softmax over the "m" axis; normalize AFTER the PV matmul
        s_max = jnp.max(s, axis=-1, keepdims=True)
        p = jnp.exp(s - s_max)
        denom = jnp.sum(p, axis=-1, keepdims=True)               # (Bt, N, 1)

        attn_h = jnp.einsum('bnm,bmd->bnd', p.astype(jnp.bfloat16), v_h,
                            preferred_element_type=jnp.float32)  # (Bt, N, D)
        attn_h = attn_h * pl.reciprocal(denom, approx=True)      # EUP, D lanes

        o = o + jnp.dot(attn_h.reshape(Bt * N, D).astype(jnp.bfloat16),
                        wo_ref[h * D:(h + 1) * D, :],
                        preferred_element_type=jnp.float32)

    # ---- residual + LayerNorm (fused statistics) -----------------------------
    res = x2 + o                                     # residual (needs C == D)
    mean = jnp.mean(res, axis=-1, keepdims=True)
    msq = jnp.mean(res * res, axis=-1, keepdims=True)
    var = msq - mean * mean                          # E[x^2] - E[x]^2
    normed = (res - mean) * jax.lax.rsqrt(var + 1e-5)
    y = normed * gamma_ref[...] + beta_ref[...]      # (Bt*N, D)

    out_ref[...] = y.reshape(Bt, N, D)


def _device_info():
    """(vmem_capacity_bytes, is_v7x_like, is_v5e_like) with safe fallbacks."""
    kind = ""
    try:
        kind = jax.devices()[0].device_kind.lower()
    except Exception:
        pass
    is_v7 = "v7" in kind
    is_v5 = "v5" in kind
    vmem = None
    try:
        vmem = int(getattr(pltpu.get_tpu_info(), "vmem_capacity_bytes", 0)) or None
    except Exception:
        vmem = None
    if vmem is None:
        vmem = (64 if is_v7 else 128) * 1024 * 1024
    return vmem, is_v7, is_v5


def _vmem_step_estimate(bt, n, c, heads, d):
    """Rough per-grid-step VMEM footprint (bytes), including lane padding."""
    lp = lambda v: ((v + 127) // 128) * 128
    sp = lambda v: ((v + 7) // 8) * 8
    f32, bf16 = 4, 2
    hd = heads * d
    rows = sp(bt * n)
    # double-buffered pipeline blocks: x, adj, out
    io = 2 * bt * sp(n) * (lp(c) + lp(n) + lp(d)) * f32
    # projection intermediates (qkv f32 + bf16 copy of x)
    proj = rows * lp(3 * hd) * f32 + rows * lp(c) * bf16
    # per-head edge bias maps kept live across the head loop
    edge = heads * bt * sp(n) * lp(n) * f32
    # live per-head working set: scores + probs (f32), q/k/v (bf16), attn (f32)
    head = bt * sp(n) * (2 * lp(n) * f32 + 3 * lp(d) * bf16 + lp(d) * f32)
    # output accumulator + residual/LN temporaries
    tail = 3 * rows * lp(d) * f32
    # weights (double-buffered) + small vectors
    weights = 2 * (sp(c) * lp(3 * hd) * bf16 + sp(hd) * lp(d) * bf16) \
        + 16 * 8 * lp(max(3 * hd, d)) * f32
    return io + proj + edge + head + tail + weights


def _pick_block_b(batch, n, c, heads, d, vmem_budget, prefer_two_steps,
                  target_rows):
    """Batch elements per grid step: fill the MXU M-dim within the VMEM budget."""
    candidates = [bt for bt in range(1, batch + 1) if batch % bt == 0]
    best = 1
    for bt in candidates:
        if bt * n > max(target_rows, n):
            continue
        if _vmem_step_estimate(bt, n, c, heads, d) > vmem_budget:
            continue
        best = bt
    if prefer_two_steps and batch // best < 2:
        smaller = [bt for bt in candidates if bt < best and batch // bt >= 2]
        if smaller:
            best = max(smaller)
    return best


def graph_transformer_layer(x, adj, params, *, heads, out_channels,
                            block_b=None):
    (wq, bq, wk, bk, wv, bv, wo, bo,
     we1, be1, we2, be2, gamma, beta) = params
    B, N, C = x.shape
    H, D = heads, out_channels
    HD = H * D

    # Fail fast in the wrapper rather than inside tracing.
    assert C == out_channels, "residual add requires in_channels == out_channels"
    assert adj.shape == (B, N, N)
    assert wq.shape == (C, HD) and wk.shape == (C, HD) and wv.shape == (C, HD)
    assert wo.shape == (HD, D) and we1.shape == (1, D) and we2.shape == (H, D)

    # Fold the attention scale into the Q weights/bias, fuse Q/K/V into one wide
    # projection, and pre-cast the MXU weight operands to bf16 (once, outside).
    scale = 1.0 / math.sqrt(out_channels // heads)
    wqkv = jnp.concatenate([wq * scale, wk, wv], axis=1).astype(jnp.bfloat16)
    bqkv = jnp.concatenate([bq * scale, bk, bv], axis=1).astype(jnp.float32)
    wo_bf16 = wo.astype(jnp.bfloat16)

    vmem_bytes, is_v7, is_v5 = _device_info()
    vmem_limit = min(vmem_bytes * 3 // 4, 96 * 1024 * 1024)
    target_rows = 128 if is_v5 else 256        # v5e MXU is 4x128^2
    if block_b is None:
        block_b = _pick_block_b(B, N, C, H, D,
                                vmem_budget=vmem_limit // 2,
                                prefer_two_steps=is_v7,   # 2 TCs only on v7x
                                target_rows=target_rows)
    assert B % block_b == 0, "block_b must divide the batch size"
    grid = (B // block_b,)

    kernel = functools.partial(
        _graph_transformer_kernel, heads=H, head_dim=D,
        block_b=block_b, n_nodes=N)

    def rep(shape):
        zeros = (0,) * len(shape)
        return pl.BlockSpec(shape, lambda b, _z=zeros: _z)

    smem = pl.BlockSpec(memory_space=pltpu.MemorySpace.SMEM)

    in_specs = [
        pl.BlockSpec((block_b, N, C), lambda b: (b, 0, 0)),   # x (f32)
        pl.BlockSpec((block_b, N, N), lambda b: (b, 0, 0)),   # adj (f32)
        rep((C, 3 * HD)), rep((1, 3 * HD)),                   # wqkv (bf16), bqkv
        rep((HD, D)), rep((1, D)),                            # wo (bf16), bo
        smem, smem,                                           # we1, be1 (SMEM)
        smem, smem,                                           # we2, be2 (SMEM)
        rep((1, D)), rep((1, D)),                             # gamma, beta
    ]

    return pl.pallas_call(
        kernel,
        out_shape=jax.ShapeDtypeStruct((B, N, D), jnp.float32),
        grid=grid,
        in_specs=in_specs,
        out_specs=pl.BlockSpec((block_b, N, D), lambda b: (b, 0, 0)),
        compiler_params=pltpu.CompilerParams(
            dimension_semantics=("parallel",),
            vmem_limit_bytes=int(vmem_limit)),
    )(x, adj, wqkv, bqkv, wo_bf16, bo, we1, be1, we2, be2, gamma, beta)


def _reference(x, adj, params, *, heads, out_channels):
    """Pure-JAX re-implementation of the PyTorch forward (eval mode, f32)."""
    (wq, bq, wk, bk, wv, bv, wo, bo, we1, be1, we2, be2, gamma, beta) = params
    B, N, C = x.shape
    H, D = heads, out_channels
    q = (x @ wq + bq[0]).reshape(B, N, H, D)
    k = (x @ wk + bk[0]).reshape(B, N, H, D)
    v = (x @ wv + bv[0]).reshape(B, N, H, D)
    hidden = jax.nn.relu(adj[..., None] * we1[0] + be1[0])       # (B, N, N, D)
    edge = hidden @ we2.T + be2[0]                               # (B, N, N, H)
    att = jnp.einsum('bnhd,bmhd->bnmh', q, k) / math.sqrt(out_channels // heads)
    att = jax.nn.softmax(att + edge, axis=2)
    out = jnp.einsum('bnmh,bmhd->bnhd', att, v).reshape(B, N, H * D)
    out = out @ wo + bo[0]
    out = x + out
    mean = out.mean(-1, keepdims=True)
    var = jnp.square(out - mean).mean(-1, keepdims=True)
    out = (out - mean) / jnp.sqrt(var + 1e-5)
    return out * gamma[0] + beta[0]


if __name__ == "__main__":
    # small, module-consistent shapes
    B, N = 2, 8
    in_channels = out_channels = 32     # residual add requires C == out_channels
    heads = 4
    HD = heads * out_channels

    key = jax.random.PRNGKey(0)
    ks = jax.random.split(key, 16)

    def lin(k, fan_in, shape):
        bound = 1.0 / math.sqrt(fan_in)
        return jax.random.uniform(k, shape, jnp.float32, -bound, bound)

    # weights pre-transposed for `act @ W` (PyTorch Linear stores (out, in))
    wq = lin(ks[0], in_channels, (in_channels, HD)); bq = lin(ks[1], in_channels, (1, HD))
    wk = lin(ks[2], in_channels, (in_channels, HD)); bk = lin(ks[3], in_channels, (1, HD))
    wv = lin(ks[4], in_channels, (in_channels, HD)); bv = lin(ks[5], in_channels, (1, HD))
    wo = lin(ks[6], HD, (HD, out_channels));         bo = lin(ks[7], HD, (1, out_channels))
    we1 = lin(ks[8], 1, (1, out_channels));          be1 = lin(ks[9], 1, (1, out_channels))
    we2 = lin(ks[10], out_channels, (heads, out_channels))   # PyTorch layout (H, OC)
    be2 = lin(ks[11], out_channels, (1, heads))
    gamma = jnp.ones((1, out_channels), jnp.float32)          # LayerNorm default init
    beta = jnp.zeros((1, out_channels), jnp.float32)

    params = (wq, bq, wk, bk, wv, bv, wo, bo, we1, be1, we2, be2, gamma, beta)

    x = jax.random.normal(ks[12], (B, N, in_channels), jnp.float32)
    adj = jax.random.uniform(ks[13], (B, N, N), jnp.float32)  # dense weighted adjacency

    out = graph_transformer_layer(x, adj, params,
                                  heads=heads, out_channels=out_channels)
    out = jax.block_until_ready(out)

    ref = _reference(x, adj, params, heads=heads, out_channels=out_channels)
    assert out.shape == (B, N, out_channels)
    # tolerance covers bf16 MXU operands + the EUP approximate reciprocal;
    # the reference runs the full chain in f32.
    assert jnp.allclose(out, ref, rtol=3e-2, atol=3e-2), \
        f"max abs err {jnp.max(jnp.abs(out - ref))}"

    print("KERNEL_OK")
</pallas_src>

<mosaic_0001>
module attributes {stable_mosaic.version = 11 : i64} {
  func.func @_graph_transformer_kernel(%arg0: i32, %arg1: memref<2x8x32xf32, #tpu.memory_space<vmem>>, %arg2: memref<2x8x8xf32, #tpu.memory_space<vmem>>, %arg3: memref<32x384xbf16, #tpu.memory_space<vmem>>, %arg4: memref<1x384xf32, #tpu.memory_space<vmem>>, %arg5: memref<128x32xbf16, #tpu.memory_space<vmem>>, %arg6: memref<1x32xf32, #tpu.memory_space<vmem>>, %arg7: memref<1x32xf32, #tpu.memory_space<smem>>, %arg8: memref<1x32xf32, #tpu.memory_space<smem>>, %arg9: memref<4x32xf32, #tpu.memory_space<smem>>, %arg10: memref<1x4xf32, #tpu.memory_space<smem>>, %arg11: memref<1x32xf32, #tpu.memory_space<vmem>>, %arg12: memref<1x32xf32, #tpu.memory_space<vmem>>, %arg13: memref<2x8x32xf32, #tpu.memory_space<vmem>>) attributes {dimension_semantics = [#tpu.dimension_semantics<parallel>], iteration_bounds = array<i64: 1>, scalar_prefetch = 0 : i64, scratch_operands = 0 : i64, tpu.core_type = #tpu.core_type<tc>, window_params = [{transform_indices = @transform_0, window_bounds = array<i64: 2, 8, 32>}, {transform_indices = @transform_1, window_bounds = array<i64: 2, 8, 8>}, {pipeline_mode = #tpu.pipeline_mode<synchronous>, transform_indices = @transform_2, window_bounds = array<i64: 32, 384>}, {pipeline_mode = #tpu.pipeline_mode<synchronous>, transform_indices = @transform_3, window_bounds = array<i64: 1, 384>}, {pipeline_mode = #tpu.pipeline_mode<synchronous>, transform_indices = @transform_4, window_bounds = array<i64: 128, 32>}, {pipeline_mode = #tpu.pipeline_mode<synchronous>, transform_indices = @transform_5, window_bounds = array<i64: 1, 32>}, {transform_indices = @transform_6, window_bounds = array<i64: 1, 32>}, {transform_indices = @transform_7, window_bounds = array<i64: 1, 32>}, {transform_indices = @transform_8, window_bounds = array<i64: 4, 32>}, {transform_indices = @transform_9, window_bounds = array<i64: 1, 4>}, {pipeline_mode = #tpu.pipeline_mode<synchronous>, transform_indices = @transform_10, window_bounds = array<i64: 1, 32>}, {pipeline_mode = #tpu.pipeline_mode<synchronous>, transform_indices = @transform_11, window_bounds = array<i64: 1, 32>}, {transform_indices = @transform_12, window_bounds = array<i64: 2, 8, 32>}]} {
    %c0 = arith.constant 0 : index
    %c0_0 = arith.constant 0 : index
    %c0_1 = arith.constant 0 : index
    %0 = vector.load %arg1[%c0, %c0_0, %c0_1] : memref<2x8x32xf32, #tpu.memory_space<vmem>>, vector<2x8x32xf32>
    %1 = vector.shape_cast %0 : vector<2x8x32xf32> to vector<16x32xf32>
    %c0_2 = arith.constant 0 : index
    %c0_3 = arith.constant 0 : index
    %c0_4 = arith.constant 0 : index
    %2 = vector.load %arg2[%c0_2, %c0_3, %c0_4] : memref<2x8x8xf32, #tpu.memory_space<vmem>>, vector<2x8x8xf32>
    %3 = arith.truncf %1 : vector<16x32xf32> to vector<16x32xbf16>
    %c0_5 = arith.constant 0 : index
    %c0_6 = arith.constant 0 : index
    %4 = vector.load %arg3[%c0_5, %c0_6] : memref<32x384xbf16, #tpu.memory_space<vmem>>, vector<32x384xbf16>
    %cst = arith.constant dense<0.000000e+00> : vector<16x384xf32>
    %5 = tpu.matmul %3, %4, %cst {dimension_numbers = #tpu.dot_dimension_numbers<[1], [0], [0], [1], [0, 0, 1, 1], [], []>} : vector<16x32xbf16>, vector<32x384xbf16>, vector<16x384xf32> -> vector<16x384xf32>
    %c0_7 = arith.constant 0 : index
    %c0_8 = arith.constant 0 : index
    %6 = vector.load %arg4[%c0_7, %c0_8] : memref<1x384xf32, #tpu.memory_space<vmem>>, vector<1x384xf32>
    %7 = vector.broadcast %6 : vector<1x384xf32> to vector<16x384xf32>
    %8 = arith.addf %5, %7 : vector<16x384xf32>
    %cst_9 = arith.constant 0.000000e+00 : f32
    %9 = vector.broadcast %cst_9 : f32 to vector<2x8x8xf32>
    %cst_10 = arith.constant 0.000000e+00 : f32
    %10 = vector.broadcast %cst_10 : f32 to vector<2x8x8xf32>
    %cst_11 = arith.constant 0.000000e+00 : f32
    %11 = vector.broadcast %cst_11 : f32 to vector<2x8x8xf32>
    %cst_12 = arith.constant 0.000000e+00 : f32
    %12 = vector.broadcast %cst_12 : f32 to vector<2x8x8xf32>
    %c0_13 = arith.constant 0 : index
    %c0_14 = arith.constant 0 : index
    %13 = memref.load %arg7[%c0_13, %c0_14] : memref<1x32xf32, #tpu.memory_space<smem>>
    %14 = vector.broadcast %13 : f32 to vector<2x8x8xf32>
    %15 = arith.mulf %2, %14 : vector<2x8x8xf32>
    %c0_15 = arith.constant 0 : index
    %c0_16 = arith.constant 0 : index
    %16 = memref.load %arg8[%c0_15, %c0_16] : memref<1x32xf32, #tpu.memory_space<smem>>
    %17 = vector.broadcast %16 : f32 to vector<2x8x8xf32>
    %18 = arith.addf %15, %17 : vector<2x8x8xf32>
    %cst_17 = arith.constant 0.000000e+00 : f32
    %19 = vector.broadcast %cst_17 : f32 to vector<2x8x8xf32>
    %20 = arith.maximumf %18, %19 : vector<2x8x8xf32>
    %c0_18 = arith.constant 0 : index
    %c0_19 = arith.constant 0 : index
    %21 = memref.load %arg9[%c0_18, %c0_19] : memref<4x32xf32, #tpu.memory_space<smem>>
    %22 = vector.broadcast %21 : f32 to vector<2x8x8xf32>
    %23 = arith.mulf %20, %22 : vector<2x8x8xf32>
    %24 = arith.addf %9, %23 : vector<2x8x8xf32>
    %c1 = arith.constant 1 : index
    %c0_20 = arith.constant 0 : index
    %25 = memref.load %arg9[%c1, %c0_20] : memref<4x32xf32, #tpu.memory_space<smem>>
    %26 = vector.broadcast %25 : f32 to vector<2x8x8xf32>
    %27 = arith.mulf %20, %26 : vector<2x8x8xf32>
    %28 = arith.addf %10, %27 : vector<2x8x8xf32>
    %c2 = arith.constant 2 : index
    %c0_21 = arith.constant 0 : index
    %29 = memref.load %arg9[%c2, %c0_21] : memref<4x32xf32, #tpu.memory_space<smem>>
    %30 = vector.broadcast %29 : f32 to vector<2x8x8xf32>
    %31 = arith.mulf %20, %30 : vector<2x8x8xf32>
    %32 = arith.addf %11, %31 : vector<2x8x8xf32>
    %c3 = arith.constant 3 : index
    %c0_22 = arith.constant 0 : index
    %33 = memref.load %arg9[%c3, %c0_22] : memref<4x32xf32, #tpu.memory_space<smem>>
    %34 = vector.broadcast %33 : f32 to vector<2x8x8xf32>
    %35 = arith.mulf %20, %34 : vector<2x8x8xf32>
    %36 = arith.addf %12, %35 : vector<2x8x8xf32>
    %c0_23 = arith.constant 0 : index
    %c1_24 = arith.constant 1 : index
    %37 = memref.load %arg7[%c0_23, %c1_24] : memref<1x32xf32, #tpu.memory_space<smem>>
    %38 = vector.broadcast %37 : f32 to vector<2x8x8xf32>
    %39 = arith.mulf %2, %38 : vector<2x8x8xf32>
    %c0_25 = arith.constant 0 : index
    %c1_26 = arith.constant 1 : index
    %40 = memref.load %arg8[%c0_25, %c1_26] : memref<1x32xf32, #tpu.memory_space<smem>>
    %41 = vector.broadcast %40 : f32 to vector<2x8x8xf32>
    %42 = arith.addf %39, %41 : vector<2x8x8xf32>
    %cst_27 = arith.constant 0.000000e+00 : f32
    %43 = vector.broadcast %cst_27 : f32 to vector<2x8x8xf32>
    %44 = arith.maximumf %42, %43 : vector<2x8x8xf32>
    %c0_28 = arith.constant 0 : index
    %c1_29 = arith.constant 1 : index
    %45 = memref.load %arg9[%c0_28, %c1_29] : memref<4x32xf32, #tpu.memory_space<smem>>
    %46 = vector.broadcast %45 : f32 to vector<2x8x8xf32>
    %47 = arith.mulf %44, %46 : vector<2x8x8xf32>
    %48 = arith.addf %24, %47 : vector<2x8x8xf32>
    %c1_30 = arith.constant 1 : index
    %c1_31 = arith.constant 1 : index
    %49 = memref.load %arg9[%c1_30, %c1_31] : memref<4x32xf32, #tpu.memory_space<smem>>
    %50 = vector.broadcast %49 : f32 to vector<2x8x8xf32>
    %51 = arith.mulf %44, %50 : vector<2x8x8xf32>
    %52 = arith.addf %28, %51 : vector<2x8x8xf32>
    %c2_32 = arith.constant 2 : index
    %c1_33 = arith.constant 1 : index
    %53 = memref.load %arg9[%c2_32, %c1_33] : memref<4x32xf32, #tpu.memory_space<smem>>
    %54 = vector.broadcast %53 : f32 to vector<2x8x8xf32>
    %55 = arith.mulf %44, %54 : vector<2x8x8xf32>
    %56 = arith.addf %32, %55 : vector<2x8x8xf32>
    %c3_34 = arith.constant 3 : index
    %c1_35 = arith.constant 1 : index
    %57 = memref.load %arg9[%c3_34, %c1_35] : memref<4x32xf32, #tpu.memory_space<smem>>
    %58 = vector.broadcast %57 : f32 to vector<2x8x8xf32>
    %59 = arith.mulf %44, %58 : vector<2x8x8xf32>
    %60 = arith.addf %36, %59 : vector<2x8x8xf32>
    %c0_36 = arith.constant 0 : index
    %c2_37 = arith.constant 2 : index
    %61 = memref.load %arg7[%c0_36, %c2_37] : memref<1x32xf32, #tpu.memory_space<smem>>
    %62 = vector.broadcast %61 : f32 to vector<2x8x8xf32>
    %63 = arith.mulf %2, %62 : vector<2x8x8xf32>
    %c0_38 = arith.constant 0 : index
    %c2_39 = arith.constant 2 : index
    %64 = memref.load %arg8[%c0_38, %c2_39] : memref<1x32xf32, #tpu.memory_space<smem>>
    %65 = vector.broadcast %64 : f32 to vector<2x8x8xf32>
    %66 = arith.addf %63, %65 : vector<2x8x8xf32>
    %cst_40 = arith.constant 0.000000e+00 : f32
    %67 = vector.broadcast %cst_40 : f32 to vector<2x8x8xf32>
    %68 = arith.maximumf %66, %67 : vector<2x8x8xf32>
    %c0_41 = arith.constant 0 : index
    %c2_42 = arith.constant 2 : index
    %69 = memref.load %arg9[%c0_41, %c2_42] : memref<4x32xf32, #tpu.memory_space<smem>>
    %70 = vector.broadcast %69 : f32 to vector<2x8x8xf32>
    %71 = arith.mulf %68, %70 : vector<2x8x8xf32>
    %72 = arith.addf %48, %71 : vector<2x8x8xf32>
    %c1_43 = arith.constant 1 : index
    %c2_44 = arith.constant 2 : index
    %73 = memref.load %arg9[%c1_43, %c2_44] : memref<4x32xf32, #tpu.memory_space<smem>>
    %74 = vector.broadcast %73 : f32 to vector<2x8x8xf32>
    %75 = arith.mulf %68, %74 : vector<2x8x8xf32>
    %76 = arith.addf %52, %75 : vector<2x8x8xf32>
    %c2_45 = arith.constant 2 : index
    %c2_46 = arith.constant 2 : index
    %77 = memref.load %arg9[%c2_45, %c2_46] : memref<4x32xf32, #tpu.memory_space<smem>>
    %78 = vector.broadcast %77 : f32 to vector<2x8x8xf32>
    %79 = arith.mulf %68, %78 : vector<2x8x8xf32>
    %80 = arith.addf %56, %79 : vector<2x8x8xf32>
    %c3_47 = arith.constant 3 : index
    %c2_48 = arith.constant 2 : index
    %81 = memref.load %arg9[%c3_47, %c2_48] : memref<4x32xf32, #tpu.memory_space<smem>>
    %82 = vector.broadcast %81 : f32 to vector<2x8x8xf32>
    %83 = arith.mulf %68, %82 : vector<2x8x8xf32>
    %84 = arith.addf %60, %83 : vector<2x8x8xf32>
    %c0_49 = arith.constant 0 : index
    %c3_50 = arith.constant 3 : index
    %85 = memref.load %arg7[%c0_49, %c3_50] : memref<1x32xf32, #tpu.memory_space<smem>>
    %86 = vector.broadcast %85 : f32 to vector<2x8x8xf32>
    %87 = arith.mulf %2, %86 : vector<2x8x8xf32>
    %c0_51 = arith.constant 0 : index
    %c3_52 = arith.constant 3 : index
    %88 = memref.load %arg8[%c0_51, %c3_52] : memref<1x32xf32, #tpu.memory_space<smem>>
    %89 = vector.broadcast %88 : f32 to vector<2x8x8xf32>
    %90 = arith.addf %87, %89 : vector<2x8x8xf32>
    %cst_53 = arith.constant 0.000000e+00 : f32
    %91 = vector.broadcast %cst_53 : f32 to vector<2x8x8xf32>
    %92 = arith.maximumf %90, %91 : vector<2x8x8xf32>
    %c0_54 = arith.constant 0 : index
    %c3_55 = arith.constant 3 : index
    %93 = memref.load %arg9[%c0_54, %c3_55] : memref<4x32xf32, #tpu.memory_space<smem>>
    %94 = vector.broadcast %93 : f32 to vector<2x8x8xf32>
    %95 = arith.mulf %92, %94 : vector<2x8x8xf32>
    %96 = arith.addf %72, %95 : vector<2x8x8xf32>
    %c1_56 = arith.constant 1 : index
    %c3_57 = arith.constant 3 : index
    %97 = memref.load %arg9[%c1_56, %c3_57] : memref<4x32xf32, #tpu.memory_space<smem>>
    %98 = vector.broadcast %97 : f32 to vector<2x8x8xf32>
    %99 = arith.mulf %92, %98 : vector<2x8x8xf32>
    %100 = arith.addf %76, %99 : vector<2x8x8xf32>
    %c2_58 = arith.constant 2 : index
    %c3_59 = arith.constant 3 : index
    %101 = memref.load %arg9[%c2_58, %c3_59] : memref<4x32xf32, #tpu.memory_space<smem>>
    %102 = vector.broadcast %101 : f32 to vector<2x8x8xf32>
    %103 = arith.mulf %92, %102 : vector<2x8x8xf32>
    %104 = arith.addf %80, %103 : vector<2x8x8xf32>
    %c3_60 = arith.constant 3 : index
    %c3_61 = arith.constant 3 : index
    %105 = memref.load %arg9[%c3_60, %c3_61] : memref<4x32xf32, #tpu.memory_space<smem>>
    %106 = vector.broadcast %105 : f32 to vector<2x8x8xf32>
    %107 = arith.mulf %92, %106 : vector<2x8x8xf32>
    %108 = arith.addf %84, %107 : vector<2x8x8xf32>
    %c0_62 = arith.constant 0 : index
    %c4 = arith.constant 4 : index
    %109 = memref.load %arg7[%c0_62, %c4] : memref<1x32xf32, #tpu.memory_space<smem>>
    %110 = vector.broadcast %109 : f32 to vector<2x8x8xf32>
    %111 = arith.mulf %2, %110 : vector<2x8x8xf32>
    %c0_63 = arith.constant 0 : index
    %c4_64 = arith.constant 4 : index
    %112 = memref.load %arg8[%c0_63, %c4_64] : memref<1x32xf32, #tpu.memory_space<smem>>
    %113 = vector.broadcast %112 : f32 to vector<2x8x8xf32>
    %114 = arith.addf %111, %113 : vector<2x8x8xf32>
    %cst_65 = arith.constant 0.000000e+00 : f32
    %115 = vector.broadcast %cst_65 : f32 to vector<2x8x8xf32>
    %116 = arith.maximumf %114, %115 : vector<2x8x8xf32>
    %c0_66 = arith.constant 0 : index
    %c4_67 = arith.constant 4 : index
    %117 = memref.load %arg9[%c0_66, %c4_67] : memref<4x32xf32, #tpu.memory_space<smem>>
    %118 = vector.broadcast %117 : f32 to vector<2x8x8xf32>
    %119 = arith.mulf %116, %118 : vector<2x8x8xf32>
    %120 = arith.addf %96, %119 : vector<2x8x8xf32>
    %c1_68 = arith.constant 1 : index
    %c4_69 = arith.constant 4 : index
    %121 = memref.load %arg9[%c1_68, %c4_69] : memref<4x32xf32, #tpu.memory_space<smem>>
    %122 = vector.broadcast %121 : f32 to vector<2x8x8xf32>
    %123 = arith.mulf %116, %122 : vector<2x8x8xf32>
    %124 = arith.addf %100, %123 : vector<2x8x8xf32>
    %c2_70 = arith.constant 2 : index
    %c4_71 = arith.constant 4 : index
    %125 = memref.load %arg9[%c2_70, %c4_71] : memref<4x32xf32, #tpu.memory_space<smem>>
    %126 = vector.broadcast %125 : f32 to vector<2x8x8xf32>
    %127 = arith.mulf %116, %126 : vector<2x8x8xf32>
    %128 = arith.addf %104, %127 : vector<2x8x8xf32>
    %c3_72 = arith.constant 3 : index
    %c4_73 = arith.constant 4 : index
    %129 = memref.load %arg9[%c3_72, %c4_73] : memref<4x32xf32, #tpu.memory_space<smem>>
    %130 = vector.broadcast %129 : f32 to vector<2x8x8xf32>
    %131 = arith.mulf %116, %130 : vector<2x8x8xf32>
    %132 = arith.addf %108, %131 : vector<2x8x8xf32>
    %c0_74 = arith.constant 0 : index
    %c5 = arith.constant 5 : index
    %133 = memref.load %arg7[%c0_74, %c5] : memref<1x32xf32, #tpu.memory_space<smem>>
    %134 = vector.broadcast %133 : f32 to vector<2x8x8xf32>
    %135 = arith.mulf %2, %134 : vector<2x8x8xf32>
    %c0_75 = arith.constant 0 : index
    %c5_76 = arith.constant 5 : index
    %136 = memref.load %arg8[%c0_75, %c5_76] : memref<1x32xf32, #tpu.memory_space<smem>>
    %137 = vector.broadcast %136 : f32 to vector<2x8x8xf32>
    %138 = arith.addf %135, %137 : vector<2x8x8xf32>
    %cst_77 = arith.constant 0.000000e+00 : f32
    %139 = vector.broadcast %cst_77 : f32 to vector<2x8x8xf32>
    %140 = arith.maximumf %138, %139 : vector<2x8x8xf32>
    %c0_78 = arith.constant 0 : index
    %c5_79 = arith.constant 5 : index
    %141 = memref.load %arg9[%c0_78, %c5_79] : memref<4x32xf32, #tpu.memory_space<smem>>
    %142 = vector.broadcast %141 : f32 to vector<2x8x8xf32>
    %143 = arith.mulf %140, %142 : vector<2x8x8xf32>
    %144 = arith.addf %120, %143 : vector<2x8x8xf32>
    %c1_80 = arith.constant 1 : index
    %c5_81 = arith.constant 5 : index
    %145 = memref.load %arg9[%c1_80, %c5_81] : memref<4x32xf32, #tpu.memory_space<smem>>
    %146 = vector.broadcast %145 : f32 to vector<2x8x8xf32>
    %147 = arith.mulf %140, %146 : vector<2x8x8xf32>
    %148 = arith.addf %124, %147 : vector<2x8x8xf32>
    %c2_82 = arith.constant 2 : index
    %c5_83 = arith.constant 5 : index
    %149 = memref.load %arg9[%c2_82, %c5_83] : memref<4x32xf32, #tpu.memory_space<smem>>
    %150 = vector.broadcast %149 : f32 to vector<2x8x8xf32>
    %151 = arith.mulf %140, %150 : vector<2x8x8xf32>
    %152 = arith.addf %128, %151 : vector<2x8x8xf32>
    %c3_84 = arith.constant 3 : index
    %c5_85 = arith.constant 5 : index
    %153 = memref.load %arg9[%c3_84, %c5_85] : memref<4x32xf32, #tpu.memory_space<smem>>
    %154 = vector.broadcast %153 : f32 to vector<2x8x8xf32>
    %155 = arith.mulf %140, %154 : vector<2x8x8xf32>
    %156 = arith.addf %132, %155 : vector<2x8x8xf32>
    %c0_86 = arith.constant 0 : index
    %c6 = arith.constant 6 : index
    %157 = memref.load %arg7[%c0_86, %c6] : memref<1x32xf32, #tpu.memory_space<smem>>
    %158 = vector.broadcast %157 : f32 to vector<2x8x8xf32>
    %159 = arith.mulf %2, %158 : vector<2x8x8xf32>
    %c0_87 = arith.constant 0 : index
    %c6_88 = arith.constant 6 : index
    %160 = memref.load %arg8[%c0_87, %c6_88] : memref<1x32xf32, #tpu.memory_space<smem>>
    %161 = vector.broadcast %160 : f32 to vector<2x8x8xf32>
    %162 = arith.addf %159, %161 : vector<2x8x8xf32>
    %cst_89 = arith.constant 0.000000e+00 : f32
    %163 = vector.broadcast %cst_89 : f32 to vector<2x8x8xf32>
    %164 = arith.maximumf %162, %163 : vector<2x8x8xf32>
    %c0_90 = arith.constant 0 : index
    %c6_91 = arith.constant 6 : index
    %165 = memref.load %arg9[%c0_90, %c6_91] : memref<4x32xf32, #tpu.memory_space<smem>>
    %166 = vector.broadcast %165 : f32 to vector<2x8x8xf32>
    %167 = arith.mulf %164, %166 : vector<2x8x8xf32>
    %168 = arith.addf %144, %167 : vector<2x8x8xf32>
    %c1_92 = arith.constant 1 : index
    %c6_93 = arith.constant 6 : index
    %169 = memref.load %arg9[%c1_92, %c6_93] : memref<4x32xf32, #tpu.memory_space<smem>>
    %170 = vector.broadcast %169 : f32 to vector<2x8x8xf32>
    %171 = arith.mulf %164, %170 : vector<2x8x8xf32>
    %172 = arith.addf %148, %171 : vector<2x8x8xf32>
    %c2_94 = arith.constant 2 : index
    %c6_95 = arith.constant 6 : index
    %173 = memref.load %arg9[%c2_94, %c6_95] : memref<4x32xf32, #tpu.memory_space<smem>>
    %174 = vector.broadcast %173 : f32 to vector<2x8x8xf32>
    %175 = arith.mulf %164, %174 : vector<2x8x8xf32>
    %176 = arith.addf %152, %175 : vector<2x8x8xf32>
    %c3_96 = arith.constant 3 : index
    %c6_97 = arith.constant 6 : index
    %177 = memref.load %arg9[%c3_96, %c6_97] : memref<4x32xf32, #tpu.memory_space<smem>>
    %178 = vector.broadcast %177 : f32 to vector<2x8x8xf32>
    %179 = arith.mulf %164, %178 : vector<2x8x8xf32>
    %180 = arith.addf %156, %179 : vector<2x8x8xf32>
    %c0_98 = arith.constant 0 : index
    %c7 = arith.constant 7 : index
    %181 = memref.load %arg7[%c0_98, %c7] : memref<1x32xf32, #tpu.memory_space<smem>>
    %182 = vector.broadcast %181 : f32 to vector<2x8x8xf32>
    %183 = arith.mulf %2, %182 : vector<2x8x8xf32>
    %c0_99 = arith.constant 0 : index
    %c7_100 = arith.constant 7 : index
    %184 = memref.load %arg8[%c0_99, %c7_100] : memref<1x32xf32, #tpu.memory_space<smem>>
    %185 = vector.broadcast %184 : f32 to vector<2x8x8xf32>
    %186 = arith.addf %183, %185 : vector<2x8x8xf32>
    %cst_101 = arith.constant 0.000000e+00 : f32
    %187 = vector.broadcast %cst_101 : f32 to vector<2x8x8xf32>
    %188 = arith.maximumf %186, %187 : vector<2x8x8xf32>
    %c0_102 = arith.constant 0 : index
    %c7_103 = arith.constant 7 : index
    %189 = memref.load %arg9[%c0_102, %c7_103] : memref<4x32xf32, #tpu.memory_space<smem>>
    %190 = vector.broadcast %189 : f32 to vector<2x8x8xf32>
    %191 = arith.mulf %188, %190 : vector<2x8x8xf32>
    %192 = arith.addf %168, %191 : vector<2x8x8xf32>
    %c1_104 = arith.constant 1 : index
    %c7_105 = arith.constant 7 : index
    %193 = memref.load %arg9[%c1_104, %c7_105] : memref<4x32xf32, #tpu.memory_space<smem>>
    %194 = vector.broadcast %193 : f32 to vector<2x8x8xf32>
    %195 = arith.mulf %188, %194 : vector<2x8x8xf32>
    %196 = arith.addf %172, %195 : vector<2x8x8xf32>
    %c2_106 = arith.constant 2 : index
    %c7_107 = arith.constant 7 : index
    %197 = memref.load %arg9[%c2_106, %c7_107] : memref<4x32xf32, #tpu.memory_space<smem>>
    %198 = vector.broadcast %197 : f32 to vector<2x8x8xf32>
    %199 = arith.mulf %188, %198 : vector<2x8x8xf32>
    %200 = arith.addf %176, %199 : vector<2x8x8xf32>
    %c3_108 = arith.constant 3 : index
    %c7_109 = arith.constant 7 : index
    %201 = memref.load %arg9[%c3_108, %c7_109] : memref<4x32xf32, #tpu.memory_space<smem>>
    %202 = vector.broadcast %201 : f32 to vector<2x8x8xf32>
    %203 = arith.mulf %188, %202 : vector<2x8x8xf32>
    %204 = arith.addf %180, %203 : vector<2x8x8xf32>
    %c0_110 = arith.constant 0 : index
    %c8 = arith.constant 8 : index
    %205 = memref.load %arg7[%c0_110, %c8] : memref<1x32xf32, #tpu.memory_space<smem>>
    %206 = vector.broadcast %205 : f32 to vector<2x8x8xf32>
    %207 = arith.mulf %2, %206 : vector<2x8x8xf32>
    %c0_111 = arith.constant 0 : index
    %c8_112 = arith.constant 8 : index
    %208 = memref.load %arg8[%c0_111, %c8_112] : memref<1x32xf32, #tpu.memory_space<smem>>
    %209 = vector.broadcast %208 : f32 to vector<2x8x8xf32>
    %210 = arith.addf %207, %209 : vector<2x8x8xf32>
    %cst_113 = arith.constant 0.000000e+00 : f32
    %211 = vector.broadcast %cst_113 : f32 to vector<2x8x8xf32>
    %212 = arith.maximumf %210, %211 : vector<2x8x8xf32>
    %c0_114 = arith.constant 0 : index
    %c8_115 = arith.constant 8 : index
    %213 = memref.load %arg9[%c0_114, %c8_115] : memref<4x32xf32, #tpu.memory_space<smem>>
    %214 = vector.broadcast %213 : f32 to vector<2x8x8xf32>
    %215 = arith.mulf %212, %214 : vector<2x8x8xf32>
    %216 = arith.addf %192, %215 : vector<2x8x8xf32>
    %c1_116 = arith.constant 1 : index
    %c8_117 = arith.constant 8 : index
    %217 = memref.load %arg9[%c1_116, %c8_117] : memref<4x32xf32, #tpu.memory_space<smem>>
    %218 = vector.broadcast %217 : f32 to vector<2x8x8xf32>
    %219 = arith.mulf %212, %218 : vector<2x8x8xf32>
    %220 = arith.addf %196, %219 : vector<2x8x8xf32>
    %c2_118 = arith.constant 2 : index
    %c8_119 = arith.constant 8 : index
    %221 = memref.load %arg9[%c2_118, %c8_119] : memref<4x32xf32, #tpu.memory_space<smem>>
    %222 = vector.broadcast %221 : f32 to vector<2x8x8xf32>
    %223 = arith.mulf %212, %222 : vector<2x8x8xf32>
    %224 = arith.addf %200, %223 : vector<2x8x8xf32>
    %c3_120 = arith.constant 3 : index
    %c8_121 = arith.constant 8 : index
    %225 = memref.load %arg9[%c3_120, %c8_121] : memref<4x32xf32, #tpu.memory_space<smem>>
    %226 = vector.broadcast %225 : f32 to vector<2x8x8xf32>
    %227 = arith.mulf %212, %226 : vector<2x8x8xf32>
    %228 = arith.addf %204, %227 : vector<2x8x8xf32>
    %c0_122 = arith.constant 0 : index
    %c9 = arith.constant 9 : index
    %229 = memref.load %arg7[%c0_122, %c9] : memref<1x32xf32, #tpu.memory_space<smem>>
    %230 = vector.broadcast %229 : f32 to vector<2x8x8xf32>
    %231 = arith.mulf %2, %230 : vector<2x8x8xf32>
    %c0_123 = arith.constant 0 : index
    %c9_124 = arith.constant 9 : index
    %232 = memref.load %arg8[%c0_123, %c9_124] : memref<1x32xf32, #tpu.memory_space<smem>>
    %233 = vector.broadcast %232 : f32 to vector<2x8x8xf32>
    %234 = arith.addf %231, %233 : vector<2x8x8xf32>
    %cst_125 = arith.constant 0.000000e+00 : f32
    %235 = vector.broadcast %cst_125 : f32 to vector<2x8x8xf32>
    %236 = arith.maximumf %234, %235 : vector<2x8x8xf32>
    %c0_126 = arith.constant 0 : index
    %c9_127 = arith.constant 9 : index
    %237 = memref.load %arg9[%c0_126, %c9_127] : memref<4x32xf32, #tpu.memory_space<smem>>
    %238 = vector.broadcast %237 : f32 to vector<2x8x8xf32>
    %239 = arith.mulf %236, %238 : vector<2x8x8xf32>
    %240 = arith.addf %216, %239 : vector<2x8x8xf32>
    %c1_128 = arith.constant 1 : index
    %c9_129 = arith.constant 9 : index
    %241 = memref.load %arg9[%c1_128, %c9_129] : memref<4x32xf32, #tpu.memory_space<smem>>
    %242 = vector.broadcast %241 : f32 to vector<2x8x8xf32>
    %243 = arith.mulf %236, %242 : vector<2x8x8xf32>
    %244 = arith.addf %220, %243 : vector<2x8x8xf32>
    %c2_130 = arith.constant 2 : index
    %c9_131 = arith.constant 9 : index
    %245 = memref.load %arg9[%c2_130, %c9_131] : memref<4x32xf32, #tpu.memory_space<smem>>
    %246 = vector.broadcast %245 : f32 to vector<2x8x8xf32>
    %247 = arith.mulf %236, %246 : vector<2x8x8xf32>
    %248 = arith.addf %224, %247 : vector<2x8x8xf32>
    %c3_132 = arith.constant 3 : index
    %c9_133 = arith.constant 9 : index
    %249 = memref.load %arg9[%c3_132, %c9_133] : memref<4x32xf32, #tpu.memory_space<smem>>
    %250 = vector.broadcast %249 : f32 to vector<2x8x8xf32>
    %251 = arith.mulf %236, %250 : vector<2x8x8xf32>
    %252 = arith.addf %228, %251 : vector<2x8x8xf32>
    %c0_134 = arith.constant 0 : index
    %c10 = arith.constant 10 : index
    %253 = memref.load %arg7[%c0_134, %c10] : memref<1x32xf32, #tpu.memory_space<smem>>
    %254 = vector.broadcast %253 : f32 to vector<2x8x8xf32>
    %255 = arith.mulf %2, %254 : vector<2x8x8xf32>
    %c0_135 = arith.constant 0 : index
    %c10_136 = arith.constant 10 : index
    %256 = memref.load %arg8[%c0_135, %c10_136] : memref<1x32xf32, #tpu.memory_space<smem>>
    %257 = vector.broadcast %256 : f32 to vector<2x8x8xf32>
    %258 = arith.addf %255, %257 : vector<2x8x8xf32>
    %cst_137 = arith.constant 0.000000e+00 : f32
    %259 = vector.broadcast %cst_137 : f32 to vector<2x8x8xf32>
    %260 = arith.maximumf %258, %259 : vector<2x8x8xf32>
    %c0_138 = arith.constant 0 : index
    %c10_139 = arith.constant 10 : index
    %261 = memref.load %arg9[%c0_138, %c10_139] : memref<4x32xf32, #tpu.memory_space<smem>>
    %262 = vector.broadcast %261 : f32 to vector<2x8x8xf32>
    %263 = arith.mulf %260, %262 : vector<2x8x8xf32>
    %264 = arith.addf %240, %263 : vector<2x8x8xf32>
    %c1_140 = arith.constant 1 : index
    %c10_141 = arith.constant 10 : index
    %265 = memref.load %arg9[%c1_140, %c10_141] : memref<4x32xf32, #tpu.memory_space<smem>>
    %266 = vector.broadcast %265 : f32 to vector<2x8x8xf32>
    %267 = arith.mulf %260, %266 : vector<2x8x8xf32>
    %268 = arith.addf %244, %267 : vector<2x8x8xf32>
    %c2_142 = arith.constant 2 : index
    %c10_143 = arith.constant 10 : index
    %269 = memref.load %arg9[%c2_142, %c10_143] : memref<4x32xf32, #tpu.memory_space<smem>>
    %270 = vector.broadcast %269 : f32 to vector<2x8x8xf32>
    %271 = arith.mulf %260, %270 : vector<2x8x8xf32>
    %272 = arith.addf %248, %271 : vector<2x8x8xf32>
    %c3_144 = arith.constant 3 : index
    %c10_145 = arith.constant 10 : index
    %273 = memref.load %arg9[%c3_144, %c10_145] : memref<4x32xf32, #tpu.memory_space<smem>>
    %274 = vector.broadcast %273 : f32 to vector<2x8x8xf32>
    %275 = arith.mulf %260, %274 : vector<2x8x8xf32>
    %276 = arith.addf %252, %275 : vector<2x8x8xf32>
    %c0_146 = arith.constant 0 : index
    %c11 = arith.constant 11 : index
    %277 = memref.load %arg7[%c0_146, %c11] : memref<1x32xf32, #tpu.memory_space<smem>>
    %278 = vector.broadcast %277 : f32 to vector<2x8x8xf32>
    %279 = arith.mulf %2, %278 : vector<2x8x8xf32>
    %c0_147 = arith.constant 0 : index
    %c11_148 = arith.constant 11 : index
    %280 = memref.load %arg8[%c0_147, %c11_148] : memref<1x32xf32, #tpu.memory_space<smem>>
    %281 = vector.broadcast %280 : f32 to vector<2x8x8xf32>
    %282 = arith.addf %279, %281 : vector<2x8x8xf32>
    %cst_149 = arith.constant 0.000000e+00 : f32
    %283 = vector.broadcast %cst_149 : f32 to vector<2x8x8xf32>
    %284 = arith.maximumf %282, %283 : vector<2x8x8xf32>
    %c0_150 = arith.constant 0 : index
    %c11_151 = arith.constant 11 : index
    %285 = memref.load %arg9[%c0_150, %c11_151] : memref<4x32xf32, #tpu.memory_space<smem>>
    %286 = vector.broadcast %285 : f32 to vector<2x8x8xf32>
    %287 = arith.mulf %284, %286 : vector<2x8x8xf32>
    %288 = arith.addf %264, %287 : vector<2x8x8xf32>
    %c1_152 = arith.constant 1 : index
    %c11_153 = arith.constant 11 : index
    %289 = memref.load %arg9[%c1_152, %c11_153] : memref<4x32xf32, #tpu.memory_space<smem>>
    %290 = vector.broadcast %289 : f32 to vector<2x8x8xf32>
    %291 = arith.mulf %284, %290 : vector<2x8x8xf32>
    %292 = arith.addf %268, %291 : vector<2x8x8xf32>
    %c2_154 = arith.constant 2 : index
    %c11_155 = arith.constant 11 : index
    %293 = memref.load %arg9[%c2_154, %c11_155] : memref<4x32xf32, #tpu.memory_space<smem>>
    %294 = vector.broadcast %293 : f32 to vector<2x8x8xf32>
    %295 = arith.mulf %284, %294 : vector<2x8x8xf32>
    %296 = arith.addf %272, %295 : vector<2x8x8xf32>
    %c3_156 = arith.constant 3 : index
    %c11_157 = arith.constant 11 : index
    %297 = memref.load %arg9[%c3_156, %c11_157] : memref<4x32xf32, #tpu.memory_space<smem>>
    %298 = vector.broadcast %297 : f32 to vector<2x8x8xf32>
    %299 = arith.mulf %284, %298 : vector<2x8x8xf32>
    %300 = arith.addf %276, %299 : vector<2x8x8xf32>
    %c0_158 = arith.constant 0 : index
    %c12 = arith.constant 12 : index
    %301 = memref.load %arg7[%c0_158, %c12] : memref<1x32xf32, #tpu.memory_space<smem>>
    %302 = vector.broadcast %301 : f32 to vector<2x8x8xf32>
    %303 = arith.mulf %2, %302 : vector<2x8x8xf32>
    %c0_159 = arith.constant 0 : index
    %c12_160 = arith.constant 12 : index
    %304 = memref.load %arg8[%c0_159, %c12_160] : memref<1x32xf32, #tpu.memory_space<smem>>
    %305 = vector.broadcast %304 : f32 to vector<2x8x8xf32>
    %306 = arith.addf %303, %305 : vector<2x8x8xf32>
    %cst_161 = arith.constant 0.000000e+00 : f32
    %307 = vector.broadcast %cst_161 : f32 to vector<2x8x8xf32>
    %308 = arith.maximumf %306, %307 : vector<2x8x8xf32>
    %c0_162 = arith.constant 0 : index
    %c12_163 = arith.constant 12 : index
    %309 = memref.load %arg9[%c0_162, %c12_163] : memref<4x32xf32, #tpu.memory_space<smem>>
    %310 = vector.broadcast %309 : f32 to vector<2x8x8xf32>
    %311 = arith.mulf %308, %310 : vector<2x8x8xf32>
    %312 = arith.addf %288, %311 : vector<2x8x8xf32>
    %c1_164 = arith.constant 1 : index
    %c12_165 = arith.constant 12 : index
    %313 = memref.load %arg9[%c1_164, %c12_165] : memref<4x32xf32, #tpu.memory_space<smem>>
    %314 = vector.broadcast %313 : f32 to vector<2x8x8xf32>
    %315 = arith.mulf %308, %314 : vector<2x8x8xf32>
    %316 = arith.addf %292, %315 : vector<2x8x8xf32>
    %c2_166 = arith.constant 2 : index
    %c12_167 = arith.constant 12 : index
    %317 = memref.load %arg9[%c2_166, %c12_167] : memref<4x32xf32, #tpu.memory_space<smem>>
    %318 = vector.broadcast %317 : f32 to vector<2x8x8xf32>
    %319 = arith.mulf %308, %318 : vector<2x8x8xf32>
    %320 = arith.addf %296, %319 : vector<2x8x8xf32>
    %c3_168 = arith.constant 3 : index
    %c12_169 = arith.constant 12 : index
    %321 = memref.load %arg9[%c3_168, %c12_169] : memref<4x32xf32, #tpu.memory_space<smem>>
    %322 = vector.broadcast %321 : f32 to vector<2x8x8xf32>
    %323 = arith.mulf %308, %322 : vector<2x8x8xf32>
    %324 = arith.addf %300, %323 : vector<2x8x8xf32>
    %c0_170 = arith.constant 0 : index
    %c13 = arith.constant 13 : index
    %325 = memref.load %arg7[%c0_170, %c13] : memref<1x32xf32, #tpu.memory_space<smem>>
    %326 = vector.broadcast %325 : f32 to vector<2x8x8xf32>
    %327 = arith.mulf %2, %326 : vector<2x8x8xf32>
    %c0_171 = arith.constant 0 : index
    %c13_172 = arith.constant 13 : index
    %328 = memref.load %arg8[%c0_171, %c13_172] : memref<1x32xf32, #tpu.memory_space<smem>>
    %329 = vector.broadcast %328 : f32 to vector<2x8x8xf32>
    %330 = arith.addf %327, %329 : vector<2x8x8xf32>
    %cst_173 = arith.constant 0.000000e+00 : f32
    %331 = vector.broadcast %cst_173 : f32 to vector<2x8x8xf32>
    %332 = arith.maximumf %330, %331 : vector<2x8x8xf32>
    %c0_174 = arith.constant 0 : index
    %c13_175 = arith.constant 13 : index
    %333 = memref.load %arg9[%c0_174, %c13_175] : memref<4x32xf32, #tpu.memory_space<smem>>
    %334 = vector.broadcast %333 : f32 to vector<2x8x8xf32>
    %335 = arith.mulf %332, %334 : vector<2x8x8xf32>
    %336 = arith.addf %312, %335 : vector<2x8x8xf32>
    %c1_176 = arith.constant 1 : index
    %c13_177 = arith.constant 13 : index
    %337 = memref.load %arg9[%c1_176, %c13_177] : memref<4x32xf32, #tpu.memory_space<smem>>
    %338 = vector.broadcast %337 : f32 to vector<2x8x8xf32>
    %339 = arith.mulf %332, %338 : vector<2x8x8xf32>
    %340 = arith.addf %316, %339 : vector<2x8x8xf32>
    %c2_178 = arith.constant 2 : index
    %c13_179 = arith.constant 13 : index
    %341 = memref.load %arg9[%c2_178, %c13_179] : memref<4x32xf32, #tpu.memory_space<smem>>
    %342 = vector.broadcast %341 : f32 to vector<2x8x8xf32>
    %343 = arith.mulf %332, %342 : vector<2x8x8xf32>
    %344 = arith.addf %320, %343 : vector<2x8x8xf32>
    %c3_180 = arith.constant 3 : index
    %c13_181 = arith.constant 13 : index
    %345 = memref.load %arg9[%c3_180, %c13_181] : memref<4x32xf32, #tpu.memory_space<smem>>
    %346 = vector.broadcast %345 : f32 to vector<2x8x8xf32>
    %347 = arith.mulf %332, %346 : vector<2x8x8xf32>
    %348 = arith.addf %324, %347 : vector<2x8x8xf32>
    %c0_182 = arith.constant 0 : index
    %c14 = arith.constant 14 : index
    %349 = memref.load %arg7[%c0_182, %c14] : memref<1x32xf32, #tpu.memory_space<smem>>
    %350 = vector.broadcast %349 : f32 to vector<2x8x8xf32>
    %351 = arith.mulf %2, %350 : vector<2x8x8xf32>
    %c0_183 = arith.constant 0 : index
    %c14_184 = arith.constant 14 : index
    %352 = memref.load %arg8[%c0_183, %c14_184] : memref<1x32xf32, #tpu.memory_space<smem>>
    %353 = vector.broadcast %352 : f32 to vector<2x8x8xf32>
    %354 = arith.addf %351, %353 : vector<2x8x8xf32>
    %cst_185 = arith.constant 0.000000e+00 : f32
    %355 = vector.broadcast %cst_185 : f32 to vector<2x8x8xf32>
    %356 = arith.maximumf %354, %355 : vector<2x8x8xf32>
    %c0_186 = arith.constant 0 : index
    %c14_187 = arith.constant 14 : index
    %357 = memref.load %arg9[%c0_186, %c14_187] : memref<4x32xf32, #tpu.memory_space<smem>>
    %358 = vector.broadcast %357 : f32 to vector<2x8x8xf32>
    %359 = arith.mulf %356, %358 : vector<2x8x8xf32>
    %360 = arith.addf %336, %359 : vector<2x8x8xf32>
    %c1_188 = arith.constant 1 : index
    %c14_189 = arith.constant 14 : index
    %361 = memref.load %arg9[%c1_188, %c14_189] : memref<4x32xf32, #tpu.memory_space<smem>>
    %362 = vector.broadcast %361 : f32 to vector<2x8x8xf32>
    %363 = arith.mulf %356, %362 : vector<2x8x8xf32>
    %364 = arith.addf %340, %363 : vector<2x8x8xf32>
    %c2_190 = arith.constant 2 : index
    %c14_191 = arith.constant 14 : index
    %365 = memref.load %arg9[%c2_190, %c14_191] : memref<4x32xf32, #tpu.memory_space<smem>>
    %366 = vector.broadcast %365 : f32 to vector<2x8x8xf32>
    %367 = arith.mulf %356, %366 : vector<2x8x8xf32>
    %368 = arith.addf %344, %367 : vector<2x8x8xf32>
    %c3_192 = arith.constant 3 : index
    %c14_193 = arith.constant 14 : index
    %369 = memref.load %arg9[%c3_192, %c14_193] : memref<4x32xf32, #tpu.memory_space<smem>>
    %370 = vector.broadcast %369 : f32 to vector<2x8x8xf32>
    %371 = arith.mulf %356, %370 : vector<2x8x8xf32>
    %372 = arith.addf %348, %371 : vector<2x8x8xf32>
    %c0_194 = arith.constant 0 : index
    %c15 = arith.constant 15 : index
    %373 = memref.load %arg7[%c0_194, %c15] : memref<1x32xf32, #tpu.memory_space<smem>>
    %374 = vector.broadcast %373 : f32 to vector<2x8x8xf32>
    %375 = arith.mulf %2, %374 : vector<2x8x8xf32>
    %c0_195 = arith.constant 0 : index
    %c15_196 = arith.constant 15 : index
    %376 = memref.load %arg8[%c0_195, %c15_196] : memref<1x32xf32, #tpu.memory_space<smem>>
    %377 = vector.broadcast %376 : f32 to vector<2x8x8xf32>
    %378 = arith.addf %375, %377 : vector<2x8x8xf32>
    %cst_197 = arith.constant 0.000000e+00 : f32
    %379 = vector.broadcast %cst_197 : f32 to vector<2x8x8xf32>
    %380 = arith.maximumf %378, %379 : vector<2x8x8xf32>
    %c0_198 = arith.constant 0 : index
    %c15_199 = arith.constant 15 : index
    %381 = memref.load %arg9[%c0_198, %c15_199] : memref<4x32xf32, #tpu.memory_space<smem>>
    %382 = vector.broadcast %381 : f32 to vector<2x8x8xf32>
    %383 = arith.mulf %380, %382 : vector<2x8x8xf32>
    %384 = arith.addf %360, %383 : vector<2x8x8xf32>
    %c1_200 = arith.constant 1 : index
    %c15_201 = arith.constant 15 : index
    %385 = memref.load %arg9[%c1_200, %c15_201] : memref<4x32xf32, #tpu.memory_space<smem>>
    %386 = vector.broadcast %385 : f32 to vector<2x8x8xf32>
    %387 = arith.mulf %380, %386 : vector<2x8x8xf32>
    %388 = arith.addf %364, %387 : vector<2x8x8xf32>
    %c2_202 = arith.constant 2 : index
    %c15_203 = arith.constant 15 : index
    %389 = memref.load %arg9[%c2_202, %c15_203] : memref<4x32xf32, #tpu.memory_space<smem>>
    %390 = vector.broadcast %389 : f32 to vector<2x8x8xf32>
    %391 = arith.mulf %380, %390 : vector<2x8x8xf32>
    %392 = arith.addf %368, %391 : vector<2x8x8xf32>
    %c3_204 = arith.constant 3 : index
    %c15_205 = arith.constant 15 : index
    %393 = memref.load %arg9[%c3_204, %c15_205] : memref<4x32xf32, #tpu.memory_space<smem>>
    %394 = vector.broadcast %393 : f32 to vector<2x8x8xf32>
    %395 = arith.mulf %380, %394 : vector<2x8x8xf32>
    %396 = arith.addf %372, %395 : vector<2x8x8xf32>
    %c0_206 = arith.constant 0 : index
    %c16 = arith.constant 16 : index
    %397 = memref.load %arg7[%c0_206, %c16] : memref<1x32xf32, #tpu.memory_space<smem>>
    %398 = vector.broadcast %397 : f32 to vector<2x8x8xf32>
    %399 = arith.mulf %2, %398 : vector<2x8x8xf32>
    %c0_207 = arith.constant 0 : index
    %c16_208 = arith.constant 16 : index
    %400 = memref.load %arg8[%c0_207, %c16_208] : memref<1x32xf32, #tpu.memory_space<smem>>
    %401 = vector.broadcast %400 : f32 to vector<2x8x8xf32>
    %402 = arith.addf %399, %401 : vector<2x8x8xf32>
    %cst_209 = arith.constant 0.000000e+00 : f32
    %403 = vector.broadcast %cst_209 : f32 to vector<2x8x8xf32>
    %404 = arith.maximumf %402, %403 : vector<2x8x8xf32>
    %c0_210 = arith.constant 0 : index
    %c16_211 = arith.constant 16 : index
    %405 = memref.load %arg9[%c0_210, %c16_211] : memref<4x32xf32, #tpu.memory_space<smem>>
    %406 = vector.broadcast %405 : f32 to vector<2x8x8xf32>
    %407 = arith.mulf %404, %406 : vector<2x8x8xf32>
    %408 = arith.addf %384, %407 : vector<2x8x8xf32>
    %c1_212 = arith.constant 1 : index
    %c16_213 = arith.constant 16 : index
    %409 = memref.load %arg9[%c1_212, %c16_213] : memref<4x32xf32, #tpu.memory_space<smem>>
    %410 = vector.broadcast %409 : f32 to vector<2x8x8xf32>
    %411 = arith.mulf %404, %410 : vector<2x8x8xf32>
    %412 = arith.addf %388, %411 : vector<2x8x8xf32>
    %c2_214 = arith.constant 2 : index
    %c16_215 = arith.constant 16 : index
    %413 = memref.load %arg9[%c2_214, %c16_215] : memref<4x32xf32, #tpu.memory_space<smem>>
    %414 = vector.broadcast %413 : f32 to vector<2x8x8xf32>
    %415 = arith.mulf %404, %414 : vector<2x8x8xf32>
    %416 = arith.addf %392, %415 : vector<2x8x8xf32>
    %c3_216 = arith.constant 3 : index
    %c16_217 = arith.constant 16 : index
    %417 = memref.load %arg9[%c3_216, %c16_217] : memref<4x32xf32, #tpu.memory_space<smem>>
    %418 = vector.broadcast %417 : f32 to vector<2x8x8xf32>
    %419 = arith.mulf %404, %418 : vector<2x8x8xf32>
    %420 = arith.addf %396, %419 : vector<2x8x8xf32>
    %c0_218 = arith.constant 0 : index
    %c17 = arith.constant 17 : index
    %421 = memref.load %arg7[%c0_218, %c17] : memref<1x32xf32, #tpu.memory_space<smem>>
    %422 = vector.broadcast %421 : f32 to vector<2x8x8xf32>
    %423 = arith.mulf %2, %422 : vector<2x8x8xf32>
    %c0_219 = arith.constant 0 : index
    %c17_220 = arith.constant 17 : index
    %424 = memref.load %arg8[%c0_219, %c17_220] : memref<1x32xf32, #tpu.memory_space<smem>>
    %425 = vector.broadcast %424 : f32 to vector<2x8x8xf32>
    %426 = arith.addf %423, %425 : vector<2x8x8xf32>
    %cst_221 = arith.constant 0.000000e+00 : f32
    %427 = vector.broadcast %cst_221 : f32 to vector<2x8x8xf32>
    %428 = arith.maximumf %426, %427 : vector<2x8x8xf32>
    %c0_222 = arith.constant 0 : index
    %c17_223 = arith.constant 17 : index
    %429 = memref.load %arg9[%c0_222, %c17_223] : memref<4x32xf32, #tpu.memory_space<smem>>
    %430 = vector.broadcast %429 : f32 to vector<2x8x8xf32>
    %431 = arith.mulf %428, %430 : vector<2x8x8xf32>
    %432 = arith.addf %408, %431 : vector<2x8x8xf32>
    %c1_224 = arith.constant 1 : index
    %c17_225 = arith.constant 17 : index
    %433 = memref.load %arg9[%c1_224, %c17_225] : memref<4x32xf32, #tpu.memory_space<smem>>
    %434 = vector.broadcast %433 : f32 to vector<2x8x8xf32>
    %435 = arith.mulf %428, %434 : vector<2x8x8xf32>
    %436 = arith.addf %412, %435 : vector<2x8x8xf32>
    %c2_226 = arith.constant 2 : index
    %c17_227 = arith.constant 17 : index
    %437 = memref.load %arg9[%c2_226, %c17_227] : memref<4x32xf32, #tpu.memory_space<smem>>
    %438 = vector.broadcast %437 : f32 to vector<2x8x8xf32>
    %439 = arith.mulf %428, %438 : vector<2x8x8xf32>
    %440 = arith.addf %416, %439 : vector<2x8x8xf32>
    %c3_228 = arith.constant 3 : index
    %c17_229 = arith.constant 17 : index
    %441 = memref.load %arg9[%c3_228, %c17_229] : memref<4x32xf32, #tpu.memory_space<smem>>
    %442 = vector.broadcast %441 : f32 to vector<2x8x8xf32>
    %443 = arith.mulf %428, %442 : vector<2x8x8xf32>
    %444 = arith.addf %420, %443 : vector<2x8x8xf32>
    %c0_230 = arith.constant 0 : index
    %c18 = arith.constant 18 : index
    %445 = memref.load %arg7[%c0_230, %c18] : memref<1x32xf32, #tpu.memory_space<smem>>
    %446 = vector.broadcast %445 : f32 to vector<2x8x8xf32>
    %447 = arith.mulf %2, %446 : vector<2x8x8xf32>
    %c0_231 = arith.constant 0 : index
    %c18_232 = arith.constant 18 : index
    %448 = memref.load %arg8[%c0_231, %c18_232] : memref<1x32xf32, #tpu.memory_space<smem>>
    %449 = vector.broadcast %448 : f32 to vector<2x8x8xf32>
    %450 = arith.addf %447, %449 : vector<2x8x8xf32>
    %cst_233 = arith.constant 0.000000e+00 : f32
    %451 = vector.broadcast %cst_233 : f32 to vector<2x8x8xf32>
    %452 = arith.maximumf %450, %451 : vector<2x8x8xf32>
    %c0_234 = arith.constant 0 : index
    %c18_235 = arith.constant 18 : index
    %453 = memref.load %arg9[%c0_234, %c18_235] : memref<4x32xf32, #tpu.memory_space<smem>>
    %454 = vector.broadcast %453 : f32 to vector<2x8x8xf32>
    %455 = arith.mulf %452, %454 : vector<2x8x8xf32>
    %456 = arith.addf %432, %455 : vector<2x8x8xf32>
    %c1_236 = arith.constant 1 : index
    %c18_237 = arith.constant 18 : index
    %457 = memref.load %arg9[%c1_236, %c18_237] : memref<4x32xf32, #tpu.memory_space<smem>>
    %458 = vector.broadcast %457 : f32 to vector<2x8x8xf32>
    %459 = arith.mulf %452, %458 : vector<2x8x8xf32>
    %460 = arith.addf %436, %459 : vector<2x8x8xf32>
    %c2_238 = arith.constant 2 : index
    %c18_239 = arith.constant 18 : index
    %461 = memref.load %arg9[%c2_238, %c18_239] : memref<4x32xf32, #tpu.memory_space<smem>>
    %462 = vector.broadcast %461 : f32 to vector<2x8x8xf32>
    %463 = arith.mulf %452, %462 : vector<2x8x8xf32>
    %464 = arith.addf %440, %463 : vector<2x8x8xf32>
    %c3_240 = arith.constant 3 : index
    %c18_241 = arith.constant 18 : index
    %465 = memref.load %arg9[%c3_240, %c18_241] : memref<4x32xf32, #tpu.memory_space<smem>>
    %466 = vector.broadcast %465 : f32 to vector<2x8x8xf32>
    %467 = arith.mulf %452, %466 : vector<2x8x8xf32>
    %468 = arith.addf %444, %467 : vector<2x8x8xf32>
    %c0_242 = arith.constant 0 : index
    %c19 = arith.constant 19 : index
    %469 = memref.load %arg7[%c0_242, %c19] : memref<1x32xf32, #tpu.memory_space<smem>>
    %470 = vector.broadcast %469 : f32 to vector<2x8x8xf32>
    %471 = arith.mulf %2, %470 : vector<2x8x8xf32>
    %c0_243 = arith.constant 0 : index
    %c19_244 = arith.constant 19 : index
    %472 = memref.load %arg8[%c0_243, %c19_244] : memref<1x32xf32, #tpu.memory_space<smem>>
    %473 = vector.broadcast %472 : f32 to vector<2x8x8xf32>
    %474 = arith.addf %471, %473 : vector<2x8x8xf32>
    %cst_245 = arith.constant 0.000000e+00 : f32
    %475 = vector.broadcast %cst_245 : f32 to vector<2x8x8xf32>
    %476 = arith.maximumf %474, %475 : vector<2x8x8xf32>
    %c0_246 = arith.constant 0 : index
    %c19_247 = arith.constant 19 : index
    %477 = memref.load %arg9[%c0_246, %c19_247] : memref<4x32xf32, #tpu.memory_space<smem>>
    %478 = vector.broadcast %477 : f32 to vector<2x8x8xf32>
    %479 = arith.mulf %476, %478 : vector<2x8x8xf32>
    %480 = arith.addf %456, %479 : vector<2x8x8xf32>
    %c1_248 = arith.constant 1 : index
    %c19_249 = arith.constant 19 : index
    %481 = memref.load %arg9[%c1_248, %c19_249] : memref<4x32xf32, #tpu.memory_space<smem>>
    %482 = vector.broadcast %481 : f32 to vector<2x8x8xf32>
    %483 = arith.mulf %476, %482 : vector<2x8x8xf32>
    %484 = arith.addf %460, %483 : vector<2x8x8xf32>
    %c2_250 = arith.constant 2 : index
    %c19_251 = arith.constant 19 : index
    %485 = memref.load %arg9[%c2_250, %c19_251] : memref<4x32xf32, #tpu.memory_space<smem>>
    %486 = vector.broadcast %485 : f32 to vector<2x8x8xf32>
    %487 = arith.mulf %476, %486 : vector<2x8x8xf32>
    %488 = arith.addf %464, %487 : vector<2x8x8xf32>
    %c3_252 = arith.constant 3 : index
    %c19_253 = arith.constant 19 : index
    %489 = memref.load %arg9[%c3_252, %c19_253] : memref<4x32xf32, #tpu.memory_space<smem>>
    %490 = vector.broadcast %489 : f32 to vector<2x8x8xf32>
    %491 = arith.mulf %476, %490 : vector<2x8x8xf32>
    %492 = arith.addf %468, %491 : vector<2x8x8xf32>
    %c0_254 = arith.constant 0 : index
    %c20 = arith.constant 20 : index
    %493 = memref.load %arg7[%c0_254, %c20] : memref<1x32xf32, #tpu.memory_space<smem>>
    %494 = vector.broadcast %493 : f32 to vector<2x8x8xf32>
    %495 = arith.mulf %2, %494 : vector<2x8x8xf32>
    %c0_255 = arith.constant 0 : index
    %c20_256 = arith.constant 20 : index
    %496 = memref.load %arg8[%c0_255, %c20_256] : memref<1x32xf32, #tpu.memory_space<smem>>
    %497 = vector.broadcast %496 : f32 to vector<2x8x8xf32>
    %498 = arith.addf %495, %497 : vector<2x8x8xf32>
    %cst_257 = arith.constant 0.000000e+00 : f32
    %499 = vector.broadcast %cst_257 : f32 to vector<2x8x8xf32>
    %500 = arith.maximumf %498, %499 : vector<2x8x8xf32>
    %c0_258 = arith.constant 0 : index
    %c20_259 = arith.constant 20 : index
    %501 = memref.load %arg9[%c0_258, %c20_259] : memref<4x32xf32, #tpu.memory_space<smem>>
    %502 = vector.broadcast %501 : f32 to vector<2x8x8xf32>
    %503 = arith.mulf %500, %502 : vector<2x8x8xf32>
    %504 = arith.addf %480, %503 : vector<2x8x8xf32>
    %c1_260 = arith.constant 1 : index
    %c20_261 = arith.constant 20 : index
    %505 = memref.load %arg9[%c1_260, %c20_261] : memref<4x32xf32, #tpu.memory_space<smem>>
    %506 = vector.broadcast %505 : f32 to vector<2x8x8xf32>
    %507 = arith.mulf %500, %506 : vector<2x8x8xf32>
    %508 = arith.addf %484, %507 : vector<2x8x8xf32>
    %c2_262 = arith.constant 2 : index
    %c20_263 = arith.constant 20 : index
    %509 = memref.load %arg9[%c2_262, %c20_263] : memref<4x32xf32, #tpu.memory_space<smem>>
    %510 = vector.broadcast %509 : f32 to vector<2x8x8xf32>
    %511 = arith.mulf %500, %510 : vector<2x8x8xf32>
    %512 = arith.addf %488, %511 : vector<2x8x8xf32>
    %c3_264 = arith.constant 3 : index
    %c20_265 = arith.constant 20 : index
    %513 = memref.load %arg9[%c3_264, %c20_265] : memref<4x32xf32, #tpu.memory_space<smem>>
    %514 = vector.broadcast %513 : f32 to vector<2x8x8xf32>
    %515 = arith.mulf %500, %514 : vector<2x8x8xf32>
    %516 = arith.addf %492, %515 : vector<2x8x8xf32>
    %c0_266 = arith.constant 0 : index
    %c21 = arith.constant 21 : index
    %517 = memref.load %arg7[%c0_266, %c21] : memref<1x32xf32, #tpu.memory_space<smem>>
    %518 = vector.broadcast %517 : f32 to vector<2x8x8xf32>
    %519 = arith.mulf %2, %518 : vector<2x8x8xf32>
    %c0_267 = arith.constant 0 : index
    %c21_268 = arith.constant 21 : index
    %520 = memref.load %arg8[%c0_267, %c21_268] : memref<1x32xf32, #tpu.memory_space<smem>>
    %521 = vector.broadcast %520 : f32 to vector<2x8x8xf32>
    %522 = arith.addf %519, %521 : vector<2x8x8xf32>
    %cst_269 = arith.constant 0.000000e+00 : f32
    %523 = vector.broadcast %cst_269 : f32 to vector<2x8x8xf32>
    %524 = arith.maximumf %522, %523 : vector<2x8x8xf32>
    %c0_270 = arith.constant 0 : index
    %c21_271 = arith.constant 21 : index
    %525 = memref.load %arg9[%c0_270, %c21_271] : memref<4x32xf32, #tpu.memory_space<smem>>
    %526 = vector.broadcast %525 : f32 to vector<2x8x8xf32>
    %527 = arith.mulf %524, %526 : vector<2x8x8xf32>
    %528 = arith.addf %504, %527 : vector<2x8x8xf32>
    %c1_272 = arith.constant 1 : index
    %c21_273 = arith.constant 21 : index
    %529 = memref.load %arg9[%c1_272, %c21_273] : memref<4x32xf32, #tpu.memory_space<smem>>
    %530 = vector.broadcast %529 : f32 to vector<2x8x8xf32>
    %531 = arith.mulf %524, %530 : vector<2x8x8xf32>
    %532 = arith.addf %508, %531 : vector<2x8x8xf32>
    %c2_274 = arith.constant 2 : index
    %c21_275 = arith.constant 21 : index
    %533 = memref.load %arg9[%c2_274, %c21_275] : memref<4x32xf32, #tpu.memory_space<smem>>
    %534 = vector.broadcast %533 : f32 to vector<2x8x8xf32>
    %535 = arith.mulf %524, %534 : vector<2x8x8xf32>
    %536 = arith.addf %512, %535 : vector<2x8x8xf32>
    %c3_276 = arith.constant 3 : index
    %c21_277 = arith.constant 21 : index
    %537 = memref.load %arg9[%c3_276, %c21_277] : memref<4x32xf32, #tpu.memory_space<smem>>
    %538 = vector.broadcast %537 : f32 to vector<2x8x8xf32>
    %539 = arith.mulf %524, %538 : vector<2x8x8xf32>
    %540 = arith.addf %516, %539 : vector<2x8x8xf32>
    %c0_278 = arith.constant 0 : index
    %c22 = arith.constant 22 : index
    %541 = memref.load %arg7[%c0_278, %c22] : memref<1x32xf32, #tpu.memory_space<smem>>
    %542 = vector.broadcast %541 : f32 to vector<2x8x8xf32>
    %543 = arith.mulf %2, %542 : vector<2x8x8xf32>
    %c0_279 = arith.constant 0 : index
    %c22_280 = arith.constant 22 : index
    %544 = memref.load %arg8[%c0_279, %c22_280] : memref<1x32xf32, #tpu.memory_space<smem>>
    %545 = vector.broadcast %544 : f32 to vector<2x8x8xf32>
    %546 = arith.addf %543, %545 : vector<2x8x8xf32>
    %cst_281 = arith.constant 0.000000e+00 : f32
    %547 = vector.broadcast %cst_281 : f32 to vector<2x8x8xf32>
    %548 = arith.maximumf %546, %547 : vector<2x8x8xf32>
    %c0_282 = arith.constant 0 : index
    %c22_283 = arith.constant 22 : index
    %549 = memref.load %arg9[%c0_282, %c22_283] : memref<4x32xf32, #tpu.memory_space<smem>>
    %550 = vector.broadcast %549 : f32 to vector<2x8x8xf32>
    %551 = arith.mulf %548, %550 : vector<2x8x8xf32>
    %552 = arith.addf %528, %551 : vector<2x8x8xf32>
    %c1_284 = arith.constant 1 : index
    %c22_285 = arith.constant 22 : index
    %553 = memref.load %arg9[%c1_284, %c22_285] : memref<4x32xf32, #tpu.memory_space<smem>>
    %554 = vector.broadcast %553 : f32 to vector<2x8x8xf32>
    %555 = arith.mulf %548, %554 : vector<2x8x8xf32>
    %556 = arith.addf %532, %555 : vector<2x8x8xf32>
    %c2_286 = arith.constant 2 : index
    %c22_287 = arith.constant 22 : index
    %557 = memref.load %arg9[%c2_286, %c22_287] : memref<4x32xf32, #tpu.memory_space<smem>>
    %558 = vector.broadcast %557 : f32 to vector<2x8x8xf32>
    %559 = arith.mulf %548, %558 : vector<2x8x8xf32>
    %560 = arith.addf %536, %559 : vector<2x8x8xf32>
    %c3_288 = arith.constant 3 : index
    %c22_289 = arith.constant 22 : index
    %561 = memref.load %arg9[%c3_288, %c22_289] : memref<4x32xf32, #tpu.memory_space<smem>>
    %562 = vector.broadcast %561 : f32 to vector<2x8x8xf32>
    %563 = arith.mulf %548, %562 : vector<2x8x8xf32>
    %564 = arith.addf %540, %563 : vector<2x8x8xf32>
    %c0_290 = arith.constant 0 : index
    %c23 = arith.constant 23 : index
    %565 = memref.load %arg7[%c0_290, %c23] : memref<1x32xf32, #tpu.memory_space<smem>>
    %566 = vector.broadcast %565 : f32 to vector<2x8x8xf32>
    %567 = arith.mulf %2, %566 : vector<2x8x8xf32>
    %c0_291 = arith.constant 0 : index
    %c23_292 = arith.constant 23 : index
    %568 = memref.load %arg8[%c0_291, %c23_292] : memref<1x32xf32, #tpu.memory_space<smem>>
    %569 = vector.broadcast %568 : f32 to vector<2x8x8xf32>
    %570 = arith.addf %567, %569 : vector<2x8x8xf32>
    %cst_293 = arith.constant 0.000000e+00 : f32
    %571 = vector.broadcast %cst_293 : f32 to vector<2x8x8xf32>
    %572 = arith.maximumf %570, %571 : vector<2x8x8xf32>
    %c0_294 = arith.constant 0 : index
    %c23_295 = arith.constant 23 : index
    %573 = memref.load %arg9[%c0_294, %c23_295] : memref<4x32xf32, #tpu.memory_space<smem>>
    %574 = vector.broadcast %573 : f32 to vector<2x8x8xf32>
    %575 = arith.mulf %572, %574 : vector<2x8x8xf32>
    %576 = arith.addf %552, %575 : vector<2x8x8xf32>
    %c1_296 = arith.constant 1 : index
    %c23_297 = arith.constant 23 : index
    %577 = memref.load %arg9[%c1_296, %c23_297] : memref<4x32xf32, #tpu.memory_space<smem>>
    %578 = vector.broadcast %577 : f32 to vector<2x8x8xf32>
    %579 = arith.mulf %572, %578 : vector<2x8x8xf32>
    %580 = arith.addf %556, %579 : vector<2x8x8xf32>
    %c2_298 = arith.constant 2 : index
    %c23_299 = arith.constant 23 : index
    %581 = memref.load %arg9[%c2_298, %c23_299] : memref<4x32xf32, #tpu.memory_space<smem>>
    %582 = vector.broadcast %581 : f32 to vector<2x8x8xf32>
    %583 = arith.mulf %572, %582 : vector<2x8x8xf32>
    %584 = arith.addf %560, %583 : vector<2x8x8xf32>
    %c3_300 = arith.constant 3 : index
    %c23_301 = arith.constant 23 : index
    %585 = memref.load %arg9[%c3_300, %c23_301] : memref<4x32xf32, #tpu.memory_space<smem>>
    %586 = vector.broadcast %585 : f32 to vector<2x8x8xf32>
    %587 = arith.mulf %572, %586 : vector<2x8x8xf32>
    %588 = arith.addf %564, %587 : vector<2x8x8xf32>
    %c0_302 = arith.constant 0 : index
    %c24 = arith.constant 24 : index
    %589 = memref.load %arg7[%c0_302, %c24] : memref<1x32xf32, #tpu.memory_space<smem>>
    %590 = vector.broadcast %589 : f32 to vector<2x8x8xf32>
    %591 = arith.mulf %2, %590 : vector<2x8x8xf32>
    %c0_303 = arith.constant 0 : index
    %c24_304 = arith.constant 24 : index
    %592 = memref.load %arg8[%c0_303, %c24_304] : memref<1x32xf32, #tpu.memory_space<smem>>
    %593 = vector.broadcast %592 : f32 to vector<2x8x8xf32>
    %594 = arith.addf %591, %593 : vector<2x8x8xf32>
    %cst_305 = arith.constant 0.000000e+00 : f32
    %595 = vector.broadcast %cst_305 : f32 to vector<2x8x8xf32>
    %596 = arith.maximumf %594, %595 : vector<2x8x8xf32>
    %c0_306 = arith.constant 0 : index
    %c24_307 = arith.constant 24 : index
    %597 = memref.load %arg9[%c0_306, %c24_307] : memref<4x32xf32, #tpu.memory_space<smem>>
    %598 = vector.broadcast %597 : f32 to vector<2x8x8xf32>
    %599 = arith.mulf %596, %598 : vector<2x8x8xf32>
    %600 = arith.addf %576, %599 : vector<2x8x8xf32>
    %c1_308 = arith.constant 1 : index
    %c24_309 = arith.constant 24 : index
    %601 = memref.load %arg9[%c1_308, %c24_309] : memref<4x32xf32, #tpu.memory_space<smem>>
    %602 = vector.broadcast %601 : f32 to vector<2x8x8xf32>
    %603 = arith.mulf %596, %602 : vector<2x8x8xf32>
    %604 = arith.addf %580, %603 : vector<2x8x8xf32>
    %c2_310 = arith.constant 2 : index
    %c24_311 = arith.constant 24 : index
    %605 = memref.load %arg9[%c2_310, %c24_311] : memref<4x32xf32, #tpu.memory_space<smem>>
    %606 = vector.broadcast %605 : f32 to vector<2x8x8xf32>
    %607 = arith.mulf %596, %606 : vector<2x8x8xf32>
    %608 = arith.addf %584, %607 : vector<2x8x8xf32>
    %c3_312 = arith.constant 3 : index
    %c24_313 = arith.constant 24 : index
    %609 = memref.load %arg9[%c3_312, %c24_313] : memref<4x32xf32, #tpu.memory_space<smem>>
    %610 = vector.broadcast %609 : f32 to vector<2x8x8xf32>
    %611 = arith.mulf %596, %610 : vector<2x8x8xf32>
    %612 = arith.addf %588, %611 : vector<2x8x8xf32>
    %c0_314 = arith.constant 0 : index
    %c25 = arith.constant 25 : index
    %613 = memref.load %arg7[%c0_314, %c25] : memref<1x32xf32, #tpu.memory_space<smem>>
    %614 = vector.broadcast %613 : f32 to vector<2x8x8xf32>
    %615 = arith.mulf %2, %614 : vector<2x8x8xf32>
    %c0_315 = arith.constant 0 : index
    %c25_316 = arith.constant 25 : index
    %616 = memref.load %arg8[%c0_315, %c25_316] : memref<1x32xf32, #tpu.memory_space<smem>>
    %617 = vector.broadcast %616 : f32 to vector<2x8x8xf32>
    %618 = arith.addf %615, %617 : vector<2x8x8xf32>
    %cst_317 = arith.constant 0.000000e+00 : f32
    %619 = vector.broadcast %cst_317 : f32 to vector<2x8x8xf32>
    %620 = arith.maximumf %618, %619 : vector<2x8x8xf32>
    %c0_318 = arith.constant 0 : index
    %c25_319 = arith.constant 25 : index
    %621 = memref.load %arg9[%c0_318, %c25_319] : memref<4x32xf32, #tpu.memory_space<smem>>
    %622 = vector.broadcast %621 : f32 to vector<2x8x8xf32>
    %623 = arith.mulf %620, %622 : vector<2x8x8xf32>
    %624 = arith.addf %600, %623 : vector<2x8x8xf32>
    %c1_320 = arith.constant 1 : index
    %c25_321 = arith.constant 25 : index
    %625 = memref.load %arg9[%c1_320, %c25_321] : memref<4x32xf32, #tpu.memory_space<smem>>
    %626 = vector.broadcast %625 : f32 to vector<2x8x8xf32>
    %627 = arith.mulf %620, %626 : vector<2x8x8xf32>
    %628 = arith.addf %604, %627 : vector<2x8x8xf32>
    %c2_322 = arith.constant 2 : index
    %c25_323 = arith.constant 25 : index
    %629 = memref.load %arg9[%c2_322, %c25_323] : memref<4x32xf32, #tpu.memory_space<smem>>
    %630 = vector.broadcast %629 : f32 to vector<2x8x8xf32>
    %631 = arith.mulf %620, %630 : vector<2x8x8xf32>
    %632 = arith.addf %608, %631 : vector<2x8x8xf32>
    %c3_324 = arith.constant 3 : index
    %c25_325 = arith.constant 25 : index
    %633 = memref.load %arg9[%c3_324, %c25_325] : memref<4x32xf32, #tpu.memory_space<smem>>
    %634 = vector.broadcast %633 : f32 to vector<2x8x8xf32>
    %635 = arith.mulf %620, %634 : vector<2x8x8xf32>
    %636 = arith.addf %612, %635 : vector<2x8x8xf32>
    %c0_326 = arith.constant 0 : index
    %c26 = arith.constant 26 : index
    %637 = memref.load %arg7[%c0_326, %c26] : memref<1x32xf32, #tpu.memory_space<smem>>
    %638 = vector.broadcast %637 : f32 to vector<2x8x8xf32>
    %639 = arith.mulf %2, %638 : vector<2x8x8xf32>
    %c0_327 = arith.constant 0 : index
    %c26_328 = arith.constant 26 : index
    %640 = memref.load %arg8[%c0_327, %c26_328] : memref<1x32xf32, #tpu.memory_space<smem>>
    %641 = vector.broadcast %640 : f32 to vector<2x8x8xf32>
    %642 = arith.addf %639, %641 : vector<2x8x8xf32>
    %cst_329 = arith.constant 0.000000e+00 : f32
    %643 = vector.broadcast %cst_329 : f32 to vector<2x8x8xf32>
    %644 = arith.maximumf %642, %643 : vector<2x8x8xf32>
    %c0_330 = arith.constant 0 : index
    %c26_331 = arith.constant 26 : index
    %645 = memref.load %arg9[%c0_330, %c26_331] : memref<4x32xf32, #tpu.memory_space<smem>>
    %646 = vector.broadcast %645 : f32 to vector<2x8x8xf32>
    %647 = arith.mulf %644, %646 : vector<2x8x8xf32>
    %648 = arith.addf %624, %647 : vector<2x8x8xf32>
    %c1_332 = arith.constant 1 : index
    %c26_333 = arith.constant 26 : index
    %649 = memref.load %arg9[%c1_332, %c26_333] : memref<4x32xf32, #tpu.memory_space<smem>>
    %650 = vector.broadcast %649 : f32 to vector<2x8x8xf32>
    %651 = arith.mulf %644, %650 : vector<2x8x8xf32>
    %652 = arith.addf %628, %651 : vector<2x8x8xf32>
    %c2_334 = arith.constant 2 : index
    %c26_335 = arith.constant 26 : index
    %653 = memref.load %arg9[%c2_334, %c26_335] : memref<4x32xf32, #tpu.memory_space<smem>>
    %654 = vector.broadcast %653 : f32 to vector<2x8x8xf32>
    %655 = arith.mulf %644, %654 : vector<2x8x8xf32>
    %656 = arith.addf %632, %655 : vector<2x8x8xf32>
    %c3_336 = arith.constant 3 : index
    %c26_337 = arith.constant 26 : index
    %657 = memref.load %arg9[%c3_336, %c26_337] : memref<4x32xf32, #tpu.memory_space<smem>>
    %658 = vector.broadcast %657 : f32 to vector<2x8x8xf32>
    %659 = arith.mulf %644, %658 : vector<2x8x8xf32>
    %660 = arith.addf %636, %659 : vector<2x8x8xf32>
    %c0_338 = arith.constant 0 : index
    %c27 = arith.constant 27 : index
    %661 = memref.load %arg7[%c0_338, %c27] : memref<1x32xf32, #tpu.memory_space<smem>>
    %662 = vector.broadcast %661 : f32 to vector<2x8x8xf32>
    %663 = arith.mulf %2, %662 : vector<2x8x8xf32>
    %c0_339 = arith.constant 0 : index
    %c27_340 = arith.constant 27 : index
    %664 = memref.load %arg8[%c0_339, %c27_340] : memref<1x32xf32, #tpu.memory_space<smem>>
    %665 = vector.broadcast %664 : f32 to vector<2x8x8xf32>
    %666 = arith.addf %663, %665 : vector<2x8x8xf32>
    %cst_341 = arith.constant 0.000000e+00 : f32
    %667 = vector.broadcast %cst_341 : f32 to vector<2x8x8xf32>
    %668 = arith.maximumf %666, %667 : vector<2x8x8xf32>
    %c0_342 = arith.constant 0 : index
    %c27_343 = arith.constant 27 : index
    %669 = memref.load %arg9[%c0_342, %c27_343] : memref<4x32xf32, #tpu.memory_space<smem>>
    %670 = vector.broadcast %669 : f32 to vector<2x8x8xf32>
    %671 = arith.mulf %668, %670 : vector<2x8x8xf32>
    %672 = arith.addf %648, %671 : vector<2x8x8xf32>
    %c1_344 = arith.constant 1 : index
    %c27_345 = arith.constant 27 : index
    %673 = memref.load %arg9[%c1_344, %c27_345] : memref<4x32xf32, #tpu.memory_space<smem>>
    %674 = vector.broadcast %673 : f32 to vector<2x8x8xf32>
    %675 = arith.mulf %668, %674 : vector<2x8x8xf32>
    %676 = arith.addf %652, %675 : vector<2x8x8xf32>
    %c2_346 = arith.constant 2 : index
    %c27_347 = arith.constant 27 : index
    %677 = memref.load %arg9[%c2_346, %c27_347] : memref<4x32xf32, #tpu.memory_space<smem>>
    %678 = vector.broadcast %677 : f32 to vector<2x8x8xf32>
    %679 = arith.mulf %668, %678 : vector<2x8x8xf32>
    %680 = arith.addf %656, %679 : vector<2x8x8xf32>
    %c3_348 = arith.constant 3 : index
    %c27_349 = arith.constant 27 : index
    %681 = memref.load %arg9[%c3_348, %c27_349] : memref<4x32xf32, #tpu.memory_space<smem>>
    %682 = vector.broadcast %681 : f32 to vector<2x8x8xf32>
    %683 = arith.mulf %668, %682 : vector<2x8x8xf32>
    %684 = arith.addf %660, %683 : vector<2x8x8xf32>
    %c0_350 = arith.constant 0 : index
    %c28 = arith.constant 28 : index
    %685 = memref.load %arg7[%c0_350, %c28] : memref<1x32xf32, #tpu.memory_space<smem>>
    %686 = vector.broadcast %685 : f32 to vector<2x8x8xf32>
    %687 = arith.mulf %2, %686 : vector<2x8x8xf32>
    %c0_351 = arith.constant 0 : index
    %c28_352 = arith.constant 28 : index
    %688 = memref.load %arg8[%c0_351, %c28_352] : memref<1x32xf32, #tpu.memory_space<smem>>
    %689 = vector.broadcast %688 : f32 to vector<2x8x8xf32>
    %690 = arith.addf %687, %689 : vector<2x8x8xf32>
    %cst_353 = arith.constant 0.000000e+00 : f32
    %691 = vector.broadcast %cst_353 : f32 to vector<2x8x8xf32>
    %692 = arith.maximumf %690, %691 : vector<2x8x8xf32>
    %c0_354 = arith.constant 0 : index
    %c28_355 = arith.constant 28 : index
    %693 = memref.load %arg9[%c0_354, %c28_355] : memref<4x32xf32, #tpu.memory_space<smem>>
    %694 = vector.broadcast %693 : f32 to vector<2x8x8xf32>
    %695 = arith.mulf %692, %694 : vector<2x8x8xf32>
    %696 = arith.addf %672, %695 : vector<2x8x8xf32>
    %c1_356 = arith.constant 1 : index
    %c28_357 = arith.constant 28 : index
    %697 = memref.load %arg9[%c1_356, %c28_357] : memref<4x32xf32, #tpu.memory_space<smem>>
    %698 = vector.broadcast %697 : f32 to vector<2x8x8xf32>
    %699 = arith.mulf %692, %698 : vector<2x8x8xf32>
    %700 = arith.addf %676, %699 : vector<2x8x8xf32>
    %c2_358 = arith.constant 2 : index
    %c28_359 = arith.constant 28 : index
    %701 = memref.load %arg9[%c2_358, %c28_359] : memref<4x32xf32, #tpu.memory_space<smem>>
    %702 = vector.broadcast %701 : f32 to vector<2x8x8xf32>
    %703 = arith.mulf %692, %702 : vector<2x8x8xf32>
    %704 = arith.addf %680, %703 : vector<2x8x8xf32>
    %c3_360 = arith.constant 3 : index
    %c28_361 = arith.constant 28 : index
    %705 = memref.load %arg9[%c3_360, %c28_361] : memref<4x32xf32, #tpu.memory_space<smem>>
    %706 = vector.broadcast %705 : f32 to vector<2x8x8xf32>
    %707 = arith.mulf %692, %706 : vector<2x8x8xf32>
    %708 = arith.addf %684, %707 : vector<2x8x8xf32>
    %c0_362 = arith.constant 0 : index
    %c29 = arith.constant 29 : index
    %709 = memref.load %arg7[%c0_362, %c29] : memref<1x32xf32, #tpu.memory_space<smem>>
    %710 = vector.broadcast %709 : f32 to vector<2x8x8xf32>
    %711 = arith.mulf %2, %710 : vector<2x8x8xf32>
    %c0_363 = arith.constant 0 : index
    %c29_364 = arith.constant 29 : index
    %712 = memref.load %arg8[%c0_363, %c29_364] : memref<1x32xf32, #tpu.memory_space<smem>>
    %713 = vector.broadcast %712 : f32 to vector<2x8x8xf32>
    %714 = arith.addf %711, %713 : vector<2x8x8xf32>
    %cst_365 = arith.constant 0.000000e+00 : f32
    %715 = vector.broadcast %cst_365 : f32 to vector<2x8x8xf32>
    %716 = arith.maximumf %714, %715 : vector<2x8x8xf32>
    %c0_366 = arith.constant 0 : index
    %c29_367 = arith.constant 29 : index
    %717 = memref.load %arg9[%c0_366, %c29_367] : memref<4x32xf32, #tpu.memory_space<smem>>
    %718 = vector.broadcast %717 : f32 to vector<2x8x8xf32>
    %719 = arith.mulf %716, %718 : vector<2x8x8xf32>
    %720 = arith.addf %696, %719 : vector<2x8x8xf32>
    %c1_368 = arith.constant 1 : index
    %c29_369 = arith.constant 29 : index
    %721 = memref.load %arg9[%c1_368, %c29_369] : memref<4x32xf32, #tpu.memory_space<smem>>
    %722 = vector.broadcast %721 : f32 to vector<2x8x8xf32>
    %723 = arith.mulf %716, %722 : vector<2x8x8xf32>
    %724 = arith.addf %700, %723 : vector<2x8x8xf32>
    %c2_370 = arith.constant 2 : index
    %c29_371 = arith.constant 29 : index
    %725 = memref.load %arg9[%c2_370, %c29_371] : memref<4x32xf32, #tpu.memory_space<smem>>
    %726 = vector.broadcast %725 : f32 to vector<2x8x8xf32>
    %727 = arith.mulf %716, %726 : vector<2x8x8xf32>
    %728 = arith.addf %704, %727 : vector<2x8x8xf32>
    %c3_372 = arith.constant 3 : index
    %c29_373 = arith.constant 29 : index
    %729 = memref.load %arg9[%c3_372, %c29_373] : memref<4x32xf32, #tpu.memory_space<smem>>
    %730 = vector.broadcast %729 : f32 to vector<2x8x8xf32>
    %731 = arith.mulf %716, %730 : vector<2x8x8xf32>
    %732 = arith.addf %708, %731 : vector<2x8x8xf32>
    %c0_374 = arith.constant 0 : index
    %c30 = arith.constant 30 : index
    %733 = memref.load %arg7[%c0_374, %c30] : memref<1x32xf32, #tpu.memory_space<smem>>
    %734 = vector.broadcast %733 : f32 to vector<2x8x8xf32>
    %735 = arith.mulf %2, %734 : vector<2x8x8xf32>
    %c0_375 = arith.constant 0 : index
    %c30_376 = arith.constant 30 : index
    %736 = memref.load %arg8[%c0_375, %c30_376] : memref<1x32xf32, #tpu.memory_space<smem>>
    %737 = vector.broadcast %736 : f32 to vector<2x8x8xf32>
    %738 = arith.addf %735, %737 : vector<2x8x8xf32>
    %cst_377 = arith.constant 0.000000e+00 : f32
    %739 = vector.broadcast %cst_377 : f32 to vector<2x8x8xf32>
    %740 = arith.maximumf %738, %739 : vector<2x8x8xf32>
    %c0_378 = arith.constant 0 : index
    %c30_379 = arith.constant 30 : index
    %741 = memref.load %arg9[%c0_378, %c30_379] : memref<4x32xf32, #tpu.memory_space<smem>>
    %742 = vector.broadcast %741 : f32 to vector<2x8x8xf32>
    %743 = arith.mulf %740, %742 : vector<2x8x8xf32>
    %744 = arith.addf %720, %743 : vector<2x8x8xf32>
    %c1_380 = arith.constant 1 : index
    %c30_381 = arith.constant 30 : index
    %745 = memref.load %arg9[%c1_380, %c30_381] : memref<4x32xf32, #tpu.memory_space<smem>>
    %746 = vector.broadcast %745 : f32 to vector<2x8x8xf32>
    %747 = arith.mulf %740, %746 : vector<2x8x8xf32>
    %748 = arith.addf %724, %747 : vector<2x8x8xf32>
    %c2_382 = arith.constant 2 : index
    %c30_383 = arith.constant 30 : index
    %749 = memref.load %arg9[%c2_382, %c30_383] : memref<4x32xf32, #tpu.memory_space<smem>>
    %750 = vector.broadcast %749 : f32 to vector<2x8x8xf32>
    %751 = arith.mulf %740, %750 : vector<2x8x8xf32>
    %752 = arith.addf %728, %751 : vector<2x8x8xf32>
    %c3_384 = arith.constant 3 : index
    %c30_385 = arith.constant 30 : index
    %753 = memref.load %arg9[%c3_384, %c30_385] : memref<4x32xf32, #tpu.memory_space<smem>>
    %754 = vector.broadcast %753 : f32 to vector<2x8x8xf32>
    %755 = arith.mulf %740, %754 : vector<2x8x8xf32>
    %756 = arith.addf %732, %755 : vector<2x8x8xf32>
    %c0_386 = arith.constant 0 : index
    %c31 = arith.constant 31 : index
    %757 = memref.load %arg7[%c0_386, %c31] : memref<1x32xf32, #tpu.memory_space<smem>>
    %758 = vector.broadcast %757 : f32 to vector<2x8x8xf32>
    %759 = arith.mulf %2, %758 : vector<2x8x8xf32>
    %c0_387 = arith.constant 0 : index
    %c31_388 = arith.constant 31 : index
    %760 = memref.load %arg8[%c0_387, %c31_388] : memref<1x32xf32, #tpu.memory_space<smem>>
    %761 = vector.broadcast %760 : f32 to vector<2x8x8xf32>
    %762 = arith.addf %759, %761 : vector<2x8x8xf32>
    %cst_389 = arith.constant 0.000000e+00 : f32
    %763 = vector.broadcast %cst_389 : f32 to vector<2x8x8xf32>
    %764 = arith.maximumf %762, %763 : vector<2x8x8xf32>
    %c0_390 = arith.constant 0 : index
    %c31_391 = arith.constant 31 : index
    %765 = memref.load %arg9[%c0_390, %c31_391] : memref<4x32xf32, #tpu.memory_space<smem>>
    %766 = vector.broadcast %765 : f32 to vector<2x8x8xf32>
    %767 = arith.mulf %764, %766 : vector<2x8x8xf32>
    %768 = arith.addf %744, %767 : vector<2x8x8xf32>
    %c1_392 = arith.constant 1 : index
    %c31_393 = arith.constant 31 : index
    %769 = memref.load %arg9[%c1_392, %c31_393] : memref<4x32xf32, #tpu.memory_space<smem>>
    %770 = vector.broadcast %769 : f32 to vector<2x8x8xf32>
    %771 = arith.mulf %764, %770 : vector<2x8x8xf32>
    %772 = arith.addf %748, %771 : vector<2x8x8xf32>
    %c2_394 = arith.constant 2 : index
    %c31_395 = arith.constant 31 : index
    %773 = memref.load %arg9[%c2_394, %c31_395] : memref<4x32xf32, #tpu.memory_space<smem>>
    %774 = vector.broadcast %773 : f32 to vector<2x8x8xf32>
    %775 = arith.mulf %764, %774 : vector<2x8x8xf32>
    %776 = arith.addf %752, %775 : vector<2x8x8xf32>
    %c3_396 = arith.constant 3 : index
    %c31_397 = arith.constant 31 : index
    %777 = memref.load %arg9[%c3_396, %c31_397] : memref<4x32xf32, #tpu.memory_space<smem>>
    %778 = vector.broadcast %777 : f32 to vector<2x8x8xf32>
    %779 = arith.mulf %764, %778 : vector<2x8x8xf32>
    %780 = arith.addf %756, %779 : vector<2x8x8xf32>
    %cst_398 = arith.constant 0.000000e+00 : f32
    %781 = vector.broadcast %cst_398 : f32 to vector<16x32xf32>
    %c0_399 = arith.constant 0 : index
    %c0_400 = arith.constant 0 : index
    %782 = vector.load %arg6[%c0_399, %c0_400] : memref<1x32xf32, #tpu.memory_space<vmem>>, vector<1x32xf32>
    %783 = vector.broadcast %782 : vector<1x32xf32> to vector<16x32xf32>
    %784 = arith.addf %781, %783 : vector<16x32xf32>
    %785 = vector.extract_strided_slice %8 {offsets = [0, 0], sizes = [16, 32], strides = [1, 1]} : vector<16x384xf32> to vector<16x32xf32>
    %786 = vector.shape_cast %785 : vector<16x32xf32> to vector<2x8x32xf32>
    %787 = arith.truncf %786 : vector<2x8x32xf32> to vector<2x8x32xbf16>
    %788 = vector.extract_strided_slice %8 {offsets = [0, 128], sizes = [16, 32], strides = [1, 1]} : vector<16x384xf32> to vector<16x32xf32>
    %789 = vector.shape_cast %788 : vector<16x32xf32> to vector<2x8x32xf32>
    %790 = arith.truncf %789 : vector<2x8x32xf32> to vector<2x8x32xbf16>
    %791 = vector.extract_strided_slice %8 {offsets = [0, 256], sizes = [16, 32], strides = [1, 1]} : vector<16x384xf32> to vector<16x32xf32>
    %792 = vector.shape_cast %791 : vector<16x32xf32> to vector<2x8x32xf32>
    %793 = arith.truncf %792 : vector<2x8x32xf32> to vector<2x8x32xbf16>
    "tpu.trace_start"() <{level = 10 : i32, message = "bnd,bmd->bnm"}> : () -> ()
    %cst_401 = arith.constant dense<0.000000e+00> : vector<2x8x8xf32>
    %794 = tpu.matmul %787, %790, %cst_401 {dimension_numbers = #tpu.dot_dimension_numbers<[2], [2], [1], [1], [0, 0, 0, 1, 1, 1], [0], [0]>} : vector<2x8x32xbf16>, vector<2x8x32xbf16>, vector<2x8x8xf32> -> vector<2x8x8xf32>
    "tpu.trace_stop"() : () -> ()
    %c0_402 = arith.constant 0 : index
    %c0_403 = arith.constant 0 : index
    %795 = memref.load %arg10[%c0_402, %c0_403] : memref<1x4xf32, #tpu.memory_space<smem>>
    %796 = vector.broadcast %795 : f32 to vector<2x8x8xf32>
    %797 = arith.addf %768, %796 : vector<2x8x8xf32>
    %798 = arith.addf %794, %797 : vector<2x8x8xf32>
    %cst_404 = arith.constant dense<0xFF800000> : vector<2x8xf32>
    %799 = vector.multi_reduction <maximumf>, %798, %cst_404 [2] : vector<2x8x8xf32> to vector<2x8xf32>
    %800 = vector.shape_cast %799 : vector<2x8xf32> to vector<2x8x1xf32>
    %801 = vector.broadcast %800 : vector<2x8x1xf32> to vector<2x8x8xf32>
    %802 = arith.subf %798, %801 : vector<2x8x8xf32>
    %803 = math.exp %802 : vector<2x8x8xf32>
    %cst_405 = arith.constant dense<0.000000e+00> : vector<2x8xf32>
    %804 = vector.multi_reduction <add>, %803, %cst_405 [2] : vector<2x8x8xf32> to vector<2x8xf32>
    %805 = vector.shape_cast %804 : vector<2x8xf32> to vector<2x8x1xf32>
    %806 = arith.truncf %803 : vector<2x8x8xf32> to vector<2x8x8xbf16>
    "tpu.trace_start"() <{level = 10 : i32, message = "bnm,bmd->bnd"}> : () -> ()
    %cst_406 = arith.constant dense<0.000000e+00> : vector<2x8x32xf32>
    %807 = tpu.matmul %806, %793, %cst_406 {dimension_numbers = #tpu.dot_dimension_numbers<[2], [1], [1], [2], [0, 0, 0, 1, 1, 2], [0], [0]>} : vector<2x8x8xbf16>, vector<2x8x32xbf16>, vector<2x8x32xf32> -> vector<2x8x32xf32>
    "tpu.trace_stop"() : () -> ()
    %808 = tpu.reciprocal %805 {approx = true} : vector<2x8x1xf32> -> vector<2x8x1xf32>
    %809 = vector.broadcast %808 : vector<2x8x1xf32> to vector<2x8x32xf32>
    %810 = arith.mulf %807, %809 : vector<2x8x32xf32>
    %811 = vector.shape_cast %810 : vector<2x8x32xf32> to vector<16x32xf32>
    %812 = arith.truncf %811 : vector<16x32xf32> to vector<16x32xbf16>
    %c0_407 = arith.constant 0 : index
    %c0_408 = arith.constant 0 : index
    %813 = vector.load %arg5[%c0_407, %c0_408] : memref<128x32xbf16, #tpu.memory_space<vmem>>, vector<32x32xbf16>
    %cst_409 = arith.constant dense<0.000000e+00> : vector<16x32xf32>
    %814 = tpu.matmul %812, %813, %cst_409 {dimension_numbers = #tpu.dot_dimension_numbers<[1], [0], [0], [1], [0, 0, 1, 1], [], []>} : vector<16x32xbf16>, vector<32x32xbf16>, vector<16x32xf32> -> vector<16x32xf32>
    %815 = arith.addf %784, %814 : vector<16x32xf32>
    %816 = vector.extract_strided_slice %8 {offsets = [0, 32], sizes = [16, 32], strides = [1, 1]} : vector<16x384xf32> to vector<16x32xf32>
    %817 = vector.shape_cast %816 : vector<16x32xf32> to vector<2x8x32xf32>
    %818 = arith.truncf %817 : vector<2x8x32xf32> to vector<2x8x32xbf16>
    %819 = vector.extract_strided_slice %8 {offsets = [0, 160], sizes = [16, 32], strides = [1, 1]} : vector<16x384xf32> to vector<16x32xf32>
    %820 = vector.shape_cast %819 : vector<16x32xf32> to vector<2x8x32xf32>
    %821 = arith.truncf %820 : vector<2x8x32xf32> to vector<2x8x32xbf16>
    %822 = vector.extract_strided_slice %8 {offsets = [0, 288], sizes = [16, 32], strides = [1, 1]} : vector<16x384xf32> to vector<16x32xf32>
    %823 = vector.shape_cast %822 : vector<16x32xf32> to vector<2x8x32xf32>
    %824 = arith.truncf %823 : vector<2x8x32xf32> to vector<2x8x32xbf16>
    "tpu.trace_start"() <{level = 10 : i32, message = "bnd,bmd->bnm"}> : () -> ()
    %cst_410 = arith.constant dense<0.000000e+00> : vector<2x8x8xf32>
    %825 = tpu.matmul %818, %821, %cst_410 {dimension_numbers = #tpu.dot_dimension_numbers<[2], [2], [1], [1], [0, 0, 0, 1, 1, 1], [0], [0]>} : vector<2x8x32xbf16>, vector<2x8x32xbf16>, vector<2x8x8xf32> -> vector<2x8x8xf32>
    "tpu.trace_stop"() : () -> ()
    %c0_411 = arith.constant 0 : index
    %c1_412 = arith.constant 1 : index
    %826 = memref.load %arg10[%c0_411, %c1_412] : memref<1x4xf32, #tpu.memory_space<smem>>
    %827 = vector.broadcast %826 : f32 to vector<2x8x8xf32>
    %828 = arith.addf %772, %827 : vector<2x8x8xf32>
    %829 = arith.addf %825, %828 : vector<2x8x8xf32>
    %cst_413 = arith.constant dense<0xFF800000> : vector<2x8xf32>
    %830 = vector.multi_reduction <maximumf>, %829, %cst_413 [2] : vector<2x8x8xf32> to vector<2x8xf32>
    %831 = vector.shape_cast %830 : vector<2x8xf32> to vector<2x8x1xf32>
    %832 = vector.broadcast %831 : vector<2x8x1xf32> to vector<2x8x8xf32>
    %833 = arith.subf %829, %832 : vector<2x8x8xf32>
    %834 = math.exp %833 : vector<2x8x8xf32>
    %cst_414 = arith.constant dense<0.000000e+00> : vector<2x8xf32>
    %835 = vector.multi_reduction <add>, %834, %cst_414 [2] : vector<2x8x8xf32> to vector<2x8xf32>
    %836 = vector.shape_cast %835 : vector<2x8xf32> to vector<2x8x1xf32>
    %837 = arith.truncf %834 : vector<2x8x8xf32> to vector<2x8x8xbf16>
    "tpu.trace_start"() <{level = 10 : i32, message = "bnm,bmd->bnd"}> : () -> ()
    %cst_415 = arith.constant dense<0.000000e+00> : vector<2x8x32xf32>
    %838 = tpu.matmul %837, %824, %cst_415 {dimension_numbers = #tpu.dot_dimension_numbers<[2], [1], [1], [2], [0, 0, 0, 1, 1, 2], [0], [0]>} : vector<2x8x8xbf16>, vector<2x8x32xbf16>, vector<2x8x32xf32> -> vector<2x8x32xf32>
    "tpu.trace_stop"() : () -> ()
    %839 = tpu.reciprocal %836 {approx = true} : vector<2x8x1xf32> -> vector<2x8x1xf32>
    %840 = vector.broadcast %839 : vector<2x8x1xf32> to vector<2x8x32xf32>
    %841 = arith.mulf %838, %840 : vector<2x8x32xf32>
    %842 = vector.shape_cast %841 : vector<2x8x32xf32> to vector<16x32xf32>
    %843 = arith.truncf %842 : vector<16x32xf32> to vector<16x32xbf16>
    %c32 = arith.constant 32 : index
    %c0_416 = arith.constant 0 : index
    %844 = vector.load %arg5[%c32, %c0_416] : memref<128x32xbf16, #tpu.memory_space<vmem>>, vector<32x32xbf16>
    %cst_417 = arith.constant dense<0.000000e+00> : vector<16x32xf32>
    %845 = tpu.matmul %843, %844, %cst_417 {dimension_numbers = #tpu.dot_dimension_numbers<[1], [0], [0], [1], [0, 0, 1, 1], [], []>} : vector<16x32xbf16>, vector<32x32xbf16>, vector<16x32xf32> -> vector<16x32xf32>
    %846 = arith.addf %815, %845 : vector<16x32xf32>
    %847 = vector.extract_strided_slice %8 {offsets = [0, 64], sizes = [16, 32], strides = [1, 1]} : vector<16x384xf32> to vector<16x32xf32>
    %848 = vector.shape_cast %847 : vector<16x32xf32> to vector<2x8x32xf32>
    %849 = arith.truncf %848 : vector<2x8x32xf32> to vector<2x8x32xbf16>
    %850 = vector.extract_strided_slice %8 {offsets = [0, 192], sizes = [16, 32], strides = [1, 1]} : vector<16x384xf32> to vector<16x32xf32>
    %851 = vector.shape_cast %850 : vector<16x32xf32> to vector<2x8x32xf32>
    %852 = arith.truncf %851 : vector<2x8x32xf32> to vector<2x8x32xbf16>
    %853 = vector.extract_strided_slice %8 {offsets = [0, 320], sizes = [16, 32], strides = [1, 1]} : vector<16x384xf32> to vector<16x32xf32>
    %854 = vector.shape_cast %853 : vector<16x32xf32> to vector<2x8x32xf32>
    %855 = arith.truncf %854 : vector<2x8x32xf32> to vector<2x8x32xbf16>
    "tpu.trace_start"() <{level = 10 : i32, message = "bnd,bmd->bnm"}> : () -> ()
    %cst_418 = arith.constant dense<0.000000e+00> : vector<2x8x8xf32>
    %856 = tpu.matmul %849, %852, %cst_418 {dimension_numbers = #tpu.dot_dimension_numbers<[2], [2], [1], [1], [0, 0, 0, 1, 1, 1], [0], [0]>} : vector<2x8x32xbf16>, vector<2x8x32xbf16>, vector<2x8x8xf32> -> vector<2x8x8xf32>
    "tpu.trace_stop"() : () -> ()
    %c0_419 = arith.constant 0 : index
    %c2_420 = arith.constant 2 : index
    %857 = memref.load %arg10[%c0_419, %c2_420] : memref<1x4xf32, #tpu.memory_space<smem>>
    %858 = vector.broadcast %857 : f32 to vector<2x8x8xf32>
    %859 = arith.addf %776, %858 : vector<2x8x8xf32>
    %860 = arith.addf %856, %859 : vector<2x8x8xf32>
    %cst_421 = arith.constant dense<0xFF800000> : vector<2x8xf32>
    %861 = vector.multi_reduction <maximumf>, %860, %cst_421 [2] : vector<2x8x8xf32> to vector<2x8xf32>
    %862 = vector.shape_cast %861 : vector<2x8xf32> to vector<2x8x1xf32>
    %863 = vector.broadcast %862 : vector<2x8x1xf32> to vector<2x8x8xf32>
    %864 = arith.subf %860, %863 : vector<2x8x8xf32>
    %865 = math.exp %864 : vector<2x8x8xf32>
    %cst_422 = arith.constant dense<0.000000e+00> : vector<2x8xf32>
    %866 = vector.multi_reduction <add>, %865, %cst_422 [2] : vector<2x8x8xf32> to vector<2x8xf32>
    %867 = vector.shape_cast %866 : vector<2x8xf32> to vector<2x8x1xf32>
    %868 = arith.truncf %865 : vector<2x8x8xf32> to vector<2x8x8xbf16>
    "tpu.trace_start"() <{level = 10 : i32, message = "bnm,bmd->bnd"}> : () -> ()
    %cst_423 = arith.constant dense<0.000000e+00> : vector<2x8x32xf32>
    %869 = tpu.matmul %868, %855, %cst_423 {dimension_numbers = #tpu.dot_dimension_numbers<[2], [1], [1], [2], [0, 0, 0, 1, 1, 2], [0], [0]>} : vector<2x8x8xbf16>, vector<2x8x32xbf16>, vector<2x8x32xf32> -> vector<2x8x32xf32>
    "tpu.trace_stop"() : () -> ()
    %870 = tpu.reciprocal %867 {approx = true} : vector<2x8x1xf32> -> vector<2x8x1xf32>
    %871 = vector.broadcast %870 : vector<2x8x1xf32> to vector<2x8x32xf32>
    %872 = arith.mulf %869, %871 : vector<2x8x32xf32>
    %873 = vector.shape_cast %872 : vector<2x8x32xf32> to vector<16x32xf32>
    %874 = arith.truncf %873 : vector<16x32xf32> to vector<16x32xbf16>
    %c64 = arith.constant 64 : index
    %c0_424 = arith.constant 0 : index
    %875 = vector.load %arg5[%c64, %c0_424] : memref<128x32xbf16, #tpu.memory_space<vmem>>, vector<32x32xbf16>
    %cst_425 = arith.constant dense<0.000000e+00> : vector<16x32xf32>
    %876 = tpu.matmul %874, %875, %cst_425 {dimension_numbers = #tpu.dot_dimension_numbers<[1], [0], [0], [1], [0, 0, 1, 1], [], []>} : vector<16x32xbf16>, vector<32x32xbf16>, vector<16x32xf32> -> vector<16x32xf32>
    %877 = arith.addf %846, %876 : vector<16x32xf32>
    %878 = vector.extract_strided_slice %8 {offsets = [0, 96], sizes = [16, 32], strides = [1, 1]} : vector<16x384xf32> to vector<16x32xf32>
    %879 = vector.shape_cast %878 : vector<16x32xf32> to vector<2x8x32xf32>
    %880 = arith.truncf %879 : vector<2x8x32xf32> to vector<2x8x32xbf16>
    %881 = vector.extract_strided_slice %8 {offsets = [0, 224], sizes = [16, 32], strides = [1, 1]} : vector<16x384xf32> to vector<16x32xf32>
    %882 = vector.shape_cast %881 : vector<16x32xf32> to vector<2x8x32xf32>
    %883 = arith.truncf %882 : vector<2x8x32xf32> to vector<2x8x32xbf16>
    %884 = vector.extract_strided_slice %8 {offsets = [0, 352], sizes = [16, 32], strides = [1, 1]} : vector<16x384xf32> to vector<16x32xf32>
    %885 = vector.shape_cast %884 : vector<16x32xf32> to vector<2x8x32xf32>
    %886 = arith.truncf %885 : vector<2x8x32xf32> to vector<2x8x32xbf16>
    "tpu.trace_start"() <{level = 10 : i32, message = "bnd,bmd->bnm"}> : () -> ()
    %cst_426 = arith.constant dense<0.000000e+00> : vector<2x8x8xf32>
    %887 = tpu.matmul %880, %883, %cst_426 {dimension_numbers = #tpu.dot_dimension_numbers<[2], [2], [1], [1], [0, 0, 0, 1, 1, 1], [0], [0]>} : vector<2x8x32xbf16>, vector<2x8x32xbf16>, vector<2x8x8xf32> -> vector<2x8x8xf32>
    "tpu.trace_stop"() : () -> ()
    %c0_427 = arith.constant 0 : index
    %c3_428 = arith.constant 3 : index
    %888 = memref.load %arg10[%c0_427, %c3_428] : memref<1x4xf32, #tpu.memory_space<smem>>
    %889 = vector.broadcast %888 : f32 to vector<2x8x8xf32>
    %890 = arith.addf %780, %889 : vector<2x8x8xf32>
    %891 = arith.addf %887, %890 : vector<2x8x8xf32>
    %cst_429 = arith.constant dense<0xFF800000> : vector<2x8xf32>
    %892 = vector.multi_reduction <maximumf>, %891, %cst_429 [2] : vector<2x8x8xf32> to vector<2x8xf32>
    %893 = vector.shape_cast %892 : vector<2x8xf32> to vector<2x8x1xf32>
    %894 = vector.broadcast %893 : vector<2x8x1xf32> to vector<2x8x8xf32>
    %895 = arith.subf %891, %894 : vector<2x8x8xf32>
    %896 = math.exp %895 : vector<2x8x8xf32>
    %cst_430 = arith.constant dense<0.000000e+00> : vector<2x8xf32>
    %897 = vector.multi_reduction <add>, %896, %cst_430 [2] : vector<2x8x8xf32> to vector<2x8xf32>
    %898 = vector.shape_cast %897 : vector<2x8xf32> to vector<2x8x1xf32>
    %899 = arith.truncf %896 : vector<2x8x8xf32> to vector<2x8x8xbf16>
    "tpu.trace_start"() <{level = 10 : i32, message = "bnm,bmd->bnd"}> : () -> ()
    %cst_431 = arith.constant dense<0.000000e+00> : vector<2x8x32xf32>
    %900 = tpu.matmul %899, %886, %cst_431 {dimension_numbers = #tpu.dot_dimension_numbers<[2], [1], [1], [2], [0, 0, 0, 1, 1, 2], [0], [0]>} : vector<2x8x8xbf16>, vector<2x8x32xbf16>, vector<2x8x32xf32> -> vector<2x8x32xf32>
    "tpu.trace_stop"() : () -> ()
    %901 = tpu.reciprocal %898 {approx = true} : vector<2x8x1xf32> -> vector<2x8x1xf32>
    %902 = vector.broadcast %901 : vector<2x8x1xf32> to vector<2x8x32xf32>
    %903 = arith.mulf %900, %902 : vector<2x8x32xf32>
    %904 = vector.shape_cast %903 : vector<2x8x32xf32> to vector<16x32xf32>
    %905 = arith.truncf %904 : vector<16x32xf32> to vector<16x32xbf16>
    %c96 = arith.constant 96 : index
    %c0_432 = arith.constant 0 : index
    %906 = vector.load %arg5[%c96, %c0_432] : memref<128x32xbf16, #tpu.memory_space<vmem>>, vector<32x32xbf16>
    %cst_433 = arith.constant dense<0.000000e+00> : vector<16x32xf32>
    %907 = tpu.matmul %905, %906, %cst_433 {dimension_numbers = #tpu.dot_dimension_numbers<[1], [0], [0], [1], [0, 0, 1, 1], [], []>} : vector<16x32xbf16>, vector<32x32xbf16>, vector<16x32xf32> -> vector<16x32xf32>
    %908 = arith.addf %877, %907 : vector<16x32xf32>
    %909 = arith.addf %1, %908 : vector<16x32xf32>
    %cst_434 = arith.constant dense<0.000000e+00> : vector<16xf32>
    %910 = vector.multi_reduction <add>, %909, %cst_434 [1] : vector<16x32xf32> to vector<16xf32>
    %911 = vector.shape_cast %910 : vector<16xf32> to vector<16x1xf32>
    %cst_435 = arith.constant 3.200000e+01 : f32
    %912 = vector.broadcast %cst_435 : f32 to vector<16x1xf32>
    %913 = arith.divf %911, %912 : vector<16x1xf32>
    %914 = arith.mulf %909, %909 : vector<16x32xf32>
    %cst_436 = arith.constant dense<0.000000e+00> : vector<16xf32>
    %915 = vector.multi_reduction <add>, %914, %cst_436 [1] : vector<16x32xf32> to vector<16xf32>
    %916 = vector.shape_cast %915 : vector<16xf32> to vector<16x1xf32>
    %cst_437 = arith.constant 3.200000e+01 : f32
    %917 = vector.broadcast %cst_437 : f32 to vector<16x1xf32>
    %918 = arith.divf %916, %917 : vector<16x1xf32>
    %919 = arith.mulf %913, %913 : vector<16x1xf32>
    %920 = arith.subf %918, %919 : vector<16x1xf32>
    %921 = vector.broadcast %913 : vector<16x1xf32> to vector<16x32xf32>
    %922 = arith.subf %909, %921 : vector<16x32xf32>
    %cst_438 = arith.constant 9.99999974E-6 : f32
    %923 = vector.broadcast %cst_438 : f32 to vector<16x1xf32>
    %924 = arith.addf %920, %923 : vector<16x1xf32>
    %925 = math.rsqrt %924 : vector<16x1xf32>
    %926 = vector.broadcast %925 : vector<16x1xf32> to vector<16x32xf32>
    %927 = arith.mulf %922, %926 : vector<16x32xf32>
    %c0_439 = arith.constant 0 : index
    %c0_440 = arith.constant 0 : index
    %928 = vector.load %arg11[%c0_439, %c0_440] : memref<1x32xf32, #tpu.memory_space<vmem>>, vector<1x32xf32>
    %929 = vector.broadcast %928 : vector<1x32xf32> to vector<16x32xf32>
    %930 = arith.mulf %927, %929 : vector<16x32xf32>
    %c0_441 = arith.constant 0 : index
    %c0_442 = arith.constant 0 : index
    %931 = vector.load %arg12[%c0_441, %c0_442] : memref<1x32xf32, #tpu.memory_space<vmem>>, vector<1x32xf32>
    %932 = vector.broadcast %931 : vector<1x32xf32> to vector<16x32xf32>
    %933 = arith.addf %930, %932 : vector<16x32xf32>
    %934 = vector.shape_cast %933 : vector<16x32xf32> to vector<2x8x32xf32>
    %c0_443 = arith.constant 0 : index
    %c0_444 = arith.constant 0 : index
    %c0_445 = arith.constant 0 : index
    %935 = vector.load %arg13[%c0_443, %c0_444, %c0_445] : memref<2x8x32xf32, #tpu.memory_space<vmem>>, vector<2x8x32xf32>
    tpu.vector_store %arg13[%c0_443, %c0_444, %c0_445], %934 {strides = array<i32>} : memref<2x8x32xf32, #tpu.memory_space<vmem>>, vector<2x8x32xf32>,
    return
  }
  func.func @transform_0(%arg0: i32) -> (i32, i32, i32) {
    %c0_i32 = arith.constant 0 : i32
    %c0_i32_0 = arith.constant 0 : i32
    %c0_i32_1 = arith.constant 0 : i32
    return %arg0, %c0_i32, %c0_i32_0 : i32, i32, i32
  }
  func.func @transform_1(%arg0: i32) -> (i32, i32, i32) {
    %c0_i32 = arith.constant 0 : i32
    %c0_i32_0 = arith.constant 0 : i32
    %c0_i32_1 = arith.constant 0 : i32
    return %arg0, %c0_i32, %c0_i32_0 : i32, i32, i32
  }
  func.func @transform_2(%arg0: i32) -> (i32, i32) {
    %c0_i32 = arith.constant 0 : i32
    %c0_i32_0 = arith.constant 0 : i32
    %c0_i32_1 = arith.constant 0 : i32
    return %c0_i32, %c0_i32_0 : i32, i32
  }
  func.func @transform_3(%arg0: i32) -> (i32, i32) {
    %c0_i32 = arith.constant 0 : i32
    %c0_i32_0 = arith.constant 0 : i32
    %c0_i32_1 = arith.constant 0 : i32
    return %c0_i32, %c0_i32_0 : i32, i32
  }
  func.func @transform_4(%arg0: i32) -> (i32, i32) {
    %c0_i32 = arith.constant 0 : i32
    %c0_i32_0 = arith.constant 0 : i32
    %c0_i32_1 = arith.constant 0 : i32
    return %c0_i32, %c0_i32_0 : i32, i32
  }
  func.func @transform_5(%arg0: i32) -> (i32, i32) {
    %c0_i32 = arith.constant 0 : i32
    %c0_i32_0 = arith.constant 0 : i32
    %c0_i32_1 = arith.constant 0 : i32
    return %c0_i32, %c0_i32_0 : i32, i32
  }
  func.func @transform_6(%arg0: i32) -> (i32, i32) {
    %c0_i32 = arith.constant 0 : i32
    %c0_i32_0 = arith.constant 0 : i32
    %c0_i32_1 = arith.constant 0 : i32
    return %c0_i32, %c0_i32_0 : i32, i32
  }
  func.func @transform_7(%arg0: i32) -> (i32, i32) {
    %c0_i32 = arith.constant 0 : i32
    %c0_i32_0 = arith.constant 0 : i32
    %c0_i32_1 = arith.constant 0 : i32
    return %c0_i32, %c0_i32_0 : i32, i32
  }
  func.func @transform_8(%arg0: i32) -> (i32, i32) {
    %c0_i32 = arith.constant 0 : i32
    %c0_i32_0 = arith.constant 0 : i32
    %c0_i32_1 = arith.constant 0 : i32
    return %c0_i32, %c0_i32_0 : i32, i32
  }
  func.func @transform_9(%arg0: i32) -> (i32, i32) {
    %c0_i32 = arith.constant 0 : i32
    %c0_i32_0 = arith.constant 0 : i32
    %c0_i32_1 = arith.constant 0 : i32
    return %c0_i32, %c0_i32_0 : i32, i32
  }
  func.func @transform_10(%arg0: i32) -> (i32, i32) {
    %c0_i32 = arith.constant 0 : i32
    %c0_i32_0 = arith.constant 0 : i32
    %c0_i32_1 = arith.constant 0 : i32
    return %c0_i32, %c0_i32_0 : i32, i32
  }
  func.func @transform_11(%arg0: i32) -> (i32, i32) {
    %c0_i32 = arith.constant 0 : i32
    %c0_i32_0 = arith.constant 0 : i32
    %c0_i32_1 = arith.constant 0 : i32
    return %c0_i32, %c0_i32_0 : i32, i32
  }
  func.func @transform_12(%arg0: i32) -> (i32, i32, i32) {
    %c0_i32 = arith.constant 0 : i32
    %c0_i32_0 = arith.constant 0 : i32
    %c0_i32_1 = arith.constant 0 : i32
    return %arg0, %c0_i32, %c0_i32_0 : i32, i32, i32
  }
}

</mosaic_0001>

<bundles_post_ra>
// kernel: tpu_custom_call.1
= control target key start
LH: loop header
LB: loop body
LE: loop exit
PB: predicated region body
PF: predicated region fallthrough
CT: control target
= control target key end

     0   :  { %s5297_s0 = inlined_call_operand.hbm [shape: f32[2,8,32], index: 0, kind: input, shape index: {}]   ;;  %s5298_s1 = inlined_call_operand.hbm [shape: f32[2,8,8], index: 1, kind: input, shape index: {}]   ;;  %s5299_s2 = inlined_call_operand.hbm [shape: bf16[32,384], index: 2, kind: input, shape index: {}]   ;;  %s5300_s3 = inlined_call_operand.hbm [shape: f32[1,384], index: 3, kind: input, shape index: {}]   ;;  %s5301_s4 = inlined_call_operand.hbm [shape: bf16[128,32], index: 4, kind: input, shape index: {}]   ;;  %s5302_s5 = inlined_call_operand.hbm [shape: f32[1,32], index: 5, kind: input, shape index: {}]   ;;  %s5303_s6 = inlined_call_operand.hbm [shape: f32[1,32], index: 6, kind: input, shape index: {}]   ;;  %s5304_s7 = inlined_call_operand.hbm [shape: f32[1,32], index: 7, kind: input, shape index: {}]   ;;  %s5305_s8 = inlined_call_operand.hbm [shape: f32[4,32], index: 8, kind: input, shape index: {}]   ;;  %s5306_s9 = inlined_call_operand.hbm [shape: f32[1,4], index: 9, kind: input, shape index: {}]   ;;  %s5307_s10 = inlined_call_operand.hbm [shape: f32[1,32], index: 10, kind: input, shape index: {}]   ;;  %s5308_s11 = inlined_call_operand.hbm [shape: f32[1,32], index: 11, kind: input, shape index: {}]   ;;  %s5309_s12 = inlined_call_operand.hbm [shape: f32[2,8,32], index: 12, kind: output, shape index: {}]  }
   0x1   :  { %5458 = sst [smem:[#allocation77_spill]] %s5309_s12 }
   0x2   :  { %17 = vsyncpa [#allocation3], 0 }
   0x3   :  { %18 = vsyncpa [#allocation7], 0 }
   0x4   :  { %19 = vsyncpa [#allocation10], 0 }
   0x5   :  { %20 = vsyncpa [#allocation13], 0 }
   0x6   :  { %21 = vsyncpa [#allocation5], 0 }
   0x7   :  { %22 = vsyncpa [#allocation16], 0 }
   0x8   :  { %23 = vsyncpa [#allocation19], 0 }
   0x9   :  { %24 = vsyncpa [#allocation22], 0 }
   0xa   :  { %25 = vsyncpa [#allocation4], 0  ;;  %s3407_s21 = smov [#allocation6]   ;;  %s3408_s23 = smov [#allocation9]  }
   0xb   :  { %s43_s22 = sshll.u32 %s3407_s21, 4  ;;  %s68_s24 = sshll.u32 %s3408_s23, 4  ;;  %s44_s22 = int_to_ptr.vmem [resolvable:$true] %s43_s22  ;;  %s3496_s24 = int_to_ptr.vmem [resolvable:$true] %s68_s24 }
   0xc   :  { %s3149_s27 = scalar_lea.hbm %s5298_s1, 256 }
   0xd   :  { %p3150_p0 = scmp.ne.s32.totalorder %s5298_s1, %s3149_s27  ;;  %p3153_p1 = scmp.lt.u32.totalorder %s3149_s27, %s5298_s1 }
   0xf   :  { %p3155_p2 = pnand %p3153_p1, %p3150_p0 }
  0x11   :  { %3158 = shalt.err (!%p3155_p2)
}
  0x12   :  { %s3159_s14 = scalar_lea.vmem %s44_s22, 256  ;;  %p3164_p4 = scmp.lt.s32.totalorder %s44_s22, %s44_s22 }
  0x13   :  { %p3160_p3 = scmp.ne.s32.totalorder %s44_s22, %s3159_s14  ;;  %p3165_p5 = scmp.lt.s32.totalorder %s3159_s14, %s3159_s14 }
  0x15   :  { %p3166_p6 = por %p3165_p5, %p3164_p4 }
  0x17   :  { %p3167_p7 = pnand %p3166_p6, %p3160_p3 }
  0x19   :  { %3170 = shalt.err (!%p3167_p7)
}
  0x1a   :  { %s5422_s15 = smov 128   ;;  %s5424_s16 = smov 8  }
  0x1b   :  { %49 = dma.hbm_to_vmem [thread:$0]  %s5298_s1, 256, %s44_s22, [#allocation7], %s5422_s15, %s5422_s15, %s5424_s16  }
  0x1c   :  { %s3171_s21 = scalar_lea.hbm %s5300_s3, 48 }
  0x1d   :  { %p3172_p8 = scmp.ne.s32.totalorder %s5300_s3, %s3171_s21  ;;  %p3175_p9 = scmp.lt.u32.totalorder %s3171_s21, %s5300_s3 }
  0x1f   :  { %p3177_p10 = pnand %p3175_p9, %p3172_p8 }
  0x21   :  { %3180 = shalt.err (!%p3177_p10)
}
  0x22   :  { %s3181_s28 = scalar_lea.vmem %s3496_s24, 48  ;;  %s3185_s1 = scalar_lea.vmem %s3496_s24, 64 }
  0x23   :  { %p3182_p11 = scmp.ne.s32.totalorder %s3496_s24, %s3181_s28  ;;  %p3186_p12 = scmp.lt.s32.totalorder %s3496_s24, %s3496_s24 }
  0x24   :  { %p3187_p13 = scmp.lt.s32.totalorder %s3185_s1, %s3181_s28 }
  0x26   :  { %p3188_p0 = por %p3187_p13, %p3186_p12 }
  0x28   :  { %p3189_p1 = pnand %p3188_p0, %p3182_p11 }
  0x2a   :  { %3192 = shalt.err (!%p3189_p1)
}
  0x2b   :  { %71 = dma.hbm_to_vmem [thread:$0]  %s5300_s3, 48, %s3496_s24, [#allocation10]  }
  0x2c   :  { %s3411_s30 = smov [#allocation12]   ;;  %s3412_s14 = smov [#allocation2]  }
  0x2d   :  { %s90_s13 = sshll.u32 %s3411_s30, 4  ;;  %s31_s17 = sshll.u32 %s3412_s14, 4  ;;  %s91_s13 = int_to_ptr.vmem [resolvable:$true] %s90_s13  ;;  %s32_s17 = int_to_ptr.vmem [resolvable:$true] %s31_s17 }
  0x2e   :  { %s3193_s20 = scalar_lea.hbm %s5302_s5, 16 }
  0x2f   :  { %p3194_p2 = scmp.ne.s32.totalorder %s5302_s5, %s3193_s20  ;;  %p3197_p3 = scmp.lt.u32.totalorder %s3193_s20, %s5302_s5 }
  0x31   :  { %p3199_p4 = pnand %p3197_p3, %p3194_p2 }
  0x33   :  { %3202 = shalt.err (!%p3199_p4)
}
  0x34   :  { %s3203_s3 = scalar_lea.vmem %s91_s13, 16  ;;  %s3207_s24 = scalar_lea.vmem %s91_s13, 32 }
  0x35   :  { %p3204_p5 = scmp.ne.s32.totalorder %s91_s13, %s3203_s3  ;;  %p3208_p6 = scmp.lt.s32.totalorder %s91_s13, %s91_s13 }
  0x36   :  { %p3209_p7 = scmp.lt.s32.totalorder %s3207_s24, %s3203_s3 }
  0x38   :  { %p3210_p8 = por %p3209_p7, %p3208_p6 }
  0x3a   :  { %p3211_p9 = pnand %p3210_p8, %p3204_p5 }
  0x3c   :  { %3214 = shalt.err (!%p3211_p9)
}
  0x3d   :  { %93 = dma.hbm_to_vmem [thread:$0]  %s5302_s5, 16, %s91_s13, [#allocation13]  }
  0x3e   :  { %s3215_s29 = scalar_lea.hbm %s5304_s7, 16 }
  0x3f   :  { %p3216_p10 = scmp.ne.s32.totalorder %s5304_s7, %s3215_s29  ;;  %p3219_p11 = scmp.lt.u32.totalorder %s3215_s29, %s5304_s7 }
  0x41   :  { %p3221_p12 = pnand %p3219_p11, %p3216_p10 }
  0x43   :  { %3224 = shalt.err (!%p3221_p12)
}
  0x44   :  { %s3413_s20 = smov [#allocation15]   ;;  %s3225_s25 = scalar_lea.hbm %s5297_s0, 256 }
  0x45   :  { %109 = dma.hbm_to_smem %s5304_s7, 16, %s3413_s20, [#allocation16]  }
  0x46   :  { %p3226_p13 = scmp.ne.s32.totalorder %s5297_s0, %s3225_s25  ;;  %p3229_p0 = scmp.lt.u32.totalorder %s3225_s25, %s5297_s0 }
  0x48   :  { %p3231_p1 = pnand %p3229_p0, %p3226_p13 }
  0x4a   :  { %3234 = shalt.err (!%p3231_p1)
}
  0x4b   :  { %s3235_s28 = scalar_lea.vmem %s32_s17, 256  ;;  %p3240_p3 = scmp.lt.s32.totalorder %s32_s17, %s32_s17 }
  0x4c   :  { %p3236_p2 = scmp.ne.s32.totalorder %s32_s17, %s3235_s28  ;;  %p3241_p4 = scmp.lt.s32.totalorder %s3235_s28, %s3235_s28 }
  0x4e   :  { %p3242_p5 = por %p3241_p4, %p3240_p3 }
  0x50   :  { %p3243_p6 = pnand %p3242_p5, %p3236_p2 }
  0x52   :  { %3246 = shalt.err (!%p3243_p6)
}
  0x53   :  { %37 = dma.hbm_to_vmem [thread:$0]  %s5297_s0, 256, %s32_s17, [#allocation3], %s5422_s15, %s5422_s15, %s5424_s16  }
  0x54   :  { %s3414_s22 = smov [#allocation8]   ;;  %s3247_s18 = scalar_lea.hbm %s5299_s2, 768 }
  0x55   :  { %s55_s29 = sshll.u32 %s3414_s22, 4  ;;  %p3248_p7 = scmp.ne.s32.totalorder %s5299_s2, %s3247_s18  ;;  %s56_s29 = int_to_ptr.vmem [resolvable:$true] %s55_s29 }
  0x56   :  { %p3251_p8 = scmp.lt.u32.totalorder %s3247_s18, %s5299_s2 }
  0x58   :  { %p3253_p9 = pnand %p3251_p8, %p3248_p7 }
  0x5a   :  { %3256 = shalt.err (!%p3253_p9)
}
  0x5b   :  { %s3257_s5 = scalar_lea.vmem %s56_s29, 768  ;;  %p3262_p11 = scmp.lt.s32.totalorder %s56_s29, %s56_s29 }
  0x5c   :  { %p3258_p10 = scmp.ne.s32.totalorder %s56_s29, %s3257_s5  ;;  %p3263_p12 = scmp.lt.s32.totalorder %s3257_s5, %s3257_s5 }
  0x5e   :  { %p3264_p13 = por %p3263_p12, %p3262_p11 }
  0x60   :  { %p3265_p0 = pnand %p3264_p13, %p3258_p10 }
  0x62   :  { %3268 = shalt.err (!%p3265_p0)
}
  0x63   :  { %s3415_s0 = smov 192   ;;  %s3416_s17 = smov 12  }
  0x64   :  { %61 = dma.hbm_to_vmem [thread:$0]  %s5299_s2, 768, %s56_s29, [#allocation7], %s3415_s0, %s3415_s0, %s3416_s17  }
  0x65   :  { %s3417_s26 = smov [#allocation11]   ;;  %s3269_s28 = scalar_lea.hbm %s5301_s4, 1024 }
  0x66   :  { %s77_s3 = sshll.u32 %s3417_s26, 4  ;;  %p3270_p1 = scmp.ne.s32.totalorder %s5301_s4, %s3269_s28  ;;  %s78_s3 = int_to_ptr.vmem [resolvable:$true] %s77_s3 }
  0x67   :  { %p3273_p2 = scmp.lt.u32.totalorder %s3269_s28, %s5301_s4 }
  0x69   :  { %p3275_p3 = pnand %p3273_p2, %p3270_p1 }
  0x6b   :  { %3278 = shalt.err (!%p3275_p3)
}
  0x6c   :  { %s3279_s14 = scalar_lea.vmem %s78_s3, 1024  ;;  %p3284_p5 = scmp.lt.s32.totalorder %s78_s3, %s78_s3 }
  0x6d   :  { %p3280_p4 = scmp.ne.s32.totalorder %s78_s3, %s3279_s14  ;;  %p3285_p6 = scmp.lt.s32.totalorder %s3279_s14, %s3279_s14 }
  0x6f   :  { %p3286_p7 = por %p3285_p6, %p3284_p5 }
  0x71   :  { %p3287_p8 = pnand %p3286_p7, %p3280_p4 }
  0x73   :  { %3290 = shalt.err (!%p3287_p8)
}
  0x74   :  { %s5426_s2 = smov 64   ;;  %s3419_s29 = smov 4  }
  0x75   :  { %83 = dma.hbm_to_vmem [thread:$0]  %s5301_s4, 1024, %s78_s3, [#allocation10], %s5426_s2, %s5426_s2, %s3419_s29  }
  0x76   :  { %s3291_s23 = scalar_lea.hbm %s5303_s6, 16 }
  0x77   :  { %p3292_p9 = scmp.ne.s32.totalorder %s5303_s6, %s3291_s23  ;;  %p3295_p10 = scmp.lt.u32.totalorder %s3291_s23, %s5303_s6 }
  0x79   :  { %p3297_p11 = pnand %p3295_p10, %p3292_p9 }
  0x7b   :  { %3300 = shalt.err (!%p3297_p11)
}
  0x7c   :  { %s3420_s25 = smov [#allocation14]   ;;  %s3301_s27 = scalar_lea.hbm %s5305_s8, 64 }
  0x7d   :  { %101 = dma.hbm_to_smem %s5303_s6, 16, %s3420_s25, [#allocation5]  }
  0x7e   :  { %p3302_p12 = scmp.ne.s32.totalorder %s5305_s8, %s3301_s27  ;;  %p3305_p13 = scmp.lt.u32.totalorder %s3301_s27, %s5305_s8 }
  0x80   :  { %p3307_p0 = pnand %p3305_p13, %p3302_p12 }
  0x82   :  { %3310 = shalt.err (!%p3307_p0)
}
  0x83   :  { %s3421_s30 = smov [#allocation17]   ;;  %s3311_s19 = scalar_lea.hbm %s5306_s9, 16 }
  0x84   :  { %117 = dma.hbm_to_smem %s5305_s8, 64, %s3421_s30, [#allocation16]  }
  0x85   :  { %p3312_p1 = scmp.ne.s32.totalorder %s5306_s9, %s3311_s19  ;;  %p3315_p2 = scmp.lt.u32.totalorder %s3311_s19, %s5306_s9 }
  0x87   :  { %p3317_p3 = pnand %p3315_p2, %p3312_p1 }
  0x89   :  { %3320 = shalt.err (!%p3317_p3)
}
  0x8a   :  { %s3422_s0 = smov [#allocation18]   ;;  %s3423_s8 = smov [#allocation20]  }
  0x8b   :  { %125 = dma.hbm_to_smem %s5306_s9, 16, %s3422_s0, [#allocation19]  }
  0x8c   :  { %s132_s25 = sshll.u32 %s3423_s8, 4  ;;  %s3424_s26 = smov [#allocation21]   ;;  %s133_s25 = int_to_ptr.vmem [resolvable:$true] %s132_s25 }
  0x8d   :  { %s142_s24 = sshll.u32 %s3424_s26, 4  ;;  %s3321_s27 = scalar_lea.hbm %s5307_s10, 16  ;;  %s143_s24 = int_to_ptr.vmem [resolvable:$true] %s142_s24 }
  0x8e   :  { %p3322_p4 = scmp.ne.s32.totalorder %s5307_s10, %s3321_s27  ;;  %p3325_p5 = scmp.lt.u32.totalorder %s3321_s27, %s5307_s10 }
  0x90   :  { %p3327_p6 = pnand %p3325_p5, %p3322_p4 }
  0x92   :  { %3330 = shalt.err (!%p3327_p6)
}
  0x93   :  { %s3331_s9 = scalar_lea.vmem %s133_s25, 16  ;;  %s3335_s30 = scalar_lea.vmem %s133_s25, 32 }
  0x94   :  { %p3332_p7 = scmp.ne.s32.totalorder %s133_s25, %s3331_s9  ;;  %p3336_p8 = scmp.lt.s32.totalorder %s133_s25, %s133_s25 }
  0x95   :  { %p3337_p9 = scmp.lt.s32.totalorder %s3335_s30, %s3331_s9 }
  0x97   :  { %p3338_p10 = por %p3337_p9, %p3336_p8 }
  0x99   :  { %p3339_p11 = pnand %p3338_p10, %p3332_p7 }
  0x9b   :  { %3342 = shalt.err (!%p3339_p11)
}
  0x9c   :  { %135 = dma.hbm_to_vmem [thread:$0]  %s5307_s10, 16, %s133_s25, [#allocation13]  }
  0x9d   :  { %s3343_s19 = scalar_lea.hbm %s5308_s11, 16 }
  0x9e   :  { %p3344_p12 = scmp.ne.s32.totalorder %s5308_s11, %s3343_s19  ;;  %p3347_p13 = scmp.lt.u32.totalorder %s3343_s19, %s5308_s11 }
  0xa0   :  { %p3349_p0 = pnand %p3347_p13, %p3344_p12 }
  0xa2   :  { %3352 = shalt.err (!%p3349_p0)
}
  0xa3   :  { %s3353_s0 = scalar_lea.vmem %s143_s24, 16  ;;  %s3357_s17 = scalar_lea.vmem %s143_s24, 32 }
  0xa4   :  { %p3354_p1 = scmp.ne.s32.totalorder %s143_s24, %s3353_s0  ;;  %p3358_p2 = scmp.lt.s32.totalorder %s143_s24, %s143_s24 }
  0xa5   :  { %p3359_p3 = scmp.lt.s32.totalorder %s3357_s17, %s3353_s0 }
  0xa7   :  { %p3360_p4 = por %p3359_p3, %p3358_p2 }
  0xa9   :  { %p3361_p5 = pnand %p3360_p4, %p3354_p1 }
  0xab   :  { %3364 = shalt.err (!%p3361_p5)
}
  0xac   :  { %145 = dma.hbm_to_vmem [thread:$0]  %s5308_s11, 16, %s143_s24, [#allocation22]  }
  0xad   :  { %3387 = dma.done.wait [#allocation3], 256  }
  0xae   :  { %3388 = vsyncadd [#allocation3], 4294967040 }
  0xaf   :  { %3389 = dma.done.wait [#allocation7], 1024  }
  0xb0   :  { %3390 = vsyncadd [#allocation7], 4294966272 }
  0xb1   :  { %3391 = dma.done.wait [#allocation10], 1072  }
  0xb2   :  { %3392 = vsyncadd [#allocation10], 4294966224 }
  0xb3   :  { %3393 = dma.done.wait [#allocation13], 16  }
  0xb4   :  { %3394 = vsyncadd [#allocation13], 4294967280 }
  0xb5   :  { %3395 = dma.done.wait [#allocation5], 16  }
  0xb6   :  { %3396 = vsyncadd [#allocation5], 4294967280 }
  0xb7   :  { %3397 = dma.done.wait [#allocation16], 80  }
  0xb8   :  { %3398 = vsyncadd [#allocation16], 4294967216 }
  0xb9   :  { %3399 = dma.done.wait [#allocation19], 16  }
  0xba   :  { %3400 = vsyncadd [#allocation19], 4294967280 }
  0xbb   :  { %3401 = dma.done.wait [#allocation13], 16  }
  0xbc   :  { %3402 = vsyncadd [#allocation13], 4294967280 }
  0xbd   :  { %3403 = dma.done.wait [#allocation22], 16  }
  0xbe   :  { %3404 = vsyncadd [#allocation22], 4294967280 }
  0xbf   :  { %182 = sfence }
  0xc0   :  { %v3095_v0 = vld [vmem:[#allocation8 + $0x4] ss:$12 sps:$4 sm:$0xff]   ;;  %v3097_v1 = vld [vmem:[#allocation8] ss:$12 sps:$4 sm:$0xff]   ;;  %v3425_v2 = vmov 0   ;;  %v5310_v6 = vmov 0.0   ;;  %v199_v11 = vlaneseq }
  0xc1   :  { %282 = vmatprep.mubr.bf16.mxu0 %v3425_v2  ;;  %250 = vmatprep.subr.bf16.mxu0 %v3095_v0  ;;  %v3098_v3 = vld [vmem:[#allocation8 + $0x1c] ss:$12 sps:$4 sm:$0xff]   ;;  %v3100_v4 = vld [vmem:[#allocation8 + $0x18] ss:$12 sps:$4 sm:$0xff]   ;;  %vm246_vm0 = vcmask 261120   ;;  %vm3427_vm1 = vmmov 0  }
  0xc2   :  { %v184_v5 = vld [vmem:[#allocation2] sm:$0xff]  ;;  %2935 = vmatprep.subr.bf16.mxu1 %v5310_v6  ;;  %251 = vmatpush1.bf16.msra.mxu0 %v3097_v1  ;;  %v185_v7 = vld [vmem:[#allocation2 + $0x8] sm:$0xff]  ;;  %v3668_v12 = vshrl.u32 %v199_v11, 7  ;;  %v3671_v14 = vld [vmem:[#allocation9] sm:$0x7]  ;;  %s3428_s11 = smov 96  }
  0xc3   :  { %252 = vmatprep.subr.bf16.mxu0 %v3098_v3  ;;  %v3101_v8 = vld [vmem:[#allocation8 + $0x8] ss:$12 sps:$4 sm:$0xff]   ;;  %v188_v9 = vpack.c.bf16 %v185_v7, %v184_v5  ;;  %v3102_v10 = vld [vmem:[#allocation8 + $0x20] ss:$12 sps:$4 sm:$0xff]   ;;  %2939 = vmatprep.mubr.msk.bf16.mxu1 %vm3427_vm1, %v5310_v6  ;;  %s334_s8 = sld [smem:[#allocation14]]  ;;  %s2668_s25 = sld [smem:[#allocation14 + $0x1]] }
  0xc4   :  { %2936 = vmatpush3.bf16.msra.mxu1 %v3101_v8  ;;  %v205_v13 = vsub.s32 1, %v3668_v12  ;;  %v201_v16 = vsub.s32 0, %v3668_v12  ;;  %s3700_s26 = sld [smem:[#allocation15]]  ;;  %s3702_s24 = sld [smem:[#allocation15 + $0x1]]  ;;  %v3706_v32 = vld [vmem:[#allocation6] sm:$0xff]  ;;  %v3720_v39 = vld [vmem:[#allocation6 + $0x8] sm:$0xff] }
  0xc5   :  { %2937 = vmatprep.subr.bf16.mxu1 %v5310_v6  ;;  %s3704_s4 = sld [smem:[#allocation14 + $0x2]]  ;;  %s3710_s27 = sld [smem:[#allocation14 + $0x3]]  ;;  %v209_v55 = vsub.s32 2, %v3668_v12  ;;  %vm1556_vm2 = vcmask 1043456   ;;  %vm1532_vm3 = vcmask 64512  }
  0xc6   :  { %253 = vmatpush1.bf16.msra.mxu0 %v3100_v4  ;;  %v206_v15 = vrot.slane %v3671_v14, %v205_v13  ;;  %v202_v22 = vrot.slane %v3671_v14, %v201_v16  ;;  %s3708_s3 = sld [smem:[#allocation15 + $0x2]]  ;;  %s3713_s28 = sld [smem:[#allocation17]] }
  0xc7   :  { %2943 = vmatprep.subr.bf16.mxu0 %v5310_v6  ;;  %s3718_s7 = sld [smem:[#allocation17 + $0x1]]  ;;  %s3723_s1 = sld [smem:[#allocation15 + $0x3]]  ;;  %v210_v5 = vrot.slane %v3671_v14, %v209_v55 }
  0xc8   :  { %2938 = vmatpush3.bf16.msra.mxu1 %v3102_v10  ;;  %s3725_s22 = sld [smem:[#allocation14 + $0x4]]  ;;  %s3731_s9 = sld [smem:[#allocation17 + $0x2]] }
  0xc9   :  { %2663 = vmatmul.mubr.msk.bf16.vlgmr.msra.gmra.mrb[0].mxu0 %vm246_vm0, %v188_v9  ;;  %2949 = vmatprep.subr.bf16.mxu1 %v5310_v6  ;;  %v335_v33 = vstv %s334_s8  ;;  %v369_v34 = vstv %s2668_s25  ;;  %s3739_s30 = sld [smem:[#allocation15 + $0x4]]  ;;  %s3741_s14 = sld [smem:[#allocation14 + $0x5]] }
  0xca   :  { %2945 = vmatprep.mubr.msk.bf16.mxu0 %vm3427_vm1, %v5310_v6  ;;  %v336_v35 = vmul.f32 %v335_v33, %v3706_v32  ;;  %v370_v36 = vmul.f32 %v369_v34, %v3706_v32  ;;  %v339_v37 = vstv %s3700_s26  ;;  %v373_v38 = vstv %s3702_s24  ;;  %s3748_s29 = sld [smem:[#allocation17 + $0x3]]  ;;  %s3750_s6 = sld [smem:[#allocation15 + $0x5]] }
  0xcb   :  { %2940 = vmatmul.mubr.msk.bf16.vlgmr.msra.gmra.mrb[0].mxu1 %vm246_vm0, %v188_v9  ;;  %v403_v40 = vstv %s3704_s4  ;;  %v337_v43 = vmul.f32 %v335_v33, %v3720_v39  ;;  %v371_v44 = vmul.f32 %v369_v34, %v3720_v39  ;;  %v437_v47 = vstv %s3710_s27  ;;  %s3755_s18 = sld [smem:[#allocation14 + $0x6]]  ;;  %s3757_s19 = sld [smem:[#allocation14 + $0x7]] }
  0xcc   :  { %2951 = vmatprep.mubr.msk.bf16.mxu1 %vm3427_vm1, %v5310_v6  ;;  %v340_v41 = vadd.f32 %v339_v37, %v336_v35  ;;  %v374_v42 = vadd.f32 %v373_v38, %v370_v36  ;;  %v404_v45 = vmul.f32 %v403_v40, %v3706_v32  ;;  %v407_v46 = vstv %s3708_s3  ;;  %s3769_s20 = sld [smem:[#allocation17 + $0x4]]  ;;  %s3773_s21 = sld [smem:[#allocation15 + $0x6]] }
  0xcd   :  { %v345_v49 = vstv %s3713_s28  ;;  %v379_v51 = vstv %s3718_s7  ;;  %v341_v52 = vadd.f32 %v339_v37, %v337_v43  ;;  %v375_v53 = vadd.f32 %v373_v38, %v371_v44  ;;  %s3783_s23 = sld [smem:[#allocation15 + $0x7]]  ;;  %s3787_s5 = sld [smem:[#allocation14 + $0x8]] }
  0xce   :  { %v3734_v48 = vmax.f32 %v340_v41, 0.0  ;;  %v3737_v50 = vmax.f32 %v374_v42, 0.0  ;;  %v405_v54 = vmul.f32 %v403_v40, %v3720_v39  ;;  %v408_v56 = vadd.f32 %v407_v46, %v404_v45  ;;  %s3790_s0 = sld [smem:[#allocation17 + $0x5]]  ;;  %s3803_s17 = sld [smem:[#allocation15 + $0x8]] }
  0xcf   :  { %v438_v57 = vmul.f32 %v437_v47, %v3706_v32  ;;  %v441_v59 = vstv %s3723_s1  ;;  %v471_v63 = vstv %s3725_s22  ;;  %v3759_v1 = vmax.f32 %v341_v52, 0.0  ;;  %s3809_s10 = sld [smem:[#allocation14 + $0x9]]  ;;  %s3812_s13 = sld [smem:[#allocation17 + $0x6]] }
  0xd0   :  { %v346_v61 = vmul.f32 %v345_v49, %v3734_v48  ;;  %v380_v62 = vmul.f32 %v379_v51, %v3737_v50  ;;  %v3761_v2 = vmax.f32 %v375_v53, 0.0  ;;  %v409_v3 = vadd.f32 %v407_v46, %v405_v54  ;;  %s3828_s8 = sld [smem:[#allocation15 + $0x9]]  ;;  %s3831_s25 = sld [smem:[#allocation17 + $0x7]] }
  0xd1   :  { %5460 = vst [vmem:[#allocation35_spill] sm:$0xff] %v3759_v1  ;;  %v439_v4 = vmul.f32 %v437_v47, %v3720_v39  ;;  %v3765_v8 = vmax.f32 %v408_v56, 0.0  ;;  %v442_v9 = vadd.f32 %v441_v59, %v438_v57  ;;  %v413_v10 = vstv %s3731_s9  ;;  %s3833_s26 = sld [smem:[#allocation14 + $0xa]]  ;;  %s3843_s24 = sld [smem:[#allocation17 + $0x8]] }
  0xd2   :  { %5461 = vst [vmem:[#allocation36_spill] sm:$0xff] %v3761_v2  ;;  %v472_v11 = vmul.f32 %v471_v63, %v3706_v32  ;;  %v382_v12 = vadd.f32 %v380_v62, %v346_v61  ;;  %v475_v13 = vstv %s3739_s30  ;;  %v473_v16 = vmul.f32 %v471_v63, %v3720_v39  ;;  %s3849_s4 = sld [smem:[#allocation14 + $0xb]]  ;;  %s3852_s3 = sld [smem:[#allocation15 + $0xa]] }
  0xd3   :  { %v347_v14 = vmul.f32 %v345_v49, %v3759_v1  ;;  %v539_v33 = vstv %s3755_s18  ;;  %v573_v34 = vstv %s3757_s19  ;;  %v481_v46 = vstv %s3769_s20  ;;  %s3859_s27 = sld [smem:[#allocation17 + $0x9]]  ;;  %s3865_s28 = sld [smem:[#allocation15 + $0xb]] }
  0xd4   :  { %v477_v35 = vadd.f32 %v475_v13, %v473_v16  ;;  %v540_v49 = vmul.f32 %v539_v33, %v3706_v32  ;;  %v574_v52 = vmul.f32 %v573_v34, %v3706_v32  ;;  %v541_v57 = vmul.f32 %v539_v33, %v3720_v39  ;;  %s3867_s7 = sld [smem:[#allocation14 + $0xc]]  ;;  %s3883_s22 = sld [smem:[#allocation14 + $0xd]] }
  0xd5   :  { %s3881_s1 = sld [smem:[#allocation15 + $0xc]]  ;;  %s3886_s9 = sld [smem:[#allocation17 + $0xa]] }
  0xd6   :  { %v3815_v53 = vmax.f32 %v477_v35, 0.0  ;;  %s3899_s30 = sld [smem:[#allocation15 + $0xd]]  ;;  %s3917_s18 = sld [smem:[#allocation14 + $0xf]] }
  0xd7   :  { %s3920_s19 = sld [smem:[#allocation15 + $0xe]]  ;;  %s3927_s20 = sld [smem:[#allocation17 + $0xd]] }
  0xd8   :  { %5466 = vst [vmem:[#allocation41_spill] sm:$0xff] %v3815_v53  ;;  %s4768_s15 = sld [smem:[#allocation17 + $0x11b]]  ;;  %s4774_s16 = sld [smem:[#allocation17 + $0x11c]] }
  0xd9   :  { %s4786_s12 = sld [smem:[#allocation17 + $0x11e]] }
  0xde   :  { %5551 = sst [smem:[#allocation75_spill]] %s4768_s15 }
 0x19c   :  { %v284_v17 = vpop.f32.mrb[0].mxu0 }
 0x19d   :  { %v286_v18 = vpop.f32.mrb[1].mxu0  ;;  %v285_v27 = vadd.f32 %v284_v17, %v202_v22  ;;  %v381_v17 = vmul.f32 %v379_v51, %v3761_v2  ;;  %v543_v51 = vstv %s3773_s21  ;;  %s3933_s21 = sld [smem:[#allocation15 + $0xf]] }
 0x19e   :  { %v287_v19 = vadd.f32 %v286_v18, %v206_v15  ;;  %v288_v20 = vpop.f32.mrb[2].mxu0  ;;  %v327_v58 = vpop.f32.mrb[0].mxu1  ;;  %v3778_v18 = vmax.f32 %v409_v3, 0.0  ;;  %v607_v3 = vstv %s3787_s5  ;;  %s3949_s5 = sld [smem:[#allocation15 + $0x10]] }
 0x19f   :  { %v290_v21 = vpop.f32.mrb[3].mxu0  ;;  %v289_v29 = vadd.f32 %v288_v20, %v202_v22  ;;  %v3688_v30 = vpack.c.bf16 %v285_v27, %v285_v27  ;;  %v2941_v60 = vpop.f32.mrb[1].mxu1  ;;  %v328_v20 = vadd.f32 %v327_v58, %v210_v5  ;;  %v414_v22 = vmul.f32 %v413_v10, %v3765_v8 }
 0x1a0   :  { %v3676_v23 = vpack.c.bf16 %v287_v19, %v287_v19  ;;  %v291_v24 = vadd.f32 %v290_v21, %v206_v15  ;;  %v330_v0 = vpop.f32.mrb[2].mxu1  ;;  %v505_v15 = vstv %s3741_s14  ;;  %5462 = vst [vmem:[#allocation37_spill] sm:$0xff] %v3778_v18  ;;  %v443_v19 = vadd.f32 %v441_v59, %v439_v4  ;;  %s3901_s14 = sld [smem:[#allocation17 + $0xb]] }
 0x1a1   :  { %v3690_v31 = vpack.c.bf16 %v289_v29, %v289_v29  ;;  %v2942_v7 = vpop.f32.mrb[3].mxu1  ;;  %v331_v21 = vadd.f32 %v330_v0, %v210_v5  ;;  %v476_v27 = vadd.f32 %v475_v13, %v472_v11  ;;  %v509_v29 = vstv %s3750_s6  ;;  %s3911_s6 = sld [smem:[#allocation17 + $0xc]] }
 0x1a2   :  { %v3678_v25 = vpack.c.bf16 %v291_v24, %v291_v24  ;;  %v1444_v26 = vsel %vm246_vm0, %v3676_v23, 0  ;;  %v3781_v24 = vmax.f32 %v442_v9, 0.0  ;;  %v383_v36 = vadd.f32 %v381_v17, %v347_v14 }
 0x1a3   :  { %2944 = vmatpush3.bf16.xpose.msra.mxu0 %v1444_v26  ;;  %v447_v26 = vstv %s3748_s29  ;;  %v415_v37 = vmul.f32 %v413_v10, %v3778_v18  ;;  %v3795_v38 = vmax.f32 %v443_v19, 0.0  ;;  %v507_v40 = vmul.f32 %v505_v15, %v3720_v39  ;;  %s3903_s29 = sld [smem:[#allocation14 + $0xe]] }
 0x1a4   :  { %5459 = vst [vmem:[#allocation34_spill] sm:$0xff] %v3678_v25  ;;  %1773 = vrot.lane.b32.xlu1 %v3678_v25, %s3428_s11  ;;  %v1490_v28 = vsel %vm246_vm0, %v3678_v25, 0  ;;  %2955 = vmatprep.subr.bf16.mxu0 %v5310_v6  ;;  %v3798_v41 = vpack.c.bf16 %v328_v20, %v328_v20  ;;  %v3800_v42 = vpack.c.bf16 %v331_v21, %v331_v21  ;;  %v3805_v45 = vmax.f32 %v476_v27, 0.0 }
 0x1a5   :  { %2950 = vmatpush3.bf16.xpose.msra.mxu1 %v1490_v28  ;;  %v506_v28 = vmul.f32 %v505_v15, %v3706_v32  ;;  %5463 = vst [vmem:[#allocation38_spill] sm:$0xff] %v3795_v38  ;;  %v416_v43 = vadd.f32 %v414_v22, %v382_v12  ;;  %v448_v44 = vmul.f32 %v447_v26, %v3781_v24  ;;  %v577_v59 = vstv %s3783_s23  ;;  %s3935_s23 = sld [smem:[#allocation14 + $0x10]] }
 0x1a6   :  { %2961 = vmatprep.subr.bf16.mxu1 %v5310_v6  ;;  %5464 = vst [vmem:[#allocation39_spill] sm:$0xff] %v3798_v41  ;;  %5465 = vst [vmem:[#allocation40_spill] sm:$0xff] %v3800_v42  ;;  %v417_v54 = vadd.f32 %v415_v37, %v383_v36  ;;  %v449_v55 = vmul.f32 %v447_v26, %v3795_v38  ;;  %v511_v56 = vadd.f32 %v509_v29, %v507_v40 }
 0x1a7   :  { %v510_v47 = vadd.f32 %v509_v29, %v506_v28  ;;  %v450_v58 = vadd.f32 %v448_v44, %v416_v43  ;;  %v1558_v60 = vsel %vm1556_vm2, %v3798_v41, 0  ;;  %v1604_v61 = vsel %vm1556_vm2, %v3800_v42, 0 }
 0x1a8   :  { %v482_v62 = vmul.f32 %v481_v46, %v3805_v45  ;;  %v544_v0 = vadd.f32 %v543_v51, %v540_v49  ;;  %v515_v4 = vstv %s3790_s0  ;;  %v483_v5 = vmul.f32 %v481_v46, %v3815_v53  ;;  %s3951_s0 = sld [smem:[#allocation14 + $0x11]] }
 0x1a9   :  { %v3825_v63 = vmax.f32 %v510_v47, 0.0  ;;  %v451_v7 = vadd.f32 %v449_v55, %v417_v54  ;;  %v3838_v9 = vmax.f32 %v511_v56, 0.0  ;;  %v545_v10 = vadd.f32 %v543_v51, %v541_v57 }
 0x1aa   :  { %2946 = vmatmul.mubr.msk.bf16.vlgmr.msra.gmra.mrb[4].mxu0 %vm246_vm0, %v3688_v30  ;;  %v575_v11 = vmul.f32 %v573_v34, %v3720_v39  ;;  %v578_v12 = vadd.f32 %v577_v59, %v574_v52  ;;  %v608_v13 = vmul.f32 %v607_v3, %v3706_v32  ;;  %v611_v15 = vstv %s3803_s17  ;;  %s3954_s17 = sld [smem:[#allocation17 + $0xe]] }
 0x1ab   :  { %2957 = vmatprep.mubr.msk.bf16.mxu0 %vm3427_vm1, %v5310_v6  ;;  %2956 = vmatpush3.bf16.msra.mxu0 %v1558_v60  ;;  %5467 = vst [vmem:[#allocation42_spill] sm:$0xff] %v3838_v9  ;;  %v484_v16 = vadd.f32 %v482_v62, %v450_v58  ;;  %v516_v14 = vmul.f32 %v515_v4, %v3825_v63  ;;  %v3846_v17 = vmax.f32 %v544_v0, 0.0  ;;  %v641_v19 = vstv %s3809_s10  ;;  %s3967_s10 = sld [smem:[#allocation15 + $0x11]] }
 0x1ac   :  { %2952 = vmatmul.mubr.msk.bf16.vlgmr.msra.gmra.mrb[4].mxu1 %vm246_vm0, %v3690_v31  ;;  %2967 = vmatprep.subr.bf16.mxu0 %v5310_v6  ;;  %v549_v20 = vstv %s3812_s13  ;;  %v609_v21 = vmul.f32 %v607_v3, %v3720_v39  ;;  %v485_v22 = vadd.f32 %v483_v5, %v451_v7  ;;  %v517_v26 = vmul.f32 %v515_v4, %v3838_v9  ;;  %s3969_s13 = sld [smem:[#allocation17 + $0xf]] }
 0x1ad   :  { %2963 = vmatprep.mubr.msk.bf16.mxu1 %vm3427_vm1, %v5310_v6  ;;  %2962 = vmatpush3.bf16.msra.mxu1 %v1604_v61  ;;  %v3856_v27 = vmax.f32 %v545_v10, 0.0  ;;  %v579_v28 = vadd.f32 %v577_v59, %v575_v11  ;;  %v612_v29 = vadd.f32 %v611_v15, %v608_v13  ;;  %v642_v33 = vmul.f32 %v641_v19, %v3706_v32 }
 0x1ae   :  { %2975 = vmatprep.subr.bf16.mxu1 %v5310_v6  ;;  %v518_v34 = vadd.f32 %v516_v14, %v484_v16  ;;  %v550_v35 = vmul.f32 %v549_v20, %v3846_v17  ;;  %v3862_v36 = vmax.f32 %v578_v12, 0.0  ;;  %v645_v37 = vstv %s3828_s8  ;;  %s3971_s8 = sld [smem:[#allocation14 + $0x12]] }
 0x1af   :  { %5468 = vst [vmem:[#allocation43_spill] sm:$0xff] %v3856_v27  ;;  %v583_v40 = vstv %s3831_s25  ;;  %v675_v43 = vstv %s3833_s26  ;;  %v643_v44 = vmul.f32 %v641_v19, %v3720_v39  ;;  %v519_v46 = vadd.f32 %v517_v26, %v485_v22  ;;  %s3979_s25 = sld [smem:[#allocation17 + $0x10]]  ;;  %s3985_s26 = sld [smem:[#allocation14 + $0x13]] }
 0x1b0   :  { %v551_v47 = vmul.f32 %v549_v20, %v3856_v27  ;;  %v3873_v49 = vmax.f32 %v579_v28, 0.0  ;;  %v613_v51 = vadd.f32 %v611_v15, %v609_v21  ;;  %v3875_v52 = vmax.f32 %v612_v29, 0.0 }
 0x1b1   :  { %v617_v54 = vstv %s3843_s24  ;;  %v646_v55 = vadd.f32 %v645_v37, %v642_v33  ;;  %v552_v56 = vadd.f32 %v550_v35, %v518_v34  ;;  %v584_v57 = vmul.f32 %v583_v40, %v3862_v36  ;;  %s3988_s24 = sld [smem:[#allocation15 + $0x12]] }
 0x1b2   :  { %5469 = vst [vmem:[#allocation44_spill] sm:$0xff] %v3873_v49  ;;  %v676_v58 = vmul.f32 %v675_v43, %v3706_v32  ;;  %v709_v59 = vstv %s3849_s4  ;;  %v679_v60 = vstv %s3852_s3  ;;  %v677_v61 = vmul.f32 %v675_v43, %v3720_v39  ;;  %s3995_s4 = sld [smem:[#allocation17 + $0x11]]  ;;  %s4001_s3 = sld [smem:[#allocation15 + $0x13]] }
 0x1b3   :  { %v553_v62 = vadd.f32 %v551_v47, %v519_v46  ;;  %v585_v0 = vmul.f32 %v583_v40, %v3873_v49  ;;  %v3890_v3 = vmax.f32 %v613_v51, 0.0  ;;  %v647_v4 = vadd.f32 %v645_v37, %v643_v44 }
 0x1b4   :  { %v618_v5 = vmul.f32 %v617_v54, %v3875_v52  ;;  %v3893_v7 = vmax.f32 %v646_v55, 0.0  ;;  %v651_v10 = vstv %s3859_s27  ;;  %v710_v11 = vmul.f32 %v709_v59, %v3706_v32  ;;  %s4003_s27 = sld [smem:[#allocation14 + $0x14]] }
 0x1b5   :  { %5470 = vst [vmem:[#allocation45_spill] sm:$0xff] %v3890_v3  ;;  %v586_v12 = vadd.f32 %v584_v57, %v552_v56  ;;  %v680_v13 = vadd.f32 %v679_v60, %v676_v58  ;;  %v713_v15 = vstv %s3865_s28  ;;  %v743_v16 = vstv %s3867_s7  ;;  %s4017_s28 = sld [smem:[#allocation15 + $0x14]]  ;;  %s4019_s7 = sld [smem:[#allocation14 + $0x15]] }
 0x1b6   :  { %v681_v14 = vadd.f32 %v679_v60, %v677_v61  ;;  %v587_v19 = vadd.f32 %v585_v0, %v553_v62  ;;  %v619_v20 = vmul.f32 %v617_v54, %v3890_v3  ;;  %v3906_v21 = vmax.f32 %v647_v4, 0.0 }
 0x1b7   :  { %v711_v22 = vmul.f32 %v709_v59, %v3720_v39  ;;  %v652_v26 = vmul.f32 %v651_v10, %v3893_v7  ;;  %v714_v28 = vadd.f32 %v713_v15, %v710_v11  ;;  %v744_v29 = vmul.f32 %v743_v16, %v3706_v32 }
 0x1b8   :  { %5471 = vst [vmem:[#allocation46_spill] sm:$0xff] %v3906_v21  ;;  %v620_v33 = vadd.f32 %v618_v5, %v586_v12  ;;  %v3913_v34 = vmax.f32 %v680_v13, 0.0  ;;  %v747_v35 = vstv %s3881_s1  ;;  %v777_v37 = vstv %s3883_s22  ;;  %s4022_s1 = sld [smem:[#allocation17 + $0x12]]  ;;  %s4035_s22 = sld [smem:[#allocation15 + $0x15]] }
 0x1b9   :  { %v685_v40 = vstv %s3886_s9  ;;  %v745_v43 = vmul.f32 %v743_v16, %v3720_v39  ;;  %v621_v44 = vadd.f32 %v619_v20, %v587_v19  ;;  %v653_v46 = vmul.f32 %v651_v10, %v3906_v21  ;;  %s4037_s9 = sld [smem:[#allocation17 + $0x13]] }
 0x1ba   :  { %v3924_v47 = vmax.f32 %v681_v14, 0.0  ;;  %v715_v51 = vadd.f32 %v713_v15, %v711_v22  ;;  %v748_v54 = vadd.f32 %v747_v35, %v744_v29  ;;  %v778_v55 = vmul.f32 %v777_v37, %v3706_v32 }
 0x1bb   :  { %v654_v56 = vadd.f32 %v652_v26, %v620_v33  ;;  %v686_v57 = vmul.f32 %v685_v40, %v3913_v34  ;;  %v3930_v58 = vmax.f32 %v714_v28, 0.0  ;;  %v781_v59 = vstv %s3899_s30  ;;  %s4039_s30 = sld [smem:[#allocation14 + $0x16]] }
 0x1bc   :  { %5472 = vst [vmem:[#allocation47_spill] sm:$0xff] %v3924_v47  ;;  %v719_v60 = vstv %s3901_s14  ;;  %v811_v61 = vstv %s3903_s29  ;;  %v779_v62 = vmul.f32 %v777_v37, %v3720_v39  ;;  %v655_v0 = vadd.f32 %v653_v46, %v621_v44  ;;  %s4047_s14 = sld [smem:[#allocation17 + $0x14]]  ;;  %s4053_s29 = sld [smem:[#allocation14 + $0x17]] }
 0x1bd   :  { %v687_v4 = vmul.f32 %v685_v40, %v3924_v47  ;;  %v3941_v5 = vmax.f32 %v715_v51, 0.0  ;;  %v749_v10 = vadd.f32 %v747_v35, %v745_v43  ;;  %v3943_v11 = vmax.f32 %v748_v54, 0.0 }
 0x1be   :  { %v753_v12 = vstv %s3911_s6  ;;  %v782_v13 = vadd.f32 %v781_v59, %v778_v55  ;;  %v688_v15 = vadd.f32 %v686_v57, %v654_v56  ;;  %v720_v16 = vmul.f32 %v719_v60, %v3930_v58  ;;  %s4056_s6 = sld [smem:[#allocation15 + $0x16]] }
 0x1bf   :  { %5473 = vst [vmem:[#allocation48_spill] sm:$0xff] %v3941_v5  ;;  %v812_v14 = vmul.f32 %v811_v61, %v3706_v32  ;;  %v845_v19 = vstv %s3917_s18  ;;  %v815_v20 = vstv %s3920_s19  ;;  %v783_v22 = vadd.f32 %v781_v59, %v779_v62  ;;  %s4063_s18 = sld [smem:[#allocation17 + $0x15]]  ;;  %s4069_s19 = sld [smem:[#allocation15 + $0x17]] }
 0x1c0   :  { %v689_v26 = vadd.f32 %v687_v4, %v655_v0  ;;  %v721_v28 = vmul.f32 %v719_v60, %v3941_v5  ;;  %v3957_v29 = vmax.f32 %v749_v10, 0.0  ;;  %v813_v33 = vmul.f32 %v811_v61, %v3720_v39 }
 0x1c1   :  { %v754_v35 = vmul.f32 %v753_v12, %v3943_v11  ;;  %v3961_v37 = vmax.f32 %v782_v13, 0.0  ;;  %v787_v40 = vstv %s3927_s20  ;;  %v846_v43 = vmul.f32 %v845_v19, %v3706_v32  ;;  %s4071_s20 = sld [smem:[#allocation14 + $0x18]] }
 0x1c2   :  { %5474 = vst [vmem:[#allocation49_spill] sm:$0xff] %v3957_v29  ;;  %v722_v44 = vadd.f32 %v720_v16, %v688_v15  ;;  %v816_v46 = vadd.f32 %v815_v20, %v812_v14  ;;  %v849_v51 = vstv %s3933_s21  ;;  %v879_v54 = vstv %s3935_s23  ;;  %s4085_s21 = sld [smem:[#allocation15 + $0x18]]  ;;  %s4087_s23 = sld [smem:[#allocation14 + $0x19]] }
 0x1c3   :  { %v847_v55 = vmul.f32 %v845_v19, %v3720_v39  ;;  %v723_v56 = vadd.f32 %v721_v28, %v689_v26  ;;  %v755_v57 = vmul.f32 %v753_v12, %v3957_v29  ;;  %v3975_v59 = vmax.f32 %v783_v22, 0.0 }
 0x1c4   :  { %v817_v60 = vadd.f32 %v815_v20, %v813_v33  ;;  %v788_v61 = vmul.f32 %v787_v40, %v3961_v37  ;;  %v850_v62 = vadd.f32 %v849_v51, %v846_v43  ;;  %v880_v0 = vmul.f32 %v879_v54, %v3706_v32 }
 0x1c5   :  { %5475 = vst [vmem:[#allocation50_spill] sm:$0xff] %v3975_v59  ;;  %v756_v4 = vadd.f32 %v754_v35, %v722_v44  ;;  %v3981_v10 = vmax.f32 %v816_v46, 0.0  ;;  %v883_v13 = vstv %s3949_s5  ;;  %v913_v15 = vstv %s3951_s0  ;;  %s4090_s5 = sld [smem:[#allocation17 + $0x16]]  ;;  %s4103_s0 = sld [smem:[#allocation15 + $0x19]] }
 0x1c6   :  { %v821_v16 = vstv %s3954_s17  ;;  %v881_v12 = vmul.f32 %v879_v54, %v3720_v39  ;;  %v757_v14 = vadd.f32 %v755_v57, %v723_v56  ;;  %v789_v19 = vmul.f32 %v787_v40, %v3975_v59  ;;  %s4105_s17 = sld [smem:[#allocation17 + $0x17]] }
 0x1c7   :  { %v3992_v20 = vmax.f32 %v817_v60, 0.0  ;;  %v851_v22 = vadd.f32 %v849_v51, %v847_v55  ;;  %v884_v26 = vadd.f32 %v883_v13, %v880_v0  ;;  %v914_v28 = vmul.f32 %v913_v15, %v3706_v32 }
 0x1c8   :  { %v790_v33 = vadd.f32 %v788_v61, %v756_v4  ;;  %v822_v35 = vmul.f32 %v821_v16, %v3981_v10  ;;  %v3998_v43 = vmax.f32 %v850_v62, 0.0  ;;  %v917_v44 = vstv %s3967_s10  ;;  %s4107_s10 = sld [smem:[#allocation14 + $0x1a]] }
 0x1c9   :  { %5476 = vst [vmem:[#allocation51_spill] sm:$0xff] %v3992_v20  ;;  %v855_v40 = vstv %s3969_s13  ;;  %v947_v46 = vstv %s3971_s8  ;;  %v915_v51 = vmul.f32 %v913_v15, %v3720_v39  ;;  %v791_v54 = vadd.f32 %v789_v19, %v757_v14  ;;  %s4118_s13 = sld [smem:[#allocation17 + $0x18]]  ;;  %s4122_s8 = sld [smem:[#allocation15 + $0x1a]] }
 0x1ca   :  { %v823_v55 = vmul.f32 %v821_v16, %v3992_v20  ;;  %v4009_v56 = vmax.f32 %v851_v22, 0.0  ;;  %v885_v57 = vadd.f32 %v883_v13, %v881_v12  ;;  %v4011_v60 = vmax.f32 %v884_v26, 0.0 }
 0x1cb   :  { %v889_v61 = vstv %s3979_s25  ;;  %v918_v62 = vadd.f32 %v917_v44, %v914_v28  ;;  %v824_v0 = vadd.f32 %v822_v35, %v790_v33  ;;  %v856_v4 = vmul.f32 %v855_v40, %v3998_v43  ;;  %s4124_s25 = sld [smem:[#allocation14 + $0x1b]] }
 0x1cc   :  { %5477 = vst [vmem:[#allocation52_spill] sm:$0xff] %v4009_v56  ;;  %v948_v6 = vmul.f32 %v947_v46, %v3706_v32  ;;  %v981_v25 = vstv %s3985_s26  ;;  %v951_v15 = vstv %s3988_s24  ;;  %v919_v13 = vadd.f32 %v917_v44, %v915_v51  ;;  %s4131_s26 = sld [smem:[#allocation17 + $0x19]]  ;;  %s4137_s24 = sld [smem:[#allocation14 + $0x1c]] }
 0x1cd   :  { %v825_v16 = vadd.f32 %v823_v55, %v791_v54  ;;  %v857_v12 = vmul.f32 %v855_v40, %v4009_v56  ;;  %v4025_v14 = vmax.f32 %v885_v57, 0.0  ;;  %v949_v19 = vmul.f32 %v947_v46, %v3720_v39 }
 0x1ce   :  { %v890_v22 = vmul.f32 %v889_v61, %v4011_v60  ;;  %v4029_v26 = vmax.f32 %v918_v62, 0.0  ;;  %v923_v28 = vstv %s3995_s4  ;;  %v982_v33 = vmul.f32 %v981_v25, %v3706_v32  ;;  %s4141_s4 = sld [smem:[#allocation15 + $0x1b]] }
 0x1cf   :  { %5478 = vst [vmem:[#allocation53_spill] sm:$0xff] %v4025_v14  ;;  %v858_v35 = vadd.f32 %v856_v4, %v824_v0  ;;  %v952_v42 = vadd.f32 %v951_v15, %v948_v6  ;;  %v985_v41 = vstv %s4001_s3  ;;  %v1015_v20 = vstv %s4003_s27  ;;  %s4152_s3 = sld [smem:[#allocation15 + $0x1c]]  ;;  %s4155_s27 = sld [smem:[#allocation17 + $0x1a]] }
 0x1d0   :  { %v983_v44 = vmul.f32 %v981_v25, %v3720_v39  ;;  %v859_v40 = vadd.f32 %v857_v12, %v825_v16  ;;  %v891_v46 = vmul.f32 %v889_v61, %v4025_v14  ;;  %v4043_v51 = vmax.f32 %v919_v13, 0.0 }
 0x1d1   :  { %v953_v54 = vadd.f32 %v951_v15, %v949_v19  ;;  %v924_v6 = vmul.f32 %v923_v28, %v4029_v26  ;;  %v986_v55 = vadd.f32 %v985_v41, %v982_v33  ;;  %v1016_v57 = vmul.f32 %v1015_v20, %v3706_v32 }
 0x1d2   :  { %5479 = vst [vmem:[#allocation54_spill] sm:$0xff] %v4043_v51  ;;  %v892_v62 = vadd.f32 %v890_v22, %v858_v35  ;;  %v4049_v0 = vmax.f32 %v952_v42, 0.0  ;;  %v1019_v4 = vstv %s4017_s28  ;;  %v1049_v56 = vstv %s4019_s7  ;;  %s4158_s28 = sld [smem:[#allocation14 + $0x1d]]  ;;  %s4169_s7 = sld [smem:[#allocation17 + $0x1b]] }
 0x1d3   :  { %v957_v25 = vstv %s4022_s1  ;;  %v1017_v61 = vmul.f32 %v1015_v20, %v3720_v39  ;;  %v893_v15 = vadd.f32 %v891_v46, %v859_v40  ;;  %v925_v13 = vmul.f32 %v923_v28, %v4043_v51  ;;  %s4173_s1 = sld [smem:[#allocation15 + $0x1d]] }
 0x1d4   :  { %v4060_v16 = vmax.f32 %v953_v54, 0.0  ;;  %v987_v12 = vadd.f32 %v985_v41, %v983_v44  ;;  %v1020_v42 = vadd.f32 %v1019_v4, %v1016_v57  ;;  %v1050_v19 = vmul.f32 %v1049_v56, %v3706_v32 }
 0x1d5   :  { %v926_v22 = vadd.f32 %v924_v6, %v892_v62  ;;  %v958_v33 = vmul.f32 %v957_v25, %v4049_v0  ;;  %v4066_v35 = vmax.f32 %v986_v55, 0.0  ;;  %v1053_v14 = vstv %s4035_s22  ;;  %s4175_s22 = sld [smem:[#allocation14 + $0x1e]] }
 0x1d6   :  { %5480 = vst [vmem:[#allocation55_spill] sm:$0xff] %v4060_v16  ;;  %v991_v20 = vstv %s4037_s9  ;;  %v1083_v41 = vstv %s4039_s30  ;;  %v1021_v28 = vadd.f32 %v1019_v4, %v1017_v61  ;;  %v927_v44 = vadd.f32 %v925_v13, %v893_v15  ;;  %s4183_s9 = sld [smem:[#allocation17 + $0x1c]]  ;;  %s4190_s30 = sld [smem:[#allocation15 + $0x1e]] }
 0x1d7   :  { %v959_v40 = vmul.f32 %v957_v25, %v4060_v16  ;;  %v4076_v46 = vmax.f32 %v987_v12, 0.0  ;;  %v1051_v54 = vmul.f32 %v1049_v56, %v3720_v39  ;;  %v4079_v6 = vmax.f32 %v1020_v42, 0.0 }
 0x1d8   :  { %v1025_v55 = vstv %s4047_s14  ;;  %v1054_v57 = vadd.f32 %v1053_v14, %v1050_v19  ;;  %v960_v62 = vadd.f32 %v958_v33, %v926_v22  ;;  %v992_v51 = vmul.f32 %v991_v20, %v4066_v35  ;;  %s4192_s14 = sld [smem:[#allocation14 + $0x1f]] }
 0x1d9   :  { %5481 = vst [vmem:[#allocation56_spill] sm:$0xff] %v4076_v46  ;;  %v1084_v59 = vmul.f32 %v1083_v41, %v3706_v32  ;;  %v1117_v29 = vstv %s4053_s29  ;;  %v1087_v4 = vstv %s4056_s6  ;;  %v1085_v56 = vmul.f32 %v1083_v41, %v3720_v39  ;;  %s4204_s29 = sld [smem:[#allocation17 + $0x1d]]  ;;  %s4207_s6 = sld [smem:[#allocation15 + $0x1f]] }
 0x1da   :  { %v961_v25 = vadd.f32 %v959_v40, %v927_v44  ;;  %v993_v61 = vmul.f32 %v991_v20, %v4076_v46  ;;  %v4094_v15 = vmax.f32 %v1021_v28, 0.0  ;;  %v1055_v13 = vadd.f32 %v1053_v14, %v1051_v54 }
 0x1db   :  { %v1026_v12 = vmul.f32 %v1025_v55, %v4079_v6  ;;  %v4097_v42 = vmax.f32 %v1054_v57, 0.0  ;;  %v1059_v19 = vstv %s4063_s18  ;;  %v1118_v22 = vmul.f32 %v1117_v29, %v3706_v32  ;;  %s4219_s18 = sld [smem:[#allocation17 + $0x1e]] }
 0x1dc   :  { %5482 = vst [vmem:[#allocation57_spill] sm:$0xff] %v4094_v15  ;;  %v994_v33 = vadd.f32 %v992_v51, %v960_v62  ;;  %v1088_v16 = vadd.f32 %v1087_v4, %v1084_v59  ;;  %v1121_v5 = vstv %s4069_s19  ;;  %v1151_v47 = vstv %s4071_s20  ;;  %s2850_s19 = sld [smem:[#allocation17 + $0x1f]]  ;;  %s1436_s20 = sld [smem:[#allocation18]] }
 0x1dd   :  { %v1119_v14 = vmul.f32 %v1117_v29, %v3720_v39  ;;  %v995_v20 = vadd.f32 %v993_v61, %v961_v25  ;;  %v1027_v41 = vmul.f32 %v1025_v55, %v4094_v15  ;;  %v4111_v28 = vmax.f32 %v1055_v13, 0.0 }
 0x1de   :  { %v1089_v51 = vadd.f32 %v1087_v4, %v1085_v56  ;;  %v1060_v59 = vmul.f32 %v1059_v19, %v4097_v42  ;;  %v1122_v44 = vadd.f32 %v1121_v5, %v1118_v22  ;;  %v1152_v40 = vmul.f32 %v1151_v47, %v3706_v32 }
 0x1df   :  { %5483 = vst [vmem:[#allocation58_spill] sm:$0xff] %v4111_v28  ;;  %v1028_v54 = vadd.f32 %v1026_v12, %v994_v33  ;;  %v4115_v57 = vmax.f32 %v1088_v16, 0.0  ;;  %v1155_v62 = vstv %s4085_s21  ;;  %v1185_v46 = vstv %s4087_s23  ;;  %s4274_s21 = sld [smem:[#allocation17 + $0x80]]  ;;  %s4276_s23 = sld [smem:[#allocation17 + $0x81]] }
 0x1e0   :  { %v1093_v29 = vstv %s4090_s5  ;;  %v1123_v55 = vadd.f32 %v1121_v5, %v1119_v14  ;;  %v1029_v4 = vadd.f32 %v1027_v41, %v995_v20  ;;  %v1061_v56 = vmul.f32 %v1059_v19, %v4111_v28  ;;  %s4282_s5 = sld [smem:[#allocation17 + $0x82]] }
 0x1e1   :  { %v4127_v25 = vmax.f32 %v1089_v51, 0.0  ;;  %v1153_v16 = vmul.f32 %v1151_v47, %v3720_v39  ;;  %v1156_v61 = vadd.f32 %v1155_v62, %v1152_v40  ;;  %v1186_v13 = vmul.f32 %v1185_v46, %v3706_v32 }
 0x1e2   :  { %v1062_v12 = vadd.f32 %v1060_v59, %v1028_v54  ;;  %v1094_v22 = vmul.f32 %v1093_v29, %v4115_v57  ;;  %v4134_v33 = vmax.f32 %v1122_v44, 0.0  ;;  %v1189_v15 = vstv %s4103_s0  ;;  %s4287_s0 = sld [smem:[#allocation17 + $0x83]] }
 0x1e3   :  { %5484 = vst [vmem:[#allocation59_spill] sm:$0xff] %v4127_v25  ;;  %v1127_v5 = vstv %s4105_s17  ;;  %v1219_v19 = vstv %s4107_s10  ;;  %v4143_v47 = vmax.f32 %v1123_v55, 0.0  ;;  %v1063_v14 = vadd.f32 %v1061_v56, %v1029_v4  ;;  %s4299_s17 = sld [smem:[#allocation17 + $0x84]]  ;;  %s4305_s10 = sld [smem:[#allocation17 + $0x85]] }
 0x1e4   :  { %v1095_v20 = vmul.f32 %v1093_v29, %v4127_v25  ;;  %v1157_v41 = vadd.f32 %v1155_v62, %v1153_v16  ;;  %v1187_v51 = vmul.f32 %v1185_v46, %v3720_v39  ;;  %v4147_v59 = vmax.f32 %v1156_v61, 0.0 }
 0x1e5   :  { %5485 = vst [vmem:[#allocation60_spill] sm:$0xff] %v4143_v47  ;;  %v1190_v44 = vadd.f32 %v1189_v15, %v1186_v13  ;;  %v1096_v40 = vadd.f32 %v1094_v22, %v1062_v12  ;;  %v1128_v54 = vmul.f32 %v1127_v5, %v4134_v33  ;;  %v1161_v28 = vstv %s4118_s13  ;;  %s4311_s13 = sld [smem:[#allocation17 + $0x86]] }
 0x1e6   :  { %v1220_v21 = vmul.f32 %v1219_v19, %v3706_v32  ;;  %v1223_v55 = vstv %s4122_s8  ;;  %v1253_v62 = vstv %s4124_s25  ;;  %v1221_v46 = vmul.f32 %v1219_v19, %v3720_v39  ;;  %s4317_s8 = sld [smem:[#allocation17 + $0x87]]  ;;  %s4323_s25 = sld [smem:[#allocation17 + $0x88]] }
 0x1e7   :  { %v1097_v29 = vadd.f32 %v1095_v20, %v1063_v14  ;;  %v1129_v4 = vmul.f32 %v1127_v5, %v4143_v47  ;;  %v4162_v56 = vmax.f32 %v1157_v41, 0.0  ;;  %v1191_v16 = vadd.f32 %v1189_v15, %v1187_v51 }
 0x1e8   :  { %v1162_v61 = vmul.f32 %v1161_v28, %v4147_v59  ;;  %v4165_v13 = vmax.f32 %v1190_v44, 0.0  ;;  %v1195_v12 = vstv %s4131_s26  ;;  %v1130_v22 = vadd.f32 %v1128_v54, %v1096_v40  ;;  %s4329_s26 = sld [smem:[#allocation17 + $0x89]] }
 0x1e9   :  { %5486 = vst [vmem:[#allocation61_spill] sm:$0xff] %v4162_v56  ;;  %v1224_v25 = vadd.f32 %v1223_v55, %v1220_v21  ;;  %v1254_v3 = vmul.f32 %v1253_v62, %v3706_v32  ;;  %v1287_v49 = vstv %s4137_s24  ;;  %v1257_v19 = vstv %s4141_s4  ;;  %s4335_s24 = sld [smem:[#allocation17 + $0x8a]]  ;;  %s4341_s4 = sld [smem:[#allocation17 + $0x8b]] }
 0x1ea   :  { %5487 = vst [vmem:[#allocation62_spill] sm:$0xff] %v4165_v13  ;;  %v1225_v15 = vadd.f32 %v1223_v55, %v1221_v46  ;;  %v1131_v5 = vadd.f32 %v1129_v4, %v1097_v29  ;;  %v1163_v14 = vmul.f32 %v1161_v28, %v4162_v56  ;;  %v4178_v20 = vmax.f32 %v1191_v16, 0.0 }
 0x1eb   :  { %v1255_v21 = vmul.f32 %v1253_v62, %v3720_v39  ;;  %v1196_v41 = vmul.f32 %v1195_v12, %v4165_v13  ;;  %v1288_v51 = vmul.f32 %v1287_v49, %v3706_v32  ;;  %v1164_v44 = vadd.f32 %v1162_v61, %v1130_v22 }
 0x1ec   :  { %5488 = vst [vmem:[#allocation63_spill] sm:$0xff] %v4178_v20  ;;  %v4185_v40 = vmax.f32 %v1224_v25, 0.0  ;;  %v1258_v54 = vadd.f32 %v1257_v19, %v1254_v3  ;;  %v1291_v47 = vstv %s4152_s3  ;;  %v1229_v55 = vstv %s4155_s27  ;;  %s4347_s3 = sld [smem:[#allocation17 + $0x8c]]  ;;  %s4353_s27 = sld [smem:[#allocation17 + $0x8d]] }
 0x1ed   :  { %v1321_v46 = vstv %s4158_s28  ;;  %v1289_v28 = vmul.f32 %v1287_v49, %v3720_v39  ;;  %v1165_v62 = vadd.f32 %v1163_v14, %v1131_v5  ;;  %v1197_v29 = vmul.f32 %v1195_v12, %v4178_v20  ;;  %s4359_s28 = sld [smem:[#allocation17 + $0x8e]] }
 0x1ee   :  { %5489 = vst [vmem:[#allocation64_spill] sm:$0xff] %v4185_v40  ;;  %v4196_v4 = vmax.f32 %v1225_v15, 0.0  ;;  %v1259_v25 = vadd.f32 %v1257_v19, %v1255_v21  ;;  %v1292_v16 = vadd.f32 %v1291_v47, %v1288_v51  ;;  %v1198_v3 = vadd.f32 %v1196_v41, %v1164_v44 }
 0x1ef   :  { %v1230_v61 = vmul.f32 %v1229_v55, %v4185_v40  ;;  %v4199_v22 = vmax.f32 %v1258_v54, 0.0  ;;  %v1322_v56 = vmul.f32 %v1321_v46, %v3706_v32  ;;  %v1263_v27 = vstv %s4169_s7  ;;  %s4365_s7 = sld [smem:[#allocation17 + $0x8f]] }
 0x1f0   :  { %5490 = vst [vmem:[#allocation65_spill] sm:$0xff] %v4196_v4  ;;  %v1325_v13 = vstv %s4173_s1  ;;  %v1355_v49 = vstv %s4175_s22  ;;  %v1323_v12 = vmul.f32 %v1321_v46, %v3720_v39  ;;  %v1199_v19 = vadd.f32 %v1197_v29, %v1165_v62  ;;  %s4371_s1 = sld [smem:[#allocation17 + $0x90]]  ;;  %s4377_s22 = sld [smem:[#allocation17 + $0x91]] }
 0x1f1   :  { %5491 = vst [vmem:[#allocation66_spill] sm:$0xff] %v4199_v22  ;;  %v1231_v15 = vmul.f32 %v1229_v55, %v4196_v4  ;;  %v4211_v5 = vmax.f32 %v1259_v25, 0.0  ;;  %v1293_v14 = vadd.f32 %v1291_v47, %v1289_v28  ;;  %v4213_v21 = vmax.f32 %v1292_v16, 0.0 }
 0x1f2   :  { %v1297_v41 = vstv %s4183_s9  ;;  %v1232_v51 = vadd.f32 %v1230_v61, %v1198_v3  ;;  %v1264_v44 = vmul.f32 %v1263_v27, %v4199_v22  ;;  %v1326_v54 = vadd.f32 %v1325_v13, %v1322_v56  ;;  %s4383_s9 = sld [smem:[#allocation17 + $0x92]] }
 0x1f3   :  { %5492 = vst [vmem:[#allocation67_spill] sm:$0xff] %v4213_v21  ;;  %v1356_v20 = vmul.f32 %v1355_v49, %v3706_v32  ;;  %v1359_v40 = vstv %s4190_s30  ;;  %v1389_v46 = vstv %s4192_s14  ;;  %v1357_v55 = vmul.f32 %v1355_v49, %v3720_v39  ;;  %s4389_s30 = sld [smem:[#allocation17 + $0x93]]  ;;  %s4395_s14 = sld [smem:[#allocation17 + $0x94]] }
 0x1f4   :  { %v1233_v62 = vadd.f32 %v1231_v15, %v1199_v19  ;;  %v1265_v47 = vmul.f32 %v1263_v27, %v4211_v5  ;;  %v4224_v28 = vmax.f32 %v1293_v14, 0.0  ;;  %v1327_v29 = vadd.f32 %v1325_v13, %v1323_v12 }
 0x1f5   :  { %v1298_v25 = vmul.f32 %v1297_v41, %v4213_v21  ;;  %v1266_v16 = vadd.f32 %v1264_v44, %v1232_v51  ;;  %v4227_v56 = vmax.f32 %v1326_v54, 0.0  ;;  %v1360_v3 = vadd.f32 %v1359_v40, %v1356_v20 }
 0x1f6   :  { %5493 = vst [vmem:[#allocation68_spill] sm:$0xff] %v4224_v28  ;;  %v1390_v61 = vmul.f32 %v1389_v46, %v3706_v32  ;;  %v1331_v4 = vstv %s4204_s29  ;;  %v1393_v22 = vstv %s4207_s6  ;;  %v1361_v9 = vadd.f32 %v1359_v40, %v1357_v55  ;;  %s4401_s29 = sld [smem:[#allocation17 + $0x95]]  ;;  %s4407_s6 = sld [smem:[#allocation17 + $0x96]] }
 0x1f7   :  { %5494 = vst [vmem:[#allocation69_spill] sm:$0xff] %v4227_v56  ;;  %v1267_v49 = vadd.f32 %v1265_v47, %v1233_v62  ;;  %v1299_v19 = vmul.f32 %v1297_v41, %v4224_v28  ;;  %v4233_v27 = vmax.f32 %v1327_v29, 0.0  ;;  %v1391_v13 = vmul.f32 %v1389_v46, %v3720_v39 }
 0x1f8   :  { %v1300_v12 = vadd.f32 %v1298_v25, %v1266_v16  ;;  %v1332_v15 = vmul.f32 %v1331_v4, %v4227_v56  ;;  %v4237_v14 = vmax.f32 %v1360_v3, 0.0  ;;  %v1394_v51 = vadd.f32 %v1393_v22, %v1390_v61 }
 0x1f9   :  { %v1365_v20 = vstv %s4219_s18  ;;  %v1301_v44 = vadd.f32 %v1299_v19, %v1267_v49  ;;  %v1333_v32 = vmul.f32 %v1331_v4, %v4233_v27  ;;  %v4241_v54 = vmax.f32 %v1361_v9, 0.0  ;;  %s4413_s18 = sld [smem:[#allocation17 + $0x97]] }
 0x1fa   :  { %5495 = vst [vmem:[#allocation70_spill] sm:$0xff] %v4237_v14  ;;  %v1395_v40 = vadd.f32 %v1393_v22, %v1391_v13  ;;  %v1334_v55 = vadd.f32 %v1332_v15, %v1300_v12  ;;  %v1366_v41 = vmul.f32 %v1365_v20, %v4237_v14  ;;  %v4244_v62 = vmax.f32 %v1394_v51, 0.0 }
 0x1fb   :  { %5496 = vst [vmem:[#allocation71_spill] sm:$0xff] %v4241_v54  ;;  %v1399_v47 = vstv %s2850_s19  ;;  %v1335_v39 = vadd.f32 %v1333_v32, %v1301_v44  ;;  %v1367_v46 = vmul.f32 %v1365_v20, %v4241_v54  ;;  %v1437_v22 = vstv %s1436_s20  ;;  %s4425_s19 = sld [smem:[#allocation17 + $0x98]]  ;;  %s4434_s20 = sld [smem:[#allocation17 + $0x99]] }
 0x1fc   :  { %5497 = vst [vmem:[#allocation72_spill] sm:$0xff] %v4244_v62  ;;  %v4247_v29 = vmax.f32 %v1395_v40, 0.0  ;;  %v1368_v25 = vadd.f32 %v1366_v41, %v1334_v55  ;;  %v1400_v16 = vmul.f32 %v1399_v47, %v4244_v62 }
 0x1fd   :  { %v1369_v3 = vadd.f32 %v1367_v46, %v1335_v39 }
 0x1fe   :  { %5498 = vst [vmem:[#allocation73_spill] sm:$0xff] %v4247_v29  ;;  %v1401_v9 = vmul.f32 %v1399_v47, %v4247_v29  ;;  %v1402_v4 = vadd.f32 %v1400_v16, %v1368_v25 }
 0x200   :  { %v1403_v61 = vadd.f32 %v1401_v9, %v1369_v3  ;;  %v1438_v49 = vadd.f32 %v1437_v22, %v1402_v4 }
 0x202   :  { %v1439_v19 = vadd.f32 %v1437_v22, %v1403_v61 }
 0x27d   :  { %v1480_v13 = vpop.f32.mrb[4].mxu0 }
 0x27e   :  { %v1481_v12 = vadd.f32 %v1480_v13, %v1438_v49  ;;  %v2947_v15 = vpop.f32.mrb[5].mxu0 }
 0x27f   :  { %v1483_v51 = vpop.f32.mrb[6].mxu0  ;;  %v1526_v44 = vpop.f32.mrb[4].mxu1  ;;  %v5499_v15 = vmov 0.0  }
 0x280   :  { %v1527_v20 = vadd.f32 %v1526_v44, %v1439_v19  ;;  %v2948_v32 = vpop.f32.mrb[7].mxu0  ;;  %v2953_v40 = vpop.f32.mrb[5].mxu1  ;;  %v1533_v55 = vsel %vm1532_vm3, %v1481_v12, -inf }
 0x281   :  { %v1529_v41 = vpop.f32.mrb[6].mxu1  ;;  %1534 = vmax.xlane.f32.xlu0 %v1533_v55  ;;  %v3104_v32 = vld [vmem:[#allocation11 + $0x8] sm:$0xff]   ;;  %v1774_v40 = vpop.permute.xlu1 %1773 }
 0x282   :  { %v2954_v39 = vpop.f32.mrb[7].mxu1  ;;  %v1536_v47 = vsel %vm1532_vm3, %v1527_v20, -inf }
 0x285   :  { %1537 = vmax.xlane.f32.xlu0 %v1536_v47 }
 0x29b   :  { %1721 = vrot.lane.b32.xlu0 %v3676_v23, %s3428_s11 }
 0x30e   :  { %v1535_v46 = vpop.xlane.xlu0 %1534 }
 0x30f   :  { %v1539_v25 = vsub.f32 %v1481_v12, %v1535_v46 }
 0x311   :  { %v1541_v16 = vmul.f32 1.442695, %v1539_v25 }
 0x312   :  { %v1538_v3 = vpop.xlane.xlu0 %1537 }
 0x313   :  { %3111 = vpow2.f32 %v1541_v16  ;;  %v1540_v9 = vsub.f32 %v1527_v20, %v1538_v3  ;;  %v3103_v20 = vld [vmem:[#allocation11] sm:$0xff]  }
 0x315   :  { %v1543_v4 = vmul.f32 1.442695, %v1540_v9 }
 0x316   :  { %v1722_v13 = vpop.permute.xlu0 %1721 }
 0x317   :  { %3113 = vpow2.f32 %v1543_v4  ;;  %v1727_v44 = vsel %vm246_vm0, %v1722_v13, 0 }
 0x31d   :  { %v3112_v22 = vpop.eup %3111 }
 0x31e   :  { %v1545_v61 = vsel %vm1532_vm3, %v3112_v22, 0.0  ;;  %v1551_v49 = vpack.c.bf16 %v3112_v22, %v3112_v22 }
 0x31f   :  { %1546 = vadd.xlane.f32.xlu1 %v1545_v61 }
 0x320   :  { %2958 = vmatmul.mubr.msk.bf16.vlgmr.msra.gmra.mrb[8].mxu0 %vm1532_vm3, %v1551_v49 }
 0x321   :  { %v3114_v19 = vpop.eup %3113  ;;  %2971 = vmatprep.mubr.msk.bf16.mxu0 %vm3427_vm1, %v5499_v15  ;;  %2968 = vmatpush3.bf16.msra.mxu0 %v3103_v20  ;;  %v385_v20 = vstv %s4276_s23  ;;  %s4452_s23 = sld [smem:[#allocation17 + $0x9b]] }
 0x322   :  { %v1548_v12 = vsel %vm1532_vm3, %v3114_v19, 0.0  ;;  %v1552_v51 = vpack.c.bf16 %v3114_v19, %v3114_v19  ;;  %2969 = vmatprep.subr.bf16.mxu0 %v5499_v15 }
 0x323   :  { %1549 = vadd.xlane.f32.xlu1 %v1548_v12 }
 0x324   :  { %2964 = vmatmul.mubr.msk.bf16.vlgmr.msra.gmra.mrb[8].mxu1 %vm1532_vm3, %v1552_v51  ;;  %v1779_v51 = vsel %vm246_vm0, %v1774_v40, 0 }
 0x325   :  { %2976 = vmatpush3.bf16.xpose.msra.mxu1 %v1727_v44  ;;  %2977 = vmatprep.mubr.msk.bf16.mxu1 %vm3427_vm1, %v5499_v15  ;;  %v351_v44 = vstv %s4274_s21  ;;  %s4443_s21 = sld [smem:[#allocation17 + $0x9a]] }
 0x326   :  { %2987 = vmatprep.subr.bf16.mxu1 %v5499_v15  ;;  %2970 = vmatpush3.bf16.msra.mxu0 %v3104_v32  ;;  %v352_v40 = vmul.f32 %v351_v44, %v3734_v48 }
 0x327   :  { %2981 = vmatprep.subr.bf16.mxu0 %v5499_v15 }
 0x334   :  { %1718 = vrot.lane.b32.xlu1 %v3688_v30, %s3428_s11 }
 0x338   :  { %1770 = vrot.lane.b32.xlu1 %v3690_v31, %s3428_s11 }
 0x3ac   :  { %v1547_v55 = vpop.xlane.xlu1 %1546 }
 0x3ad   :  { %3115 = vrcp.f32 %v1547_v55  ;;  %v386_v55 = vmul.f32 %v385_v20, %v3737_v50 }
 0x3b0   :  { %v1550_v41 = vpop.xlane.xlu1 %1549 }
 0x3b1   :  { %3117 = vrcp.f32 %v1550_v41  ;;  %v419_v41 = vstv %s4282_s5  ;;  %s4461_s5 = sld [smem:[#allocation17 + $0x9c]] }
 0x3b4   :  { %v1719_v39 = vpop.permute.xlu1 %1718 }
 0x3b5   :  { %2978 = vmatmul.mubr.msk.bf16.vlgmr.msra.gmra.mrb[12].mxu1 %vm246_vm0, %v1719_v39  ;;  %v388_v39 = vadd.f32 %v386_v55, %v352_v40  ;;  %v5385_v55 = vstv %s4323_s25 }
 0x3b6   :  { %2989 = vmatprep.mubr.msk.bf16.mxu1 %vm3427_vm1, %v5499_v15 }
 0x3b7   :  { %v3116_v47 = vpop.eup %3115 }
 0x3b8   :  { %v1771_v32 = vpop.permute.xlu1 %1770 }
 0x3bb   :  { %v3118_v4 = vpop.eup %3117 }
 0x3f3   :  { %v1594_v46 = vpop.f32.mrb[8].mxu0 }
 0x3f4   :  { %v1648_v25 = vmul.f32 %v3116_v47, %v1594_v46  ;;  %v2959_v16 = vpop.f32.mrb[9].mxu0  ;;  %v420_v47 = vmul.f32 %v419_v41, %v3765_v8  ;;  %v453_v46 = vstv %s4287_s0  ;;  %s4470_s0 = sld [smem:[#allocation17 + $0x9d]] }
 0x3f5   :  { %v1597_v3 = vpop.f32.mrb[10].mxu0  ;;  %v454_v16 = vmul.f32 %v453_v46, %v3781_v24 }
 0x3f6   :  { %v2960_v9 = vpop.f32.mrb[11].mxu0  ;;  %v487_v3 = vstv %s4299_s17  ;;  %s4479_s17 = sld [smem:[#allocation17 + $0x9e]] }
 0x3f7   :  { %v1640_v22 = vpop.f32.mrb[8].mxu1 }
 0x3f8   :  { %v1649_v61 = vmul.f32 %v3118_v4, %v1640_v22  ;;  %v2965_v49 = vpop.f32.mrb[9].mxu1  ;;  %v488_v4 = vmul.f32 %v487_v3, %v3805_v45  ;;  %v521_v22 = vstv %s4305_s10  ;;  %s4488_s10 = sld [smem:[#allocation17 + $0x9f]] }
 0x3f9   :  { %v1643_v19 = vpop.f32.mrb[10].mxu1  ;;  %v522_v49 = vmul.f32 %v521_v22, %v3825_v63 }
 0x3fa   :  { %v1650_v13 = vpack.c.bf16 %v1649_v61, %v1648_v25  ;;  %v2966_v12 = vpop.f32.mrb[11].mxu1  ;;  %v422_v25 = vadd.f32 %v420_v47, %v388_v39  ;;  %v555_v19 = vstv %s4311_s13  ;;  %v624_v47 = vmul.f32 %v5385_v55, %v3875_v52  ;;  %v5505_v55 = vld [vmem:[#allocation66_spill] sm:$0xff]  ;;  %s4502_s13 = sld [smem:[#allocation18 + $0x1]] }
 0x3fb   :  { %v556_v12 = vmul.f32 %v555_v19, %v3846_v17 }
 0x3fc   :  { %2972 = vmatmul.mubr.msk.bf16.vlgmr.msra.gmra.mrb[12].mxu0 %vm246_vm0, %v1650_v13  ;;  %v456_v9 = vadd.f32 %v454_v16, %v422_v25  ;;  %v5383_v25 = vstv %s4329_s26 }
 0x3fd   :  { %2982 = vmatpush3.bf16.xpose.msra.mxu0 %v1779_v51  ;;  %2983 = vmatprep.mubr.msk.bf16.mxu0 %vm3427_vm1, %v5499_v15  ;;  %v589_v51 = vstv %s4317_s8  ;;  %s4606_s8 = sld [smem:[#allocation17 + $0x101]] }
 0x3fe   :  { %2993 = vmatprep.subr.bf16.mxu0 %v5499_v15  ;;  %v490_v61 = vadd.f32 %v488_v4, %v456_v9  ;;  %v590_v40 = vmul.f32 %v589_v51, %v3862_v36  ;;  %v658_v9 = vmul.f32 %v5383_v25, %v3893_v7  ;;  %v5378_v4 = vstv %s4335_s24  ;;  %v5503_v25 = vld [vmem:[#allocation64_spill] sm:$0xff] }
 0x400   :  { %v524_v13 = vadd.f32 %v522_v49, %v490_v61  ;;  %v692_v49 = vmul.f32 %v5378_v4, %v3913_v34 }
 0x404   :  { %2984 = vmatmul.mubr.msk.bf16.vlgmr.msra.gmra.mrb[16].mxu0 %vm246_vm0, %v1771_v32  ;;  %v558_v32 = vadd.f32 %v556_v12, %v524_v13  ;;  %v5368_v13 = vstv %s4341_s4 }
 0x405   :  { %2995 = vmatprep.mubr.msk.bf16.mxu0 %vm3427_vm1, %v5499_v15 }
 0x406   :  { %v592_v39 = vadd.f32 %v590_v40, %v558_v32  ;;  %v726_v32 = vmul.f32 %v5368_v13, %v3930_v58  ;;  %v5369_v40 = vstv %s4347_s3 }
 0x408   :  { %v626_v16 = vadd.f32 %v624_v47, %v592_v39  ;;  %v760_v47 = vmul.f32 %v5369_v40, %v3943_v11 }
 0x40a   :  { %v660_v61 = vadd.f32 %v658_v9, %v626_v16  ;;  %v5370_v16 = vstv %s4353_s27 }
 0x40c   :  { %v694_v12 = vadd.f32 %v692_v49, %v660_v61  ;;  %v794_v61 = vmul.f32 %v5370_v16, %v3961_v37  ;;  %v5371_v49 = vstv %s4359_s28 }
 0x40e   :  { %v728_v39 = vadd.f32 %v726_v32, %v694_v12  ;;  %v828_v12 = vmul.f32 %v5371_v49, %v3981_v10  ;;  %v5374_v32 = vstv %s4365_s7 }
 0x410   :  { %v762_v9 = vadd.f32 %v760_v47, %v728_v39  ;;  %v862_v39 = vmul.f32 %v5374_v32, %v3998_v43  ;;  %v5372_v47 = vstv %s4371_s1 }
 0x412   :  { %v796_v13 = vadd.f32 %v794_v61, %v762_v9  ;;  %v896_v9 = vmul.f32 %v5372_v47, %v4011_v60  ;;  %v5373_v61 = vstv %s4377_s22  ;;  %v5375_v47 = vstv %s4389_s30 }
 0x414   :  { %v830_v40 = vadd.f32 %v828_v12, %v796_v13  ;;  %v930_v13 = vmul.f32 %v5373_v61, %v4029_v26  ;;  %v5376_v12 = vstv %s4383_s9  ;;  %v5377_v61 = vstv %s4395_s14 }
 0x416   :  { %v864_v16 = vadd.f32 %v862_v39, %v830_v40  ;;  %v964_v39 = vmul.f32 %v5376_v12, %v4049_v0 }
 0x418   :  { %v898_v49 = vadd.f32 %v896_v9, %v864_v16  ;;  %v998_v9 = vmul.f32 %v5375_v47, %v4066_v35 }
 0x41a   :  { %v932_v40 = vadd.f32 %v930_v13, %v898_v49  ;;  %v1032_v49 = vmul.f32 %v5377_v61, %v4079_v6  ;;  %v5379_v13 = vstv %s4401_s29  ;;  %v421_v61 = vmul.f32 %v419_v41, %v3778_v18 }
 0x41b   :  { %v1066_v12 = vmul.f32 %v5379_v13, %v4097_v42  ;;  %v5382_v41 = vstv %s4425_s19  ;;  %v5517_v18 = vstv %s4353_s27  ;;  %s4639_s27 = sld [smem:[#allocation17 + $0x107]] }
 0x41c   :  { %v966_v16 = vadd.f32 %v964_v39, %v932_v40  ;;  %v353_v40 = vmul.f32 %v351_v44, %v3759_v1  ;;  %v387_v39 = vmul.f32 %v385_v20, %v3761_v2  ;;  %v5380_v20 = vstv %s4413_s18 }
 0x41d   :  { %v5529_v1 = vstv %s4389_s30  ;;  %s4675_s30 = sld [smem:[#allocation17 + $0x10d]] }
 0x41e   :  { %v1000_v32 = vadd.f32 %v998_v9, %v966_v16  ;;  %v5381_v16 = vstv %s4407_s6  ;;  %v389_v9 = vadd.f32 %v387_v39, %v353_v40  ;;  %v1134_v40 = vmul.f32 %v5380_v20, %v4134_v33 }
 0x41f   :  { %v1100_v44 = vmul.f32 %v5381_v16, %v4115_v57  ;;  %v5501_v16 = vld [vmem:[#allocation62_spill] sm:$0xff] }
 0x420   :  { %v1034_v47 = vadd.f32 %v1032_v49, %v1000_v32  ;;  %v423_v32 = vadd.f32 %v421_v61, %v389_v9  ;;  %v455_v49 = vmul.f32 %v453_v46, %v3795_v38  ;;  %v1168_v61 = vmul.f32 %v5382_v41, %v4147_v59  ;;  %v5500_v9 = vld [vmem:[#allocation42_spill] sm:$0xff] }
 0x421   :  { %v5384_v46 = vstv %s4434_s20 }
 0x422   :  { %v1068_v4 = vadd.f32 %v1066_v12, %v1034_v47  ;;  %v457_v47 = vadd.f32 %v455_v49, %v423_v32  ;;  %v489_v12 = vmul.f32 %v487_v3, %v3815_v53  ;;  %v1202_v32 = vmul.f32 %v5384_v46, %v5501_v16  ;;  %v5502_v49 = vld [vmem:[#allocation43_spill] sm:$0xff] }
 0x423   :  { %v5386_v3 = vstv %s4443_s21  ;;  %v1405_v53 = vstv %s4488_s10  ;;  %s4756_s10 = sld [smem:[#allocation17 + $0x119]] }
 0x424   :  { %v1102_v13 = vadd.f32 %v1100_v44, %v1068_v4  ;;  %v491_v4 = vadd.f32 %v489_v12, %v457_v47  ;;  %v523_v44 = vmul.f32 %v521_v22, %v5500_v9  ;;  %v1236_v47 = vmul.f32 %v5386_v3, %v5503_v25 }
 0x425   :  { %v5387_v22 = vstv %s4452_s23 }
 0x426   :  { %v1136_v39 = vadd.f32 %v1134_v40, %v1102_v13  ;;  %v525_v13 = vadd.f32 %v523_v44, %v491_v4  ;;  %v557_v40 = vmul.f32 %v555_v19, %v5502_v49  ;;  %v1270_v4 = vmul.f32 %v5387_v22, %v5505_v55  ;;  %v5506_v44 = vld [vmem:[#allocation45_spill] sm:$0xff] }
 0x427   :  { %v5388_v19 = vstv %s4461_s5 }
 0x428   :  { %v1170_v20 = vadd.f32 %v1168_v61, %v1136_v39  ;;  %v559_v12 = vadd.f32 %v557_v40, %v525_v13  ;;  %v5504_v39 = vld [vmem:[#allocation44_spill] sm:$0xff]  ;;  %v1304_v13 = vmul.f32 %v5388_v19, %v4213_v21  ;;  %v5391_v40 = vstv %s4470_s0 }
 0x429   :  { %v591_v61 = vmul.f32 %v589_v51, %v5504_v39 }
 0x42a   :  { %v1204_v41 = vadd.f32 %v1202_v32, %v1170_v20  ;;  %v5507_v32 = vstv %s4323_s25  ;;  %s4608_s25 = sld [smem:[#allocation17 + $0x102]] }
 0x42b   :  { %v593_v20 = vadd.f32 %v591_v61, %v559_v12  ;;  %v625_v3 = vmul.f32 %v5507_v32, %v5506_v44  ;;  %v1338_v12 = vmul.f32 %v5391_v40, %v4227_v56  ;;  %v1371_v61 = vstv %s4479_s17  ;;  %v5543_v56 = vld [vmem:[#allocation65_spill] sm:$0xff]  ;;  %s4750_s17 = sld [smem:[#allocation17 + $0x118]] }
 0x42c   :  { %v1238_v46 = vadd.f32 %v1236_v47, %v1204_v41  ;;  %v5508_v41 = vld [vmem:[#allocation46_spill] sm:$0xff]  ;;  %v5509_v47 = vstv %s4329_s26  ;;  %v5511_v32 = vstv %s4335_s24  ;;  %v1372_v9 = vmul.f32 %v1371_v61, %v4237_v14  ;;  %s4612_s26 = sld [smem:[#allocation17 + $0x103]]  ;;  %s4621_s24 = sld [smem:[#allocation17 + $0x104]] }
 0x42d   :  { %v627_v51 = vadd.f32 %v625_v3, %v593_v20  ;;  %v659_v22 = vmul.f32 %v5509_v47, %v5508_v41  ;;  %v5512_v20 = vld [vmem:[#allocation48_spill] sm:$0xff]  ;;  %v1406_v40 = vmul.f32 %v1405_v53, %v4244_v62  ;;  %v5542_v14 = vstv %s4434_s20  ;;  %s4712_s20 = sld [smem:[#allocation17 + $0x113]] }
 0x42e   :  { %v1272_v49 = vadd.f32 %v1270_v4, %v1238_v46  ;;  %v5510_v4 = vld [vmem:[#allocation47_spill] sm:$0xff] }
 0x42f   :  { %v661_v46 = vadd.f32 %v659_v22, %v627_v51  ;;  %v693_v44 = vmul.f32 %v5511_v32, %v5510_v4  ;;  %v5514_v22 = vld [vmem:[#allocation49_spill] sm:$0xff]  ;;  %v5515_v51 = vstv %s4347_s3  ;;  %v5516_v4 = vld [vmem:[#allocation50_spill] sm:$0xff]  ;;  %s4633_s3 = sld [smem:[#allocation17 + $0x106]] }
 0x430   :  { %v1306_v39 = vadd.f32 %v1304_v13, %v1272_v49  ;;  %v5513_v49 = vstv %s4341_s4  ;;  %v761_v38 = vmul.f32 %v5515_v51, %v5514_v22  ;;  %v795_v2 = vmul.f32 %v5517_v18, %v5516_v4  ;;  %v5520_v18 = vld [vmem:[#allocation52_spill] sm:$0xff]  ;;  %s4627_s4 = sld [smem:[#allocation17 + $0x105]] }
 0x431   :  { %v695_v3 = vadd.f32 %v693_v44, %v661_v46  ;;  %v727_v13 = vmul.f32 %v5513_v49, %v5512_v20  ;;  %v5527_v22 = vstv %s4383_s9  ;;  %s4669_s9 = sld [smem:[#allocation17 + $0x10c]] }
 0x432   :  { %v1340_v19 = vadd.f32 %v1338_v12, %v1306_v39  ;;  %v1714_v12 = vstv %s4502_s13  ;;  %s4762_s13 = sld [smem:[#allocation17 + $0x11a]] }
 0x433   :  { %v729_v41 = vadd.f32 %v727_v13, %v695_v3 }
 0x434   :  { %v1374_v47 = vadd.f32 %v1372_v9, %v1340_v19  ;;  %v5518_v9 = vld [vmem:[#allocation51_spill] sm:$0xff]  ;;  %v5519_v19 = vstv %s4359_s28  ;;  %s4645_s28 = sld [smem:[#allocation17 + $0x108]] }
 0x435   :  { %v763_v32 = vadd.f32 %v761_v38, %v729_v41  ;;  %v829_v20 = vmul.f32 %v5519_v19, %v5518_v9  ;;  %v5521_v41 = vstv %s4365_s7  ;;  %s4651_s7 = sld [smem:[#allocation17 + $0x109]] }
 0x436   :  { %v1408_v39 = vadd.f32 %v1406_v40, %v1374_v47 }
 0x437   :  { %v797_v49 = vadd.f32 %v795_v2, %v763_v32  ;;  %v5522_v2 = vld [vmem:[#allocation53_spill] sm:$0xff]  ;;  %v5523_v32 = vstv %s4371_s1  ;;  %s4657_s1 = sld [smem:[#allocation17 + $0x10a]] }
 0x438   :  { %v1715_v44 = vadd.f32 %v1714_v12, %v1408_v39  ;;  %v863_v39 = vmul.f32 %v5521_v41, %v5520_v18  ;;  %v897_v19 = vmul.f32 %v5523_v32, %v5522_v2  ;;  %v5531_v18 = vstv %s4395_s14  ;;  %v5539_v2 = vld [vmem:[#allocation61_spill] sm:$0xff]  ;;  %s4681_s14 = sld [smem:[#allocation17 + $0x10e]]  ;;  %5550 = sst [smem:[#allocation74_spill]] %s4762_s13 }
 0x439   :  { %v831_v38 = vadd.f32 %v829_v20, %v797_v49  ;;  %v5528_v49 = vld [vmem:[#allocation56_spill] sm:$0xff] }
 0x43a   :  { %v999_v41 = vmul.f32 %v5529_v1, %v5528_v49  ;;  %v5537_v1 = vld [vmem:[#allocation60_spill] sm:$0xff] }
 0x43b   :  { %v865_v4 = vadd.f32 %v863_v39, %v831_v38  ;;  %v5530_v39 = vld [vmem:[#allocation57_spill] sm:$0xff] }
 0x43c   :  { %v1033_v32 = vmul.f32 %v5531_v18, %v5530_v39  ;;  %v5540_v18 = vstv %s4425_s19  ;;  %s4705_s19 = sld [smem:[#allocation17 + $0x112]] }
 0x43d   :  { %v899_v9 = vadd.f32 %v897_v19, %v865_v4  ;;  %v5532_v4 = vld [vmem:[#allocation39_spill] sm:$0xff]  ;;  %v1169_v39 = vmul.f32 %v5540_v18, %v5539_v2 }
 0x488   :  { %v1763_v46 = vpop.f32.mrb[12].mxu1 }
 0x489   :  { %v1764_v3 = vadd.f32 %v1763_v46, %v1715_v44  ;;  %v2979_v13 = vpop.f32.mrb[13].mxu1  ;;  %v5524_v44 = vld [vmem:[#allocation54_spill] sm:$0xff]  ;;  %v5525_v46 = vstv %s4377_s22  ;;  %s4663_s22 = sld [smem:[#allocation17 + $0x10b]] }
 0x48a   :  { %v1766_v51 = vpop.f32.mrb[14].mxu1  ;;  %v931_v13 = vmul.f32 %v5525_v46, %v5524_v44  ;;  %v5534_v46 = vstv %s4401_s29  ;;  %s4687_s29 = sld [smem:[#allocation17 + $0x10f]] }
 0x48b   :  { %v2980_v40 = vpop.f32.mrb[15].mxu1  ;;  %v1821_v47 = vsel %vm1532_vm3, %v1764_v3, -inf }
 0x48c   :  { %1822 = vmax.xlane.f32.xlu0 %v1821_v47  ;;  %v933_v51 = vadd.f32 %v931_v13, %v899_v9  ;;  %v5526_v40 = vld [vmem:[#allocation55_spill] sm:$0xff]  ;;  %v5533_v9 = vld [vmem:[#allocation58_spill] sm:$0xff] }
 0x48d   :  { %v965_v47 = vmul.f32 %v5527_v22, %v5526_v40  ;;  %v1067_v13 = vmul.f32 %v5534_v46, %v5533_v9  ;;  %v5544_v46 = vstv %s4443_s21  ;;  %s4723_s21 = sld [smem:[#allocation17 + $0x114]] }
 0x48e   :  { %v1237_v9 = vmul.f32 %v5544_v46, %v5543_v56 }
 0x48f   :  { %v967_v20 = vadd.f32 %v965_v47, %v933_v51  ;;  %v5535_v51 = vld [vmem:[#allocation59_spill] sm:$0xff]  ;;  %v5536_v47 = vstv %s4407_s6  ;;  %s4693_s6 = sld [smem:[#allocation17 + $0x110]] }
 0x490   :  { %v1101_v40 = vmul.f32 %v5536_v47, %v5535_v51 }
 0x491   :  { %v1001_v38 = vadd.f32 %v999_v41, %v967_v20  ;;  %v5538_v20 = vstv %s4413_s18  ;;  %s4699_s18 = sld [smem:[#allocation17 + $0x111]] }
 0x492   :  { %v1135_v41 = vmul.f32 %v5538_v20, %v5537_v1 }
 0x493   :  { %v1035_v19 = vadd.f32 %v1033_v32, %v1001_v38 }
 0x495   :  { %v1069_v22 = vadd.f32 %v1067_v13, %v1035_v19  ;;  %v5545_v13 = vstv %s4452_s23  ;;  %s4729_s23 = sld [smem:[#allocation17 + $0x115]] }
 0x496   :  { %v1271_v47 = vmul.f32 %v5545_v13, %v4211_v5 }
 0x497   :  { %v1103_v44 = vadd.f32 %v1101_v40, %v1069_v22  ;;  %v5546_v22 = vstv %s4461_s5  ;;  %s4738_s5 = sld [smem:[#allocation17 + $0x116]] }
 0x498   :  { %v1305_v20 = vmul.f32 %v5546_v22, %v4224_v28 }
 0x499   :  { %v1137_v49 = vadd.f32 %v1135_v41, %v1103_v44  ;;  %v5547_v41 = vstv %s4470_s0  ;;  %s4744_s0 = sld [smem:[#allocation17 + $0x117]] }
 0x49a   :  { %v1339_v18 = vmul.f32 %v5547_v41, %v4233_v27 }
 0x49b   :  { %v1171_v62 = vadd.f32 %v1169_v39, %v1137_v49  ;;  %v1373_v39 = vmul.f32 %v1371_v61, %v4241_v54  ;;  %v5548_v61 = vld [vmem:[#allocation40_spill] sm:$0xff] }
 0x4a2   :  { %1842 = vrot.lane.b32.xlu0 %v5532_v4, %s3428_s11  ;;  %v5541_v4 = vld [vmem:[#allocation63_spill] sm:$0xff] }
 0x4a3   :  { %v1203_v38 = vmul.f32 %v5542_v14, %v5541_v4 }
 0x4a5   :  { %v1205_v32 = vadd.f32 %v1203_v38, %v1171_v62  ;;  %v1407_v62 = vmul.f32 %v1405_v53, %v4247_v29 }
 0x4a7   :  { %v1239_v19 = vadd.f32 %v1237_v9, %v1205_v32 }
 0x4a9   :  { %v1273_v40 = vadd.f32 %v1271_v47, %v1239_v19 }
 0x4ab   :  { %v1307_v44 = vadd.f32 %v1305_v20, %v1273_v40 }
 0x4ad   :  { %v1341_v49 = vadd.f32 %v1339_v18, %v1307_v44 }
 0x4af   :  { %v1375_v14 = vadd.f32 %v1373_v39, %v1341_v49 }
 0x4b1   :  { %v1409_v32 = vadd.f32 %v1407_v62, %v1375_v14 }
 0x4b3   :  { %v1716_v13 = vadd.f32 %v1714_v12, %v1409_v32 }
 0x4cf   :  { %v4568_v38 = vpop.f32.mrb[12].mxu0 }
 0x4d0   :  { %v2973_v9 = vpop.f32.mrb[13].mxu0 }
 0x4d1   :  { %v4570_v46 = vpop.f32.mrb[14].mxu0 }
 0x4d2   :  { %v2974_v19 = vpop.f32.mrb[15].mxu0 }
 0x4d7   :  { %v1815_v47 = vpop.f32.mrb[16].mxu0 }
 0x4d8   :  { %v1816_v22 = vadd.f32 %v1815_v47, %v1716_v13  ;;  %v2985_v40 = vpop.f32.mrb[17].mxu0 }
 0x4d9   :  { %v1818_v20 = vpop.f32.mrb[18].mxu0 }
 0x4da   :  { %v2986_v28 = vpop.f32.mrb[19].mxu0  ;;  %v1824_v44 = vsel %vm1532_vm3, %v1816_v22, -inf  ;;  %v3105_v20 = vld [vmem:[#allocation11 + $0x10] sm:$0xff]  }
 0x4db   :  { %1825 = vmax.xlane.f32.xlu1 %v1824_v44  ;;  %v3106_v44 = vld [vmem:[#allocation11 + $0x18] sm:$0xff]  }
 0x4ec   :  { %1891 = vrot.lane.b32.xlu1 %v5548_v61, %s3428_s11  ;;  %s4604_s11 = sld [smem:[#allocation17 + $0x100]] }
 0x519   :  { %v1823_v53 = vpop.xlane.xlu0 %1822 }
 0x51a   :  { %v1827_v41 = vsub.f32 %v1764_v3, %v1823_v53 }
 0x51c   :  { %v1829_v18 = vmul.f32 1.442695, %v1827_v41 }
 0x51d   :  { %v1843_v49 = vpop.permute.xlu0 %1842 }
 0x51e   :  { %3119 = vpow2.f32 %v1829_v18  ;;  %v1848_v39 = vsel %vm1556_vm2, %v1843_v49, 0 }
 0x51f   :  { %2988 = vmatpush3.bf16.msra.mxu1 %v1848_v39 }
 0x520   :  { %2999 = vmatprep.subr.bf16.mxu1 %v5499_v15 }
 0x528   :  { %v3120_v12 = vpop.eup %3119 }
 0x529   :  { %v1833_v14 = vsel %vm1532_vm3, %v3120_v12, 0.0  ;;  %v1839_v28 = vpack.c.bf16 %v3120_v12, %v3120_v12 }
 0x52a   :  { %1834 = vadd.xlane.f32.xlu0 %v1833_v14 }
 0x52b   :  { %2990 = vmatmul.mubr.msk.bf16.vlgmr.msra.gmra.mrb[16].mxu1 %vm1532_vm3, %v1839_v28 }
 0x52c   :  { %3003 = vmatprep.mubr.msk.bf16.mxu1 %vm3427_vm1, %v5499_v15  ;;  %3000 = vmatpush3.bf16.msra.mxu1 %v3105_v20 }
 0x52d   :  { %3001 = vmatprep.subr.bf16.mxu1 %v5499_v15 }
 0x530   :  { %3002 = vmatpush3.bf16.msra.mxu1 %v3106_v44  ;;  %v5419_v44 = vstv %s4612_s26 }
 0x531   :  { %3013 = vmatprep.subr.bf16.mxu1 %v5499_v15 }
 0x540   :  { %2012 = vrot.lane.b32.xlu0 %v3676_v23, %s5426_s2 }
 0x544   :  { %2010 = vrot.lane.b32.xlu0 %v3688_v30, %s5426_s2 }
 0x568   :  { %v1826_v3 = vpop.xlane.xlu1 %1825 }
 0x569   :  { %v1828_v62 = vsub.f32 %v1816_v22, %v1826_v3  ;;  %v5549_v22 = vld [vmem:[#allocation34_spill] sm:$0xff] }
 0x56b   :  { %v1831_v9 = vmul.f32 1.442695, %v1828_v62 }
 0x56c   :  { %v1892_v32 = vpop.permute.xlu1 %1891 }
 0x56d   :  { %3121 = vpow2.f32 %v1831_v9  ;;  %v1897_v19 = vsel %vm1556_vm2, %v1892_v32, 0  ;;  %v357_v9 = vstv %s4604_s11  ;;  %v391_v32 = vstv %s4606_s8  ;;  %s5594_s11 = sld [smem:[#allocation74_spill]]  ;;  %s5597_s8 = sld [smem:[#allocation75_spill]] }
 0x56e   :  { %2994 = vmatpush3.bf16.msra.mxu0 %v1897_v19  ;;  %v358_v19 = vmul.f32 %v357_v9, %v3734_v48 }
 0x56f   :  { %3007 = vmatprep.subr.bf16.mxu0 %v5499_v15 }
 0x577   :  { %v3122_v13 = vpop.eup %3121 }
 0x578   :  { %v1836_v47 = vsel %vm1532_vm3, %v3122_v13, 0.0  ;;  %v1840_v40 = vpack.c.bf16 %v3122_v13, %v3122_v13  ;;  %v392_v13 = vmul.f32 %v391_v32, %v3737_v50 }
 0x579   :  { %1837 = vadd.xlane.f32.xlu1 %v1836_v47  ;;  %v5420_v47 = vstv %s4608_s25 }
 0x57a   :  { %2996 = vmatmul.mubr.msk.bf16.vlgmr.msra.gmra.mrb[20].mxu0 %vm1532_vm3, %v1840_v40  ;;  %v394_v40 = vadd.f32 %v392_v13, %v358_v19  ;;  %v426_v20 = vmul.f32 %v5420_v47, %v3765_v8 }
 0x57b   :  { %3009 = vmatprep.mubr.msk.bf16.mxu0 %vm3427_vm1, %v5499_v15 }
 0x58a   :  { %2062 = vrot.lane.b32.xlu1 %v5549_v22, %s5426_s2 }
 0x58e   :  { %2060 = vrot.lane.b32.xlu1 %v3690_v31, %s5426_s2  ;;  %s4780_s2 = sld [smem:[#allocation17 + $0x11d]] }
 0x5b7   :  { %v1835_v53 = vpop.xlane.xlu0 %1834 }
 0x5b8   :  { %3123 = vrcp.f32 %v1835_v53  ;;  %v428_v53 = vadd.f32 %v426_v20, %v394_v40  ;;  %v5408_v40 = vstv %s4639_s27 }
 0x5bb   :  { %v2013_v41 = vpop.permute.xlu0 %2012 }
 0x5bc   :  { %v2018_v18 = vsel %vm246_vm0, %v2013_v41, 0  ;;  %v460_v41 = vmul.f32 %v5419_v44, %v3781_v24 }
 0x5bd   :  { %3008 = vmatpush3.bf16.xpose.msra.mxu0 %v2018_v18  ;;  %v5418_v18 = vstv %s4621_s24 }
 0x5be   :  { %3019 = vmatprep.subr.bf16.mxu0 %v5499_v15 }
 0x5bf   :  { %v2011_v49 = vpop.permute.xlu0 %2010 }
 0x5c2   :  { %v3124_v39 = vpop.eup %3123 }
 0x5c4   :  { %3010 = vmatmul.mubr.msk.bf16.vlgmr.msra.gmra.mrb[24].mxu0 %vm246_vm0, %v2011_v49  ;;  %v462_v49 = vadd.f32 %v460_v41, %v428_v53  ;;  %v596_v53 = vmul.f32 %v5408_v40, %v3862_v36  ;;  %v5409_v41 = vstv %s4645_s28 }
 0x5c5   :  { %3021 = vmatprep.mubr.msk.bf16.mxu0 %vm3427_vm1, %v5499_v15 }
 0x5fe   :  { %v1884_v12 = vpop.f32.mrb[16].mxu1 }
 0x5ff   :  { %v4602_v14 = vmul.f32 %v3124_v39, %v1884_v12  ;;  %v2991_v28 = vpop.f32.mrb[17].mxu1  ;;  %v494_v39 = vmul.f32 %v5418_v18, %v3805_v45  ;;  %v5416_v12 = vstv %s4627_s4 }
 0x600   :  { %v1887_v3 = vpop.f32.mrb[18].mxu1 }
 0x601   :  { %v2992_v62 = vpop.f32.mrb[19].mxu1  ;;  %v496_v28 = vadd.f32 %v494_v39, %v462_v49  ;;  %v528_v3 = vmul.f32 %v5416_v12, %v3825_v63  ;;  %v630_v39 = vmul.f32 %v5409_v41, %v3875_v52 }
 0x602   :  { %v5411_v62 = vstv %s4633_s3 }
 0x603   :  { %v530_v19 = vadd.f32 %v528_v3, %v496_v28  ;;  %v562_v13 = vmul.f32 %v5411_v62, %v3846_v17  ;;  %v5410_v28 = vstv %s4651_s7 }
 0x605   :  { %v564_v20 = vadd.f32 %v562_v13, %v530_v19  ;;  %v664_v19 = vmul.f32 %v5410_v28, %v3893_v7  ;;  %v5413_v13 = vstv %s4657_s1 }
 0x606   :  { %v1838_v28 = vpop.xlane.xlu1 %1837 }
 0x607   :  { %v598_v49 = vadd.f32 %v596_v53, %v564_v20  ;;  %v698_v20 = vmul.f32 %v5413_v13, %v3913_v34  ;;  %v5412_v53 = vstv %s4663_s22  ;;  %3125 = vrcp.f32 %v1838_v28 }
 0x609   :  { %v632_v3 = vadd.f32 %v630_v39, %v598_v49  ;;  %v732_v49 = vmul.f32 %v5412_v53, %v3930_v58  ;;  %v5414_v39 = vstv %s4669_s9  ;;  %v5417_v53 = vstv %s4681_s14 }
 0x60b   :  { %v666_v40 = vadd.f32 %v664_v19, %v632_v3  ;;  %v766_v3 = vmul.f32 %v5414_v39, %v3943_v11  ;;  %v5415_v19 = vstv %s4675_s30 }
 0x60d   :  { %v700_v41 = vadd.f32 %v698_v20, %v666_v40  ;;  %v800_v20 = vmul.f32 %v5415_v19, %v3961_v37  ;;  %v5443_v19 = vstv %s4693_s6 }
 0x60f   :  { %v734_v62 = vadd.f32 %v732_v49, %v700_v41  ;;  %v834_v41 = vmul.f32 %v5417_v53, %v3981_v10  ;;  %v5421_v49 = vstv %s4687_s29 }
 0x611   :  { %v768_v40 = vadd.f32 %v766_v3, %v734_v62  ;;  %v868_v62 = vmul.f32 %v5421_v49, %v3998_v43  ;;  %v3126_v28 = vpop.eup %3125 }
 0x613   :  { %v802_v13 = vadd.f32 %v800_v20, %v768_v40  ;;  %v2063_v20 = vpop.permute.xlu1 %2062 }
 0x614   :  { %v2068_v49 = vsel %vm246_vm0, %v2063_v20, 0  ;;  %v5433_v20 = vstv %s4729_s23 }
 0x615   :  { %v836_v39 = vadd.f32 %v834_v41, %v802_v13  ;;  %v902_v13 = vmul.f32 %v5443_v19, %v4011_v60  ;;  %v5442_v41 = vstv %s4699_s18 }
 0x617   :  { %v870_v47 = vadd.f32 %v868_v62, %v836_v39  ;;  %v2061_v39 = vpop.permute.xlu1 %2060 }
 0x64d   :  { %v1933_v3 = vpop.f32.mrb[20].mxu0 }
 0x64e   :  { %v1942_v12 = vmul.f32 %v3126_v28, %v1933_v3  ;;  %v2997_v40 = vpop.f32.mrb[21].mxu0  ;;  %v5435_v28 = vstv %s4723_s21 }
 0x64f   :  { %v1936_v53 = vpop.f32.mrb[22].mxu0  ;;  %v1038_v40 = vmul.f32 %v5435_v28, %v4079_v6  ;;  %v5553_v28 = vld [vmem:[#allocation70_spill] sm:$0xff] }
 0x650   :  { %v1943_v18 = vpack.c.bf16 %v1942_v12, %v4602_v14  ;;  %v2998_v44 = vpop.f32.mrb[23].mxu0  ;;  %v904_v14 = vadd.f32 %v902_v13, %v870_v47  ;;  %v5440_v12 = vstv %s4705_s19 }
 0x651   :  { %v936_v44 = vmul.f32 %v5442_v41, %v4029_v26 }
 0x652   :  { %3004 = vmatmul.mubr.msk.bf16.vlgmr.msra.gmra.mrb[20].mxu1 %vm246_vm0, %v1943_v18  ;;  %v970_v18 = vmul.f32 %v5440_v12, %v4049_v0 }
 0x653   :  { %3014 = vmatpush3.bf16.xpose.msra.mxu1 %v2068_v49  ;;  %3015 = vmatprep.mubr.msk.bf16.mxu1 %vm3427_vm1, %v5499_v15  ;;  %v938_v53 = vadd.f32 %v936_v44, %v904_v14  ;;  %v5436_v49 = vstv %s4712_s20  ;;  %v1072_v14 = vmul.f32 %v5433_v20, %v4097_v42  ;;  %v5423_v44 = vstv %s4738_s5  ;;  %v5552_v20 = vld [vmem:[#allocation69_spill] sm:$0xff] }
 0x654   :  { %3025 = vmatprep.subr.bf16.mxu1 %v5499_v15  ;;  %v1004_v62 = vmul.f32 %v5436_v49, %v4066_v35 }
 0x655   :  { %v972_v47 = vadd.f32 %v970_v18, %v938_v53  ;;  %v1106_v18 = vmul.f32 %v5423_v44, %v4115_v57 }
 0x657   :  { %v1006_v3 = vadd.f32 %v1004_v62, %v972_v47 }
 0x659   :  { %v1040_v13 = vadd.f32 %v1038_v40, %v1006_v3  ;;  %v5428_v3 = vstv %s4750_s17 }
 0x65a   :  { %3016 = vmatmul.mubr.msk.bf16.vlgmr.msra.gmra.mrb[24].mxu1 %vm246_vm0, %v2061_v39  ;;  %v5425_v39 = vstv %s4744_s0 }
 0x65b   :  { %3027 = vmatprep.mubr.msk.bf16.mxu1 %vm3427_vm1, %v5499_v15  ;;  %v1074_v53 = vadd.f32 %v1072_v14, %v1040_v13  ;;  %v1140_v62 = vmul.f32 %v5425_v39, %v4134_v33  ;;  %v1174_v13 = vmul.f32 %v5428_v3, %v4147_v59  ;;  %v5430_v14 = vstv %s4756_s10 }
 0x65d   :  { %v1108_v47 = vadd.f32 %v1106_v18, %v1074_v53  ;;  %v1208_v53 = vmul.f32 %v5430_v14, %v5501_v16  ;;  %v5432_v18 = vstv %s4762_s13  ;;  %s4792_s13 = sld [smem:[#allocation17 + $0x11f]] }
 0x65f   :  { %v1142_v40 = vadd.f32 %v1140_v62, %v1108_v47  ;;  %v1242_v47 = vmul.f32 %v5432_v18, %v5503_v25  ;;  %v5434_v62 = vstv %s4768_s15  ;;  %s4802_s15 = sld [smem:[#allocation18 + $0x2]] }
 0x661   :  { %v1176_v44 = vadd.f32 %v1174_v13, %v1142_v40  ;;  %v1276_v40 = vmul.f32 %v5434_v62, %v5505_v55  ;;  %v5438_v13 = vstv %s4774_s16  ;;  %v5571_v55 = vstv %s4639_s27  ;;  %s4988_s27 = sld [smem:[#allocation17 + $0x187]] }
 0x663   :  { %v1210_v39 = vadd.f32 %v1208_v53, %v1176_v44  ;;  %v1310_v44 = vmul.f32 %v5438_v13, %v4213_v21  ;;  %v5439_v53 = vstv %s4780_s2  ;;  %v5555_v13 = vld [vmem:[#allocation72_spill] sm:$0xff]  ;;  %v5569_v21 = vstv %s4633_s3  ;;  %s4982_s3 = sld [smem:[#allocation17 + $0x186]] }
 0x665   :  { %v1244_v3 = vadd.f32 %v1242_v47, %v1210_v39  ;;  %v1344_v39 = vmul.f32 %v5439_v53, %v5552_v20  ;;  %v5441_v47 = vstv %s4786_s12  ;;  %5554 = sst [smem:[#allocation76_spill]] %s4802_s15  ;;  %v5444_v53 = vstv %s4802_s15  ;;  %s5560_s15 = smov 64  }
 0x666   :  { %v1378_v49 = vmul.f32 %v5441_v47, %v5553_v28 }
 0x667   :  { %v1278_v14 = vadd.f32 %v1276_v40, %v1244_v3  ;;  %v5446_v3 = vstv %s4792_s13 }
 0x669   :  { %v1312_v18 = vadd.f32 %v1310_v44, %v1278_v14  ;;  %v1412_v14 = vmul.f32 %v5446_v3, %v5555_v13  ;;  %v5562_v3 = vld [vmem:[#allocation38_spill] sm:$0xff]  ;;  %v5563_v13 = vstv %s4612_s26  ;;  %s4961_s26 = sld [smem:[#allocation17 + $0x183]] }
 0x66b   :  { %v1346_v62 = vadd.f32 %v1344_v39, %v1312_v18 }
 0x66d   :  { %v1380_v40 = vadd.f32 %v1378_v49, %v1346_v62  ;;  %v5556_v62 = vld [vmem:[#allocation35_spill] sm:$0xff] }
 0x66f   :  { %v1414_v44 = vadd.f32 %v1412_v14, %v1380_v40  ;;  %v359_v40 = vmul.f32 %v357_v9, %v5556_v62  ;;  %v5557_v14 = vld [vmem:[#allocation36_spill] sm:$0xff]  ;;  %v5564_v9 = vld [vmem:[#allocation41_spill] sm:$0xff]  ;;  %v5565_v62 = vstv %s4621_s24  ;;  %s4970_s24 = sld [smem:[#allocation17 + $0x184]] }
 0x670   :  { %v495_v20 = vmul.f32 %v5565_v62, %v5564_v9  ;;  %v5575_v9 = vstv %s4651_s7  ;;  %s5000_s7 = sld [smem:[#allocation17 + $0x189]] }
 0x671   :  { %v2008_v18 = vadd.f32 %v5444_v53, %v1414_v44  ;;  %v393_v44 = vmul.f32 %v391_v32, %v5557_v14 }
 0x673   :  { %v395_v53 = vadd.f32 %v393_v44, %v359_v40  ;;  %v5566_v40 = vld [vmem:[#allocation42_spill] sm:$0xff]  ;;  %v5567_v44 = vstv %s4627_s4  ;;  %s4976_s4 = sld [smem:[#allocation17 + $0x185]] }
 0x674   :  { %v529_v14 = vmul.f32 %v5567_v44, %v5566_v40  ;;  %v5577_v40 = vstv %s4657_s1  ;;  %s5006_s1 = sld [smem:[#allocation17 + $0x18a]] }
 0x697   :  { %v2054_v39 = vpop.f32.mrb[24].mxu0 }
 0x698   :  { %v4810_v12 = vadd.f32 %v2054_v39, %v2008_v18  ;;  %v3011_v47 = vpop.f32.mrb[25].mxu0  ;;  %v5558_v18 = vld [vmem:[#allocation37_spill] sm:$0xff]  ;;  %v5559_v39 = vstv %s4608_s25  ;;  %s5612_s25 = sld [smem:[#allocation76_spill]] }
 0x699   :  { %v2057_v41 = vpop.f32.mrb[26].mxu0  ;;  %v427_v47 = vmul.f32 %v5559_v39, %v5558_v18  ;;  %v5568_v18 = vld [vmem:[#allocation43_spill] sm:$0xff] }
 0x69a   :  { %v3012_v19 = vpop.f32.mrb[27].mxu0  ;;  %v2110_v49 = vsel %vm1532_vm3, %v4810_v12, -inf  ;;  %v5561_v41 = vld [vmem:[#allocation39_spill] sm:$0xff] }
 0x69b   :  { %2111 = vmax.xlane.f32.xlu0 %v2110_v49  ;;  %v429_v19 = vadd.f32 %v427_v47, %v395_v53  ;;  %v461_v49 = vmul.f32 %v5563_v13, %v5562_v3  ;;  %v5570_v47 = vld [vmem:[#allocation44_spill] sm:$0xff]  ;;  %v5573_v3 = vstv %s4645_s28  ;;  %s4994_s28 = sld [smem:[#allocation17 + $0x188]] }
 0x69c   :  { %v597_v13 = vmul.f32 %v5571_v55, %v5570_v47  ;;  %v5581_v47 = vstv %s4669_s9  ;;  %s5018_s9 = sld [smem:[#allocation17 + $0x18c]] }
 0x69d   :  { %v463_v28 = vadd.f32 %v461_v49, %v429_v19  ;;  %v5572_v49 = vld [vmem:[#allocation45_spill] sm:$0xff] }
 0x69e   :  { %v631_v62 = vmul.f32 %v5573_v3, %v5572_v49  ;;  %v5583_v49 = vstv %s4675_s30  ;;  %s5024_s30 = sld [smem:[#allocation17 + $0x18d]] }
 0x69f   :  { %v497_v32 = vadd.f32 %v495_v20, %v463_v28  ;;  %v5574_v20 = vld [vmem:[#allocation46_spill] sm:$0xff] }
 0x6a0   :  { %v665_v44 = vmul.f32 %v5575_v9, %v5574_v20  ;;  %v5585_v20 = vstv %s4681_s14  ;;  %s5030_s14 = sld [smem:[#allocation17 + $0x18e]] }
 0x6a1   :  { %v531_v39 = vadd.f32 %v529_v14, %v497_v32  ;;  %v5576_v32 = vld [vmem:[#allocation47_spill] sm:$0xff] }
 0x6b1   :  { %2130 = vrot.lane.b32.xlu0 %v5561_v41, %s5560_s15  ;;  %v563_v41 = vmul.f32 %v5569_v21, %v5568_v18  ;;  %v699_v21 = vmul.f32 %v5577_v40, %v5576_v32  ;;  %v5579_v18 = vstv %s4663_s22  ;;  %v5587_v32 = vstv %s4687_s29  ;;  %s5012_s22 = sld [smem:[#allocation17 + $0x18b]]  ;;  %s5036_s29 = sld [smem:[#allocation17 + $0x18f]] }
 0x6b3   :  { %v565_v53 = vadd.f32 %v563_v41, %v531_v39  ;;  %v5578_v39 = vld [vmem:[#allocation48_spill] sm:$0xff] }
 0x6b4   :  { %v733_v55 = vmul.f32 %v5579_v18, %v5578_v39  ;;  %v5589_v39 = vstv %s4693_s6  ;;  %s5042_s6 = sld [smem:[#allocation17 + $0x190]] }
 0x6b5   :  { %v599_v19 = vadd.f32 %v597_v13, %v565_v53  ;;  %v5580_v13 = vld [vmem:[#allocation49_spill] sm:$0xff] }
 0x6b6   :  { %v767_v3 = vmul.f32 %v5581_v47, %v5580_v13  ;;  %v5591_v13 = vstv %s4699_s18  ;;  %s5048_s18 = sld [smem:[#allocation17 + $0x191]] }
 0x6b7   :  { %v633_v28 = vadd.f32 %v631_v62, %v599_v19  ;;  %v5582_v62 = vld [vmem:[#allocation50_spill] sm:$0xff] }
 0x6b8   :  { %v801_v9 = vmul.f32 %v5583_v49, %v5582_v62  ;;  %v5593_v62 = vstv %s4705_s19  ;;  %s5054_s19 = sld [smem:[#allocation17 + $0x192]] }
 0x6b9   :  { %v667_v14 = vadd.f32 %v665_v44, %v633_v28  ;;  %v5584_v44 = vld [vmem:[#allocation51_spill] sm:$0xff] }
 0x6ba   :  { %v835_v40 = vmul.f32 %v5585_v20, %v5584_v44  ;;  %v5596_v44 = vstv %s4712_s20  ;;  %s5060_s20 = sld [smem:[#allocation17 + $0x193]] }
 0x6bb   :  { %v701_v41 = vadd.f32 %v699_v21, %v667_v14  ;;  %v5586_v21 = vld [vmem:[#allocation52_spill] sm:$0xff] }
 0x6bc   :  { %v869_v18 = vmul.f32 %v5587_v32, %v5586_v21  ;;  %v5599_v21 = vstv %s4723_s21  ;;  %s5066_s21 = sld [smem:[#allocation17 + $0x194]] }
 0x6bd   :  { %v735_v53 = vadd.f32 %v733_v55, %v701_v41  ;;  %v5588_v55 = vld [vmem:[#allocation53_spill] sm:$0xff] }
 0x6be   :  { %v903_v47 = vmul.f32 %v5589_v39, %v5588_v55  ;;  %v5601_v55 = vstv %s4729_s23  ;;  %s5072_s23 = sld [smem:[#allocation17 + $0x195]] }
 0x6bf   :  { %v769_v19 = vadd.f32 %v767_v3, %v735_v53  ;;  %v5590_v3 = vld [vmem:[#allocation54_spill] sm:$0xff] }
 0x6c0   :  { %v937_v49 = vmul.f32 %v5591_v13, %v5590_v3 }
 0x6c1   :  { %v803_v28 = vadd.f32 %v801_v9, %v769_v19  ;;  %v5592_v9 = vld [vmem:[#allocation55_spill] sm:$0xff] }
 0x6c2   :  { %v971_v20 = vmul.f32 %v5593_v62, %v5592_v9 }
 0x6c3   :  { %v837_v14 = vadd.f32 %v835_v40, %v803_v28  ;;  %v5595_v40 = vld [vmem:[#allocation56_spill] sm:$0xff] }
 0x6c4   :  { %v1005_v32 = vmul.f32 %v5596_v44, %v5595_v40 }
 0x6c5   :  { %v871_v41 = vadd.f32 %v869_v18, %v837_v14  ;;  %v5598_v18 = vld [vmem:[#allocation57_spill] sm:$0xff] }
 0x6c6   :  { %v1039_v39 = vmul.f32 %v5599_v21, %v5598_v18 }
 0x6c7   :  { %v905_v53 = vadd.f32 %v903_v47, %v871_v41  ;;  %v5600_v47 = vld [vmem:[#allocation58_spill] sm:$0xff] }
 0x6c8   :  { %v1073_v13 = vmul.f32 %v5601_v55, %v5600_v47 }
 0x6c9   :  { %v939_v19 = vadd.f32 %v937_v49, %v905_v53  ;;  %v5602_v49 = vstv %s4738_s5  ;;  %s5078_s5 = sld [smem:[#allocation17 + $0x196]] }
 0x6ca   :  { %v1107_v62 = vmul.f32 %v5602_v49, %v5535_v51  ;;  %v5607_v49 = vstv %s5597_s8  ;;  %v5608_v51 = vld [vmem:[#allocation68_spill] sm:$0xff]  ;;  %s5114_s8 = sld [smem:[#allocation17 + $0x19c]] }
 0x6cb   :  { %v973_v28 = vadd.f32 %v971_v20, %v939_v19  ;;  %v5603_v20 = vstv %s4744_s0  ;;  %s5084_s0 = sld [smem:[#allocation17 + $0x197]] }
 0x6cc   :  { %v1141_v44 = vmul.f32 %v5603_v20, %v5537_v1  ;;  %v5609_v20 = vstv %s4774_s16  ;;  %v5610_v1 = vstv %s4780_s2  ;;  %s4955_s16 = sld [smem:[#allocation17 + $0x181]]  ;;  %s4957_s2 = sld [smem:[#allocation17 + $0x182]] }
 0x6cd   :  { %v1007_v14 = vadd.f32 %v1005_v32, %v973_v28  ;;  %v5604_v28 = vstv %s4750_s17  ;;  %s5090_s17 = sld [smem:[#allocation17 + $0x198]] }
 0x6ce   :  { %v1175_v21 = vmul.f32 %v5604_v28, %v5539_v2  ;;  %v1345_v28 = vmul.f32 %v5610_v1, %v4233_v27 }
 0x6cf   :  { %v1041_v41 = vadd.f32 %v1039_v39, %v1007_v14  ;;  %v5605_v14 = vstv %s4756_s10  ;;  %s5096_s10 = sld [smem:[#allocation17 + $0x199]] }
 0x6d0   :  { %v1209_v39 = vmul.f32 %v5605_v14, %v5541_v4  ;;  %v2854_v14 = vld [vmem:[#allocation12] ss:$0 sm:$0xff] }
 0x6d1   :  { %v1075_v53 = vadd.f32 %v1073_v13, %v1041_v41  ;;  %v5606_v41 = vstv %s5594_s11  ;;  %s5108_s11 = sld [smem:[#allocation17 + $0x19b]] }
 0x6d2   :  { %v1243_v13 = vmul.f32 %v5606_v41, %v5543_v56 }
 0x6d3   :  { %v1109_v19 = vadd.f32 %v1107_v62, %v1075_v53  ;;  %v1277_v53 = vmul.f32 %v5607_v49, %v4211_v5  ;;  %v1712_v49 = vadd.f32 %v2854_v14, %v4570_v46 }
 0x6d5   :  { %v1143_v40 = vadd.f32 %v1141_v44, %v1109_v19  ;;  %v1311_v19 = vmul.f32 %v5609_v20, %v5608_v51 }
 0x6d7   :  { %v1177_v32 = vadd.f32 %v1175_v21, %v1143_v40  ;;  %v5611_v21 = vstv %s4786_s12  ;;  %s5453_s12 = smov 32   ;;  %5616 = sst [smem:[#allocation75_spill]] %s5108_s11 }
 0x6d9   :  { %v1211_v55 = vadd.f32 %v1209_v39, %v1177_v32  ;;  %v1379_v32 = vmul.f32 %v5611_v21, %v4241_v54 }
 0x6db   :  { %v1245_v47 = vadd.f32 %v1243_v13, %v1211_v55  ;;  %v5613_v55 = vstv %s4792_s13  ;;  %v1711_v13 = vadd.f32 %v2854_v14, %v4568_v38  ;;  %s5102_s13 = sld [smem:[#allocation17 + $0x19a]] }
 0x6dc   :  { %v1413_v41 = vmul.f32 %v5613_v55, %v4247_v29 }
 0x6dd   :  { %v1279_v62 = vadd.f32 %v1277_v53, %v1245_v47 }
 0x6df   :  { %v1313_v44 = vadd.f32 %v1311_v19, %v1279_v62 }
 0x6e1   :  { %v1347_v40 = vadd.f32 %v1345_v28, %v1313_v44  ;;  %5615 = sst [smem:[#allocation74_spill]] %s5102_s13 }
 0x6e3   :  { %v1381_v39 = vadd.f32 %v1379_v32, %v1347_v40  ;;  %v5614_v40 = vstv %s5612_s25  ;;  %s5120_s25 = sld [smem:[#allocation17 + $0x19d]] }
 0x6e5   :  { %v1415_v20 = vadd.f32 %v1413_v41, %v1381_v39 }
 0x6e7   :  { %v2009_v32 = vadd.f32 %v5614_v40, %v1415_v20 }
 0x725   :  { %v1997_v47 = vpop.f32.mrb[20].mxu1 }
 0x726   :  { %v4914_v53 = vadd.f32 %v1997_v47, %v1711_v13  ;;  %v3005_v62 = vpop.f32.mrb[21].mxu1 }
 0x727   :  { %v2000_v1 = vpop.f32.mrb[22].mxu1 }
 0x728   :  { %v4916_v19 = vadd.f32 %v2000_v1, %v1712_v49  ;;  %v3006_v44 = vpop.f32.mrb[23].mxu1  ;;  %v2112_v28 = vpop.xlane.xlu0 %2111 }
 0x729   :  { %v2116_v21 = vsub.f32 %v4810_v12, %v2112_v28 }
 0x72b   :  { %v2118_v54 = vmul.f32 1.442695, %v2116_v21 }
 0x72c   :  { %v2131_v55 = vpop.permute.xlu0 %2130 }
 0x72d   :  { %3127 = vpow2.f32 %v2118_v54  ;;  %v2136_v38 = vsel %vm1556_vm2, %v2131_v55, 0  ;;  %v2104_v29 = vpop.f32.mrb[24].mxu1  ;;  %v3107_v55 = vld [vmem:[#allocation11 + $0x20] sm:$0xff]  }
 0x72e   :  { %v2105_v46 = vadd.f32 %v2104_v29, %v2009_v32  ;;  %v3017_v14 = vpop.f32.mrb[25].mxu1  ;;  %3020 = vmatpush3.bf16.msra.mxu0 %v2136_v38  ;;  %v3108_v38 = vld [vmem:[#allocation11 + $0x28] sm:$0xff]  }
 0x72f   :  { %v2107_v13 = vpop.f32.mrb[26].mxu1  ;;  %3031 = vmatprep.subr.bf16.mxu0 %v5499_v15 }
 0x730   :  { %v3018_v39 = vpop.f32.mrb[27].mxu1  ;;  %v2113_v41 = vsel %vm1532_vm3, %v2105_v46, -inf }
 0x731   :  { %2114 = vmax.xlane.f32.xlu1 %v2113_v41 }
 0x737   :  { %v3128_v47 = vpop.eup %3127 }
 0x738   :  { %v2122_v12 = vsel %vm1532_vm3, %v3128_v47, 0.0  ;;  %v2128_v49 = vpack.c.bf16 %v3128_v47, %v3128_v47 }
 0x739   :  { %2123 = vadd.xlane.f32.xlu0 %v2122_v12 }
 0x73a   :  { %3022 = vmatmul.mubr.msk.bf16.vlgmr.msra.gmra.mrb[28].mxu0 %vm1532_vm3, %v2128_v49 }
 0x73b   :  { %3035 = vmatprep.mubr.msk.bf16.mxu0 %vm3427_vm1, %v5499_v15  ;;  %3032 = vmatpush3.bf16.msra.mxu0 %v3107_v55 }
 0x73c   :  { %3033 = vmatprep.subr.bf16.mxu0 %v5499_v15 }
 0x73f   :  { %3034 = vmatpush3.bf16.msra.mxu0 %v3108_v38  ;;  %v635_v38 = vstv %s4994_s28 }
 0x740   :  { %3045 = vmatprep.subr.bf16.mxu0 %v5499_v15 }
 0x742   :  { %2178 = vrot.lane.b32.xlu1 %v5548_v61, %s5560_s15  ;;  %s4953_s15 = sld [smem:[#allocation17 + $0x180]] }
 0x74f   :  { %2299 = vrot.lane.b32.xlu0 %v3676_v23, %s5453_s12 }
 0x753   :  { %2297 = vrot.lane.b32.xlu0 %v3688_v30, %s5453_s12 }
 0x7be   :  { %v2115_v54 = vpop.xlane.xlu1 %2114 }
 0x7bf   :  { %v2117_v29 = vsub.f32 %v2105_v46, %v2115_v54  ;;  %v431_v54 = vstv %s4957_s2 }
 0x7c1   :  { %v2120_v62 = vmul.f32 1.442695, %v2117_v29 }
 0x7c2   :  { %v2179_v20 = vpop.permute.xlu1 %2178 }
 0x7c3   :  { %3129 = vpow2.f32 %v2120_v62  ;;  %v2184_v1 = vsel %vm1556_vm2, %v2179_v20, 0  ;;  %v432_v62 = vmul.f32 %v431_v54, %v3765_v8  ;;  %v465_v20 = vstv %s4961_s26 }
 0x7c4   :  { %3026 = vmatpush3.bf16.msra.mxu1 %v2184_v1 }
 0x7c5   :  { %3039 = vmatprep.subr.bf16.mxu1 %v5499_v15 }
 0x7c6   :  { %v2124_v44 = vpop.xlane.xlu0 %2123 }
 0x7c7   :  { %3131 = vrcp.f32 %v2124_v44  ;;  %v499_v44 = vstv %s4970_s24 }
 0x7ca   :  { %v2300_v21 = vpop.permute.xlu0 %2299 }
 0x7cb   :  { %v2305_v23 = vsel %vm246_vm0, %v2300_v21, 0  ;;  %v533_v21 = vstv %s4976_s4 }
 0x7cd   :  { %v3130_v28 = vpop.eup %3129 }
 0x7ce   :  { %v2125_v40 = vsel %vm1532_vm3, %v3130_v28, 0.0  ;;  %v2129_v32 = vpack.c.bf16 %v3130_v28, %v3130_v28  ;;  %v2298_v30 = vpop.permute.xlu0 %2297  ;;  %v500_v28 = vmul.f32 %v499_v44, %v3805_v45 }
 0x7cf   :  { %2126 = vadd.xlane.f32.xlu1 %v2125_v40  ;;  %v534_v40 = vmul.f32 %v533_v21, %v3825_v63 }
 0x7d0   :  { %3028 = vmatmul.mubr.msk.bf16.vlgmr.msra.gmra.mrb[28].mxu1 %vm1532_vm3, %v2129_v32  ;;  %v567_v32 = vstv %s4982_s3 }
 0x7d1   :  { %3040 = vmatpush3.bf16.xpose.msra.mxu1 %v2305_v23  ;;  %3041 = vmatprep.mubr.msk.bf16.mxu1 %vm3427_vm1, %v5499_v15  ;;  %v3132_v46 = vpop.eup %3131  ;;  %v568_v23 = vmul.f32 %v567_v32, %v3846_v17 }
 0x7d2   :  { %3051 = vmatprep.subr.bf16.mxu1 %v5499_v15 }
 0x7d8   :  { %3042 = vmatmul.mubr.msk.bf16.vlgmr.msra.gmra.mrb[32].mxu1 %vm246_vm0, %v2298_v30  ;;  %v601_v30 = vstv %s4988_s27 }
 0x7d9   :  { %3053 = vmatprep.mubr.msk.bf16.mxu1 %vm3427_vm1, %v5499_v15  ;;  %v602_v55 = vmul.f32 %v601_v30, %v3862_v36 }
 0x7e0   :  { %2349 = vrot.lane.b32.xlu1 %v5549_v22, %s5453_s12  ;;  %v397_v22 = vstv %s4955_s16 }
 0x7e1   :  { %v398_v49 = vmul.f32 %v397_v22, %v3737_v50 }
 0x7e4   :  { %2347 = vrot.lane.b32.xlu1 %v3690_v31, %s5453_s12  ;;  %v363_v31 = vstv %s4953_s15  ;;  %s5126_s12 = sld [smem:[#allocation17 + $0x19e]] }
 0x7e5   :  { %v364_v12 = vmul.f32 %v363_v31, %v3734_v48  ;;  %v466_v48 = vmul.f32 %v465_v20, %v3781_v24 }
 0x7e7   :  { %v400_v29 = vadd.f32 %v398_v49, %v364_v12  ;;  %v737_v12 = vstv %s5012_s22 }
 0x7e8   :  { %v738_v49 = vmul.f32 %v737_v12, %v3930_v58 }
 0x7e9   :  { %v434_v1 = vadd.f32 %v432_v62, %v400_v29  ;;  %v771_v29 = vstv %s5018_s9 }
 0x7ea   :  { %v772_v62 = vmul.f32 %v771_v29, %v3943_v11 }
 0x7eb   :  { %v468_v50 = vadd.f32 %v466_v48, %v434_v1  ;;  %v805_v1 = vstv %s5024_s30 }
 0x7ec   :  { %v806_v48 = vmul.f32 %v805_v1, %v3961_v37 }
 0x7ed   :  { %v502_v8 = vadd.f32 %v500_v28, %v468_v50  ;;  %v839_v50 = vstv %s5030_s14 }
 0x7ee   :  { %v840_v28 = vmul.f32 %v839_v50, %v3981_v10 }
 0x7ef   :  { %v536_v24 = vadd.f32 %v534_v40, %v502_v8  ;;  %v873_v8 = vstv %s5036_s29 }
 0x7f0   :  { %v874_v40 = vmul.f32 %v873_v8, %v3998_v43 }
 0x7f1   :  { %v570_v45 = vadd.f32 %v568_v23, %v536_v24  ;;  %v907_v24 = vstv %s5042_s6 }
 0x7f2   :  { %v908_v23 = vmul.f32 %v907_v24, %v4011_v60 }
 0x7f3   :  { %v604_v63 = vadd.f32 %v602_v55, %v570_v45  ;;  %v941_v45 = vstv %s5048_s18 }
 0x7f4   :  { %v942_v55 = vmul.f32 %v941_v45, %v4029_v26 }
 0x80d   :  { %v2172_v14 = vpop.f32.mrb[28].mxu0 }
 0x80e   :  { %v4951_v13 = vmul.f32 %v3132_v46, %v2172_v14  ;;  %v3023_v39 = vpop.f32.mrb[29].mxu0  ;;  %v636_v46 = vmul.f32 %v635_v38, %v3875_v52  ;;  %v669_v14 = vstv %s5000_s7 }
 0x80f   :  { %v2175_v41 = vpop.f32.mrb[30].mxu0  ;;  %v670_v39 = vmul.f32 %v669_v14, %v3893_v7 }
 0x810   :  { %v3024_v47 = vpop.f32.mrb[31].mxu0  ;;  %v638_v17 = vadd.f32 %v636_v46, %v604_v63  ;;  %v703_v41 = vstv %s5006_s1  ;;  %v975_v63 = vstv %s5054_s19 }
 0x811   :  { %v704_v47 = vmul.f32 %v703_v41, %v3913_v34  ;;  %v976_v46 = vmul.f32 %v975_v63, %v4049_v0 }
 0x812   :  { %v672_v36 = vadd.f32 %v670_v39, %v638_v17  ;;  %v1009_v17 = vstv %s5060_s20 }
 0x813   :  { %v1010_v39 = vmul.f32 %v1009_v17, %v4066_v35 }
 0x814   :  { %v706_v52 = vadd.f32 %v704_v47, %v672_v36  ;;  %v1043_v36 = vstv %s5066_s21 }
 0x815   :  { %v1044_v47 = vmul.f32 %v1043_v36, %v4079_v6 }
 0x816   :  { %v740_v7 = vadd.f32 %v738_v49, %v706_v52  ;;  %v1077_v52 = vstv %s5072_s23 }
 0x817   :  { %v1078_v49 = vmul.f32 %v1077_v52, %v4097_v42 }
 0x818   :  { %v774_v34 = vadd.f32 %v772_v62, %v740_v7  ;;  %v1111_v7 = vstv %s5078_s5 }
 0x819   :  { %v1112_v62 = vmul.f32 %v1111_v7, %v4115_v57 }
 0x81a   :  { %v808_v58 = vadd.f32 %v806_v48, %v774_v34  ;;  %v1145_v34 = vstv %s5084_s0 }
 0x81b   :  { %v1146_v48 = vmul.f32 %v1145_v34, %v4134_v33 }
 0x81c   :  { %v842_v11 = vadd.f32 %v840_v28, %v808_v58  ;;  %v1179_v58 = vstv %s5090_s17 }
 0x81d   :  { %v1180_v28 = vmul.f32 %v1179_v58, %v4147_v59 }
 0x81e   :  { %v876_v37 = vadd.f32 %v874_v40, %v842_v11  ;;  %v1213_v11 = vstv %s5096_s10 }
 0x81f   :  { %v1214_v40 = vmul.f32 %v1213_v11, %v5501_v16 }
 0x820   :  { %v910_v10 = vadd.f32 %v908_v23, %v876_v37  ;;  %v1247_v37 = vstv %s5102_s13  ;;  %s5132_s13 = sld [smem:[#allocation17 + $0x19f]] }
 0x821   :  { %v1248_v23 = vmul.f32 %v1247_v37, %v5503_v25 }
 0x822   :  { %v944_v43 = vadd.f32 %v942_v55, %v910_v10  ;;  %v1281_v10 = vstv %s5108_s11  ;;  %v5617_v55 = vld [vmem:[#allocation66_spill] sm:$0xff]  ;;  %s5142_s11 = sld [smem:[#allocation18 + $0x3]] }
 0x824   :  { %v978_v60 = vadd.f32 %v976_v46, %v944_v43  ;;  %v1282_v43 = vmul.f32 %v1281_v10, %v5617_v55  ;;  %v1315_v46 = vstv %s5114_s8 }
 0x826   :  { %v1012_v26 = vadd.f32 %v1010_v39, %v978_v60  ;;  %v5618_v60 = vld [vmem:[#allocation67_spill] sm:$0xff] }
 0x827   :  { %v1316_v39 = vmul.f32 %v1315_v46, %v5618_v60 }
 0x828   :  { %v1046_v0 = vadd.f32 %v1044_v47, %v1012_v26  ;;  %v1349_v26 = vstv %s5120_s25  ;;  %5621 = sst [smem:[#allocation76_spill]] %s5142_s11 }
 0x82a   :  { %v1080_v35 = vadd.f32 %v1078_v49, %v1046_v0  ;;  %v5619_v0 = vld [vmem:[#allocation69_spill] sm:$0xff] }
 0x82b   :  { %v1350_v49 = vmul.f32 %v1349_v26, %v5619_v0 }
 0x82c   :  { %v1114_v6 = vadd.f32 %v1112_v62, %v1080_v35  ;;  %v1383_v35 = vstv %s5126_s12  ;;  %s3430_s12 = smov [#allocation23]  }
 0x82d   :  { %s2638_s26 = sshll.u32 %s3430_s12, 4  ;;  %s2639_s26 = int_to_ptr.vmem [resolvable:$true] %s2638_s26 }
 0x82e   :  { %v1148_v42 = vadd.f32 %v1146_v48, %v1114_v6  ;;  %v5620_v6 = vld [vmem:[#allocation70_spill] sm:$0xff]  ;;  %s3365_s24 = scalar_lea.vmem %s2639_s26, 256  ;;  %p3370_p7 = scmp.lt.s32.totalorder %s2639_s26, %s2639_s26 }
 0x82f   :  { %v1384_v48 = vmul.f32 %v1383_v35, %v5620_v6  ;;  %p3366_p6 = scmp.ne.s32.totalorder %s2639_s26, %s3365_s24  ;;  %p3371_p8 = scmp.lt.s32.totalorder %s3365_s24, %s3365_s24 }
 0x830   :  { %v1182_v57 = vadd.f32 %v1180_v28, %v1148_v42  ;;  %v1417_v42 = vstv %s5132_s13 }
 0x831   :  { %p3372_p9 = por %p3371_p8, %p3370_p7 }
 0x832   :  { %v1216_v33 = vadd.f32 %v1214_v40, %v1182_v57  ;;  %v5622_v57 = vld [vmem:[#allocation72_spill] sm:$0xff] }
 0x833   :  { %v1418_v40 = vmul.f32 %v1417_v42, %v5622_v57  ;;  %p3373_p10 = pnand %p3372_p9, %p3366_p6 }
 0x834   :  { %v1250_v59 = vadd.f32 %v1248_v23, %v1216_v33 }
 0x836   :  { %v1284_v16 = vadd.f32 %v1282_v43, %v1250_v59 }
 0x838   :  { %v1318_v47 = vadd.f32 %v1316_v39, %v1284_v16  ;;  %v2294_v39 = vstv %s5142_s11  ;;  %s5623_s11 = smov 32  }
 0x83a   :  { %v1352_v62 = vadd.f32 %v1350_v49, %v1318_v47 }
 0x83c   :  { %v1386_v28 = vadd.f32 %v1384_v48, %v1352_v62 }
 0x83e   :  { %v1420_v43 = vadd.f32 %v1418_v40, %v1386_v28 }
 0x840   :  { %v2295_v49 = vadd.f32 %v2294_v39, %v1420_v43 }
 0x85c   :  { %v2127_v25 = vpop.xlane.xlu1 %2126 }
 0x85d   :  { %3133 = vrcp.f32 %v2127_v25 }
 0x860   :  { %v2350_v16 = vpop.permute.xlu1 %2349 }
 0x861   :  { %v2355_v0 = vsel %vm246_vm0, %v2350_v16, 0 }
 0x864   :  { %v2348_v40 = vpop.permute.xlu1 %2347 }
 0x867   :  { %v3134_v33 = vpop.eup %3133 }
 0x8a3   :  { %v2220_v23 = vpop.f32.mrb[28].mxu1 }
 0x8a4   :  { %v2229_v59 = vmul.f32 %v3134_v33, %v2220_v23  ;;  %v3029_v55 = vpop.f32.mrb[29].mxu1  ;;  %v5624_v33 = vld [vmem:[#allocation39_spill] sm:$0xff] }
 0x8a5   :  { %v2223_v60 = vpop.f32.mrb[30].mxu1  ;;  %v5625_v23 = vld [vmem:[#allocation35_spill] sm:$0xff]  ;;  %v5626_v55 = vld [vmem:[#allocation36_spill] sm:$0xff] }
 0x8a6   :  { %v2230_v25 = vpack.c.bf16 %v2229_v59, %v4951_v13  ;;  %v3030_v47 = vpop.f32.mrb[31].mxu1  ;;  %v365_v59 = vmul.f32 %v363_v31, %v5625_v23  ;;  %v399_v43 = vmul.f32 %v397_v22, %v5626_v55  ;;  %v5627_v60 = vld [vmem:[#allocation37_spill] sm:$0xff]  ;;  %v5632_v23 = vld [vmem:[#allocation44_spill] sm:$0xff] }
 0x8a7   :  { %v5633_v55 = vld [vmem:[#allocation45_spill] sm:$0xff] }
 0x8a8   :  { %3036 = vmatmul.mubr.msk.bf16.vlgmr.msra.gmra.mrb[32].mxu0 %vm246_vm0, %v2230_v25  ;;  %v401_v16 = vadd.f32 %v399_v43, %v365_v59  ;;  %v433_v25 = vmul.f32 %v431_v54, %v5627_v60 }
 0x8a9   :  { %3046 = vmatpush3.bf16.xpose.msra.mxu0 %v2355_v0  ;;  %3047 = vmatprep.mubr.msk.bf16.mxu0 %vm3427_vm1, %v5499_v15  ;;  %v5628_v0 = vld [vmem:[#allocation38_spill] sm:$0xff] }
 0x8aa   :  { %3057 = vmatprep.subr.bf16.mxu0 %v5499_v15  ;;  %v435_v47 = vadd.f32 %v433_v25, %v401_v16  ;;  %v5634_v16 = vld [vmem:[#allocation46_spill] sm:$0xff]  ;;  %v5635_v25 = vld [vmem:[#allocation47_spill] sm:$0xff] }
 0x8ab   :  { %v2341_v62 = vpop.f32.mrb[32].mxu1 }
 0x8ac   :  { %v2342_v6 = vadd.f32 %v2341_v62, %v2295_v49  ;;  %v3043_v13 = vpop.f32.mrb[33].mxu1  ;;  %v467_v49 = vmul.f32 %v465_v20, %v5628_v0  ;;  %v603_v20 = vmul.f32 %v601_v30, %v5632_v23  ;;  %v5636_v0 = vld [vmem:[#allocation48_spill] sm:$0xff] }
 0x8ad   :  { %v2344_v48 = vpop.f32.mrb[34].mxu1  ;;  %v5629_v13 = vld [vmem:[#allocation41_spill] sm:$0xff] }
 0x8ae   :  { %v3044_v28 = vpop.f32.mrb[35].mxu1  ;;  %v2397_v57 = vsel %vm1532_vm3, %v2342_v6, -inf  ;;  %v469_v62 = vadd.f32 %v467_v49, %v435_v47  ;;  %v501_v48 = vmul.f32 %v499_v44, %v5629_v13  ;;  %v637_v44 = vmul.f32 %v635_v38, %v5633_v55  ;;  %v5638_v38 = vld [vmem:[#allocation50_spill] sm:$0xff] }
 0x8af   :  { %2398 = vmax.xlane.f32.xlu0 %v2397_v57  ;;  %v5630_v28 = vld [vmem:[#allocation42_spill] sm:$0xff]  ;;  %v705_v47 = vmul.f32 %v703_v41, %v5635_v25  ;;  %v739_v49 = vmul.f32 %v737_v12, %v5636_v0  ;;  %v5640_v41 = vld [vmem:[#allocation52_spill] sm:$0xff]  ;;  %v943_v55 = vmul.f32 %v941_v45, %v5590_v3 }
 0x8b0   :  { %3048 = vmatmul.mubr.msk.bf16.vlgmr.msra.gmra.mrb[36].mxu0 %vm246_vm0, %v2348_v40  ;;  %v503_v31 = vadd.f32 %v501_v48, %v469_v62  ;;  %v535_v22 = vmul.f32 %v533_v21, %v5630_v28  ;;  %v5631_v40 = vld [vmem:[#allocation43_spill] sm:$0xff]  ;;  %v671_v21 = vmul.f32 %v669_v14, %v5634_v16  ;;  %v5637_v62 = vld [vmem:[#allocation49_spill] sm:$0xff] }
 0x8b1   :  { %3059 = vmatprep.mubr.msk.bf16.mxu0 %vm3427_vm1, %v5499_v15  ;;  %v569_v54 = vmul.f32 %v567_v32, %v5631_v40  ;;  %v773_v13 = vmul.f32 %v771_v29, %v5637_v62  ;;  %v875_v40 = vmul.f32 %v873_v8, %v5640_v41 }
 0x8b2   :  { %v537_v57 = vadd.f32 %v535_v22, %v503_v31  ;;  %v807_v31 = vmul.f32 %v805_v1, %v5638_v38  ;;  %v5639_v22 = vld [vmem:[#allocation51_spill] sm:$0xff] }
 0x8b3   :  { %v841_v14 = vmul.f32 %v839_v50, %v5639_v22  ;;  %v5649_v22 = vld [vmem:[#allocation71_spill] sm:$0xff] }
 0x8c5   :  { %2417 = vrot.lane.b32.xlu0 %v5624_v33, %s5623_s11  ;;  %v571_v33 = vadd.f32 %v569_v54, %v537_v57 }
 0x8c7   :  { %v605_v59 = vadd.f32 %v603_v20, %v571_v33  ;;  %v5641_v33 = vld [vmem:[#allocation53_spill] sm:$0xff] }
 0x8c8   :  { %v909_v23 = vmul.f32 %v907_v24, %v5641_v33  ;;  %v977_v24 = vmul.f32 %v975_v63, %v5592_v9  ;;  %v5645_v63 = vld [vmem:[#allocation58_spill] sm:$0xff] }
 0x8c9   :  { %v639_v43 = vadd.f32 %v637_v44, %v605_v59  ;;  %v5642_v44 = vld [vmem:[#allocation56_spill] sm:$0xff] }
 0x8cb   :  { %v673_v60 = vadd.f32 %v671_v21, %v639_v43  ;;  %v1011_v43 = vmul.f32 %v1009_v17, %v5642_v44  ;;  %v1079_v17 = vmul.f32 %v1077_v52, %v5645_v63 }
 0x8cd   :  { %v707_v32 = vadd.f32 %v705_v47, %v673_v60  ;;  %v1045_v60 = vmul.f32 %v1043_v36, %v5598_v18  ;;  %v5646_v47 = vld [vmem:[#allocation59_spill] sm:$0xff]  ;;  %v5647_v18 = vld [vmem:[#allocation60_spill] sm:$0xff] }
 0x8ce   :  { %v1147_v36 = vmul.f32 %v1145_v34, %v5647_v18  ;;  %v1317_v34 = vmul.f32 %v1315_v46, %v5608_v51 }
 0x8cf   :  { %v741_v30 = vadd.f32 %v739_v49, %v707_v32  ;;  %v1113_v32 = vmul.f32 %v1111_v7, %v5646_v47  ;;  %v1283_v7 = vmul.f32 %v1281_v10, %v4211_v5 }
 0x8d1   :  { %v775_v48 = vadd.f32 %v773_v13, %v741_v30  ;;  %v1181_v30 = vmul.f32 %v1179_v58, %v5539_v2  ;;  %v1215_v13 = vmul.f32 %v1213_v11, %v5541_v4  ;;  %v1351_v2 = vmul.f32 %v1349_v26, %v4233_v27 }
 0x8d2   :  { %v1385_v4 = vmul.f32 %v1383_v35, %v5649_v22 }
 0x8d3   :  { %v809_v28 = vadd.f32 %v807_v31, %v775_v48  ;;  %v1249_v48 = vmul.f32 %v1247_v37, %v5543_v56 }
 0x8d5   :  { %v843_v57 = vadd.f32 %v841_v14, %v809_v28  ;;  %v5650_v14 = vld [vmem:[#allocation73_spill] sm:$0xff] }
 0x8d6   :  { %v1419_v56 = vmul.f32 %v1417_v42, %v5650_v14 }
 0x8d7   :  { %v877_v54 = vadd.f32 %v875_v40, %v843_v57 }
 0x8d9   :  { %v911_v1 = vadd.f32 %v909_v23, %v877_v54 }
 0x8db   :  { %v945_v8 = vadd.f32 %v943_v55, %v911_v1 }
 0x93c   :  { %v2399_v12 = vpop.xlane.xlu0 %2398 }
 0x93d   :  { %v2403_v29 = vsub.f32 %v2342_v6, %v2399_v12  ;;  %v979_v6 = vadd.f32 %v977_v24, %v945_v8  ;;  %v3110_v24 = vld [vmem:[#allocation11 + $0x38] sm:$0xff]  }
 0x93f   :  { %v2405_v20 = vmul.f32 1.442695, %v2403_v29  ;;  %v1013_v21 = vadd.f32 %v1011_v43, %v979_v6 }
 0x940   :  { %v2418_v59 = vpop.permute.xlu0 %2417 }
 0x941   :  { %3135 = vpow2.f32 %v2405_v20  ;;  %v2423_v50 = vsel %vm1556_vm2, %v2418_v59, 0  ;;  %v1047_v9 = vadd.f32 %v1045_v60, %v1013_v21 }
 0x942   :  { %3052 = vmatpush3.bf16.msra.mxu1 %v2423_v50 }
 0x943   :  { %3063 = vmatprep.subr.bf16.mxu1 %v5499_v15  ;;  %v1081_v25 = vadd.f32 %v1079_v17, %v1047_v9 }
 0x945   :  { %v1115_v0 = vadd.f32 %v1113_v32, %v1081_v25 }
 0x947   :  { %v1149_v49 = vadd.f32 %v1147_v36, %v1115_v0  ;;  %v3147_v0 = vld [vmem:[#allocation2] sm:$0xff] }
 0x949   :  { %v1183_v62 = vadd.f32 %v1181_v30, %v1149_v49  ;;  %v3148_v30 = vld [vmem:[#allocation2 + $0x8] sm:$0xff] }
 0x94b   :  { %v3136_v16 = vpop.eup %3135  ;;  %v1217_v52 = vadd.f32 %v1215_v13, %v1183_v62 }
 0x94c   :  { %v2409_v3 = vsel %vm1532_vm3, %v3136_v16, 0.0  ;;  %v2415_v45 = vpack.c.bf16 %v3136_v16, %v3136_v16 }
 0x94d   :  { %2410 = vadd.xlane.f32.xlu0 %v2409_v3  ;;  %v1251_v38 = vadd.f32 %v1249_v48, %v1217_v52 }
 0x94e   :  { %3054 = vmatmul.mubr.msk.bf16.vlgmr.msra.gmra.mrb[36].mxu1 %vm1532_vm3, %v2415_v45 }
 0x94f   :  { %3067 = vmatprep.mubr.msk.bf16.mxu1 %vm3427_vm1, %v5499_v15  ;;  %v1285_v31 = vadd.f32 %v1283_v7, %v1251_v38 }
 0x951   :  { %v1319_v28 = vadd.f32 %v1317_v34, %v1285_v31 }
 0x953   :  { %v1353_v58 = vadd.f32 %v1351_v2, %v1319_v28 }
 0x955   :  { %v1387_v11 = vadd.f32 %v1385_v4, %v1353_v58 }
 0x957   :  { %v1421_v57 = vadd.f32 %v1419_v56, %v1387_v11 }
 0x959   :  { %v2296_v40 = vadd.f32 %v2294_v39, %v1421_v57 }
 0x97b   :  { %v2284_v37 = vpop.f32.mrb[32].mxu0 }
 0x97c   :  { %v2291_v5 = vadd.f32 %v2284_v37, %v4914_v53  ;;  %v3037_v10 = vpop.f32.mrb[33].mxu0 }
 0x97d   :  { %v2287_v41 = vpop.f32.mrb[34].mxu0 }
 0x97e   :  { %v2292_v51 = vadd.f32 %v2287_v41, %v4916_v19  ;;  %v3038_v46 = vpop.f32.mrb[35].mxu0 }
 0x983   :  { %v2391_v27 = vpop.f32.mrb[36].mxu0 }
 0x984   :  { %v2392_v26 = vadd.f32 %v2391_v27, %v2296_v40  ;;  %v3049_v12 = vpop.f32.mrb[37].mxu0  ;;  %v2886_v40 = vld [vmem:[#allocation20] ss:$0 sm:$0xff] }
 0x985   :  { %v2394_v54 = vpop.f32.mrb[38].mxu0 }
 0x986   :  { %v3050_v35 = vpop.f32.mrb[39].mxu0  ;;  %v2400_v33 = vsel %vm1532_vm3, %v2392_v26, -inf  ;;  %v2887_v54 = vld [vmem:[#allocation21] ss:$0 sm:$0xff] }
 0x987   :  { %2401 = vmax.xlane.f32.xlu1 %v2400_v33 }
 0x998   :  { %2465 = vrot.lane.b32.xlu1 %v5548_v61, %s5623_s11  ;;  %v3109_v61 = vld [vmem:[#allocation11 + $0x30] sm:$0xff]  }
 0x999   :  { %3064 = vmatpush3.bf16.msra.mxu1 %v3109_v61 }
 0x99a   :  { %3065 = vmatprep.subr.bf16.mxu1 %v5499_v15 }
 0x99d   :  { %3066 = vmatpush3.bf16.msra.mxu1 %v3110_v24 }
 0x9da   :  { %v2411_v6 = vpop.xlane.xlu0 %2410 }
 0xa14   :  { %v2402_v53 = vpop.xlane.xlu1 %2401 }
 0xa15   :  { %v2404_v42 = vsub.f32 %v2392_v26, %v2402_v53 }
 0xa17   :  { %v2407_v23 = vmul.f32 1.442695, %v2404_v42 }
 0xa18   :  { %v2466_v29 = vpop.permute.xlu1 %2465 }
 0xa19   :  { %3137 = vpow2.f32 %v2407_v23  ;;  %v2471_v19 = vsel %vm1556_vm2, %v2466_v29, 0 }
 0xa1a   :  { %3058 = vmatpush3.bf16.msra.mxu0 %v2471_v19  ;;  %3139 = vrcp.f32 %v2411_v6 }
 0xa21   :  { %v2459_v39 = vpop.f32.mrb[36].mxu1 }
 0xa22   :  { %v3055_v20 = vpop.f32.mrb[37].mxu1 }
 0xa23   :  { %v3138_v59 = vpop.eup %3137  ;;  %v2462_v1 = vpop.f32.mrb[38].mxu1 }
 0xa24   :  { %v3056_v55 = vpop.f32.mrb[39].mxu1  ;;  %v2412_v50 = vsel %vm1532_vm3, %v3138_v59, 0.0  ;;  %v2416_v8 = vpack.c.bf16 %v3138_v59, %v3138_v59  ;;  %v3140_v43 = vpop.eup %3139 }
 0xa25   :  { %2413 = vadd.xlane.f32.xlu1 %v2412_v50  ;;  %v2515_v45 = vmul.f32 %v3140_v43, %v2459_v39 }
 0xa26   :  { %3060 = vmatmul.mubr.msk.bf16.vlgmr.msra.gmra.mrb[40].mxu0 %vm1532_vm3, %v2416_v8 }
 0xab2   :  { %v2414_v44 = vpop.xlane.xlu1 %2413 }
 0xab3   :  { %3141 = vrcp.f32 %v2414_v44 }
 0xabd   :  { %v3142_v16 = vpop.eup %3141 }
 0xaf9   :  { %v2507_v3 = vpop.f32.mrb[40].mxu0 }
 0xafa   :  { %v2516_v21 = vmul.f32 %v3142_v16, %v2507_v3  ;;  %v3061_v60 = vpop.f32.mrb[41].mxu0 }
 0xafb   :  { %v2510_v9 = vpop.f32.mrb[42].mxu0 }
 0xafc   :  { %v2517_v63 = vpack.c.bf16 %v2516_v21, %v2515_v45  ;;  %v3062_v17 = vpop.f32.mrb[43].mxu0 }
 0xafe   :  { %3068 = vmatmul.mubr.msk.bf16.vlgmr.msra.gmra.mrb[40].mxu1 %vm246_vm0, %v2517_v63 }
 0xbd1   :  { %v2571_v25 = vpop.f32.mrb[40].mxu1 }
 0xbd2   :  { %v2578_v47 = vadd.f32 %v2571_v25, %v2291_v5  ;;  %v3069_v15 = vpop.f32.mrb[41].mxu1 }
 0xbd3   :  { %v2574_v32 = vpop.f32.mrb[42].mxu1 }
 0xbd4   :  { %v2580_v18 = vadd.f32 %v3147_v0, %v2578_v47  ;;  %v2579_v36 = vadd.f32 %v2574_v32, %v2292_v51  ;;  %v3070_v49 = vpop.f32.mrb[43].mxu1 }
 0xbd6   :  { %v2581_v62 = vadd.f32 %v3148_v30, %v2579_v36  ;;  %v2582_v13 = vsel %vm246_vm0, %v2580_v18, 0.0  ;;  %v2591_v7 = vmul.f32 %v2580_v18, %v2580_v18 }
 0xbd7   :  { %2583 = vadd.xlane.f32.xlu0 %v2582_v13 }
 0xbd8   :  { %v2592_v52 = vmul.f32 %v2581_v62, %v2581_v62  ;;  %v2585_v38 = vsel %vm246_vm0, %v2581_v62, 0.0  ;;  %v2593_v31 = vsel %vm246_vm0, %v2591_v7, 0.0 }
 0xbda   :  { %v2596_v48 = vsel %vm246_vm0, %v2592_v52, 0.0 }
 0xbdb   :  { %2597 = vadd.xlane.f32.xlu1 %v2596_v48  ;;  %2586 = vadd.xlane.f32.xlu0 %v2585_v38 }
 0xbdf   :  { %2594 = vadd.xlane.f32.xlu0 %v2593_v31 }
 0xc64   :  { %v2584_v34 = vpop.xlane.xlu0 %2583 }
 0xc65   :  { %v2589_v58 = vmul.f32 0.03125, %v2584_v34 }
 0xc67   :  { %v2601_v56 = vmul.f32 %v2589_v58, %v2589_v58  ;;  %v2605_v27 = vsub.f32 %v2580_v18, %v2589_v58 }
 0xc68   :  { %v2598_v28 = vpop.xlane.xlu1 %2597  ;;  %v2587_v2 = vpop.xlane.xlu0 %2586 }
 0xc69   :  { %v2590_v22 = vmul.f32 0.03125, %v2587_v2  ;;  %v2600_v4 = vmul.f32 0.03125, %v2598_v28 }
 0xc6b   :  { %v2602_v11 = vmul.f32 %v2590_v22, %v2590_v22  ;;  %v2606_v51 = vsub.f32 %v2581_v62, %v2590_v22 }
 0xc6c   :  { %v2595_v14 = vpop.xlane.xlu0 %2594 }
 0xc6d   :  { %v2604_v37 = vsub.f32 %v2600_v4, %v2602_v11  ;;  %v2599_v5 = vmul.f32 0.03125, %v2595_v14 }
 0xc6f   :  { %v2608_v10 = vadd.f32 1e-05, %v2604_v37  ;;  %v2603_v57 = vsub.f32 %v2599_v5, %v2601_v56 }
 0xc71   :  { %3143 = vrsqrt.f32 %v2608_v10  ;;  %v2607_v41 = vadd.f32 1e-05, %v2603_v57 }
 0xc73   :  { %3145 = vrsqrt.f32 %v2607_v41 }
 0xc7b   :  { %v3144_v46 = vpop.eup %3143 }
 0xc7c   :  { %v2612_v26 = vmul.f32 %v3144_v46, %v2606_v51 }
 0xc7d   :  { %v3146_v12 = vpop.eup %3145 }
 0xc7e   :  { %v2611_v35 = vmul.f32 %v3146_v12, %v2605_v27  ;;  %v2621_v33 = vmul.f32 %v2886_v40, %v2612_v26 }
 0xc80   :  { %v2620_v53 = vmul.f32 %v2886_v40, %v2611_v35  ;;  %v2630_v42 = vadd.f32 %v2887_v54, %v2621_v33 }
 0xc82   :  { %v2629_v23 = vadd.f32 %v2887_v54, %v2620_v53  ;;  %2632 = vst.msk [vmem:[#allocation23 + $0x8] sm:$0xff] %vm246_vm0, %v2630_v42 }
 0xc84   :  { %2631 = vst.msk [vmem:[#allocation23] sm:$0xff] %vm246_vm0, %v2629_v23 }
 0xc85   :  { %3376 = shalt.err (!%p3373_p10)
}
 0xc86   :  { %s5651_s27 = sld [smem:[#allocation77_spill]] }
 0xc8c   :  { %s3377_s28 = scalar_lea.hbm %s5651_s27, 256 }
 0xc8d   :  { %p3378_p11 = scmp.ne.s32.totalorder %s5651_s27, %s3377_s28  ;;  %p3381_p12 = scmp.lt.u32.totalorder %s3377_s28, %s5651_s27 }
 0xc8f   :  { %p3383_p13 = pnand %p3381_p12, %p3378_p11 }
 0xc91   :  { %3386 = shalt.err (!%p3383_p13)
}
 0xc92   :  { %s5652_s30 = smov 8   ;;  %s5653_s14 = smov 128  }
 0xc93   :  { %2644 = dma.vmem_to_hbm [thread:$0]  %s2639_s26, 256, %s5651_s27, [#allocation4], %s5653_s14, %s5653_s14, %s5652_s30  }
 0xc94   :  { %3405 = dma.done.wait [#allocation4], 256  }
 0xc95   :  { %3406 = vsyncadd [#allocation4], 4294967040 }
 0xc96   :  { %2648 = vsyncpa [#allocation3], 1 }
 0xc97   :  { %2649 = vsyncpa [#allocation7], 1 }
 0xc98   :  { %2650 = vsyncpa [#allocation10], 1 }
 0xc99   :  { %2651 = vsyncpa [#allocation13], 1 }
 0xc9a   :  { %2652 = vsyncpa [#allocation22], 1 }
 0xc9b   :  { %2653 = vsyncpa [#allocation4], 1 }
 0xc9c   :  { %2654 = vsyncpa [#allocation5], 1 }
 0xc9d   :  { %2655 = vsyncpa [#allocation16], 1 }
 0xc9e   :  { %2656 = vsyncpa [#allocation19], 1 }

</bundles_post_ra>
